<compile_context>
chip_gen: v7x
topology: tpu7x:2x2x1
jax: 0.10.0
libtpu: 0.0.40
codegen_flags: <defaults>
</compile_context>

<pallas_src>
import functools
import math

import jax
import jax.numpy as jnp
from jax import lax
from jax.experimental import pallas as pl
from jax.experimental.pallas import tpu as pltpu


NUM_FEATURES = 2048   # self.num_features in the module
MLP_HIDDEN = 768      # first Linear output dim
NUM_CLASSES = 2       # default num_classes

LANE = 128
SUBLANE = 8


def _round_up(x, m):
    return (x + m - 1) // m * m


def _vmem_capacity_bytes():
    """Physical VMEM per TensorCore; conservative (v7x) fallback."""
    try:
        return int(pltpu.get_tpu_info().vmem_capacity_bytes)
    except Exception:
        return 64 * 1024 * 1024


def _head_kernel(h_ref, w1_ref, b1_ref, w2_ref, b2_ref,
                 logits_ref, feat_ref, acc_ref,
                 *, inv_seq_len, seq_rem, tile_s, mask_last):
    """Sequence-tiled mean-pool + Linear -> GELU -> Linear.

    h_ref:  [tb, ts, H]   hidden-state tile, streamed in its source dtype
    w1_ref: [H, 768]      classifier[0].weight (x @ W layout), bf16
    b1_ref: [1, 768]      classifier[0].bias, f32
    w2_ref: [768, Cp]     classifier[2].weight, bf16, lane-padded (Cp >= 128)
    b2_ref: [1, Cp]       classifier[2].bias, f32, lane-padded
    logits_ref: [tb, Cp]  f32
    feat_ref:   [tb, H]   f32
    acc_ref:    [tb, H]   f32 running sum over the sequence axis
    """
    s = pl.program_id(1)
    last = pl.num_programs(1) - 1

    @pl.when(s == 0)
    def _():
        acc_ref[...] = jnp.zeros_like(acc_ref)

    if mask_last:
        # S % tile_s != 0: zero the out-of-bounds rows of the final (partial)
        # sequence tile in-kernel instead of padding the tensor in HBM.
        @pl.when(s != last)
        def _():
            acc_ref[...] += jnp.sum(h_ref[...], axis=1, dtype=jnp.float32)

        @pl.when(s == last)
        def _():
            h = h_ref[...]
            idx = lax.broadcasted_iota(jnp.int32, (1, tile_s, 1), 1)
            h = jnp.where(idx < seq_rem, h, jnp.zeros_like(h))
            acc_ref[...] += jnp.sum(h, axis=1, dtype=jnp.float32)
    else:
        # Hot path: straight VPU reduce of the streamed tile.
        # NOTE(v7x): if profiling shows the VALU slot co-binding with HBM,
        # this sum can be moved to the idle MXU via a ones-vector einsum.
        acc_ref[...] += jnp.sum(h_ref[...], axis=1, dtype=jnp.float32)

    @pl.when(s == last)
    def _():
        # torch.mean(drop_hidden, 1); masked/OOB rows contribute zero.
        pooled = acc_ref[...] * inv_seq_len                       # [tb, H] f32
        feat_ref[...] = pooled.astype(feat_ref.dtype)

        # classifier[0]: Linear(2048 -> 768), bf16 weights, f32 accumulation
        z1 = jnp.dot(pooled.astype(jnp.bfloat16), w1_ref[...],
                     preferred_element_type=jnp.float32) + b1_ref[...]
        # classifier[1]: nn.GELU() -- exact erf form
        g = 0.5 * z1 * (1.0 + lax.erf(z1 * (1.0 / math.sqrt(2.0))))
        # classifier[2]: Linear(768 -> num_classes), lane-padded output
        logits = jnp.dot(g.astype(jnp.bfloat16), w2_ref[...],
                         preferred_element_type=jnp.float32) + b2_ref[...]
        logits_ref[...] = logits.astype(logits_ref.dtype)


def classification_llama_head(last_hidden, w1, b1, w2, b2):
    """ClassificationLlama forward (post-backbone): returns {'logits','feat'}."""
    B, S, H = last_hidden.shape
    Hm = w1.shape[1]                      # 768
    C = w2.shape[1]                       # num_classes
    Cp = _round_up(C, LANE)               # lane-dense logits width

    h_itemsize = jnp.dtype(last_hidden.dtype).itemsize

    # bf16 classifier weights: native MXU path, half the VMEM/HBM footprint.
    # Biases stay f32 (tiny) so the bias add happens in the f32 accumulator.
    w1b = w1.astype(jnp.bfloat16)
    w2p = jnp.pad(w2, ((0, 0), (0, Cp - C))).astype(jnp.bfloat16)
    b1r = b1.astype(jnp.float32).reshape(1, Hm)
    b2p = jnp.pad(b2.astype(jnp.float32), (0, Cp - C)).reshape(1, Cp)

    # ---- generation-aware tile selection ----------------------------------
    vmem_cap = _vmem_capacity_bytes()
    budget = int(0.70 * vmem_cap)

    if B <= SUBLANE:
        tile_b = B            # single full-dim batch tile (legal for any B)
    else:
        tile_b = SUBLANE      # >= 2 batch tiles -> both v7x TCs get work

    # Fixed VMEM: double-buffered bf16 weights + f32 biases, double-buffered
    # resident outputs, f32 accumulator scratch.
    fixed = 2 * ((H * Hm + Hm * Cp) * 2 + (Hm + Cp) * 4)
    fixed += 2 * (tile_b * Cp + tile_b * H) * 4
    fixed += tile_b * H * 4

    # Larger sequence tiles on the 128 MiB parts (v5e/v6e); conservative on
    # v7x's 64 MiB.  Halve until the double-buffered hidden block fits.
    max_ts = 1024 if vmem_cap >= 96 * 1024 * 1024 else 256
    tile_s = max_ts
    while tile_s > 16 and fixed + 2 * tile_b * tile_s * H * h_itemsize > budget:
        tile_s //= 2
    if S <= tile_s:
        tile_s = S            # whole sequence in one block (full-dim, legal)
    mask_last = (S % tile_s) != 0
    seq_rem = S % tile_s if mask_last else tile_s

    grid = (pl.cdiv(B, tile_b), pl.cdiv(S, tile_s))

    est = fixed + 2 * tile_b * tile_s * H * h_itemsize
    vmem_limit = max(32 * 1024 * 1024, int(1.15 * est))
    vmem_limit = min(vmem_limit, int(0.75 * vmem_cap))
    vmem_limit = max(vmem_limit, est)     # never below the real working set

    cost = pl.CostEstimate(
        flops=int(B * S * H + 2 * B * (H * Hm + Hm * Cp)),
        transcendentals=int(B * Hm),
        bytes_accessed=int(B * S * H * h_itemsize                 # hidden read
                           + (H * Hm + Hm * Cp) * 2               # bf16 weights
                           + (Hm + Cp) * 4                        # f32 biases
                           + (B * Cp + B * H) * 4),               # outputs
    )

    kernel = functools.partial(
        _head_kernel,
        inv_seq_len=1.0 / S,
        seq_rem=seq_rem,
        tile_s=tile_s,
        mask_last=mask_last,
    )

    logits_p, feat = pl.pallas_call(
        kernel,
        out_shape=(
            jax.ShapeDtypeStruct((B, Cp), jnp.float32),
            jax.ShapeDtypeStruct((B, H), jnp.float32),
        ),
        grid_spec=pltpu.PrefetchScalarGridSpec(
            num_scalar_prefetch=0,
            grid=grid,
            in_specs=[
                pl.BlockSpec((tile_b, tile_s, H), lambda b, s: (b, s, 0)),
                pl.BlockSpec((H, Hm), lambda b, s: (0, 0)),
                pl.BlockSpec((1, Hm), lambda b, s: (0, 0)),
                pl.BlockSpec((Hm, Cp), lambda b, s: (0, 0)),
                pl.BlockSpec((1, Cp), lambda b, s: (0, 0)),
            ],
            out_specs=[
                pl.BlockSpec((tile_b, Cp), lambda b, s: (b, 0)),
                pl.BlockSpec((tile_b, H), lambda b, s: (b, 0)),
            ],
            scratch_shapes=[pltpu.VMEM((tile_b, H), jnp.float32)],
        ),
        compiler_params=pltpu.CompilerParams(
            dimension_semantics=("parallel", "arbitrary"),
            vmem_limit_bytes=vmem_limit,
        ),
        cost_estimate=cost,
    )(last_hidden, w1b, b1r, w2p, b2p)

    return {"logits": logits_p[:, :C], "feat": feat}


def _init_params(key):
    """Deterministic init of classifier params (shapes from module __init__)."""
    k1, k2, k3, k4 = jax.random.split(key, 4)
    # PyTorch nn.Linear default init: U(-1/sqrt(fan_in), 1/sqrt(fan_in)).
    lim1 = 1.0 / math.sqrt(NUM_FEATURES)
    lim2 = 1.0 / math.sqrt(MLP_HIDDEN)
    # Stored in x @ W layout (transpose of torch's [out, in] weight).
    w1 = jax.random.uniform(k1, (NUM_FEATURES, MLP_HIDDEN), jnp.float32,
                            minval=-lim1, maxval=lim1)
    b1 = jax.random.uniform(k2, (MLP_HIDDEN,), jnp.float32,
                            minval=-lim1, maxval=lim1)
    w2 = jax.random.uniform(k3, (MLP_HIDDEN, NUM_CLASSES), jnp.float32,
                            minval=-lim2, maxval=lim2)
    b2 = jax.random.uniform(k4, (NUM_CLASSES,), jnp.float32,
                            minval=-lim2, maxval=lim2)
    return w1, b1, w2, b2


def _reference(last_hidden, w1, b1, w2, b2):
    """Mirrors the kernel numerics: f32 mean-pool, bf16-weight matmuls w/ f32 acc."""
    pooled = jnp.mean(last_hidden.astype(jnp.float32), axis=1)
    z1 = jnp.dot(pooled.astype(jnp.bfloat16), w1.astype(jnp.bfloat16),
                 preferred_element_type=jnp.float32) + b1
    g = 0.5 * z1 * (1.0 + lax.erf(z1 / math.sqrt(2.0)))
    logits = jnp.dot(g.astype(jnp.bfloat16), w2.astype(jnp.bfloat16),
                     preferred_element_type=jnp.float32) + b2
    return logits, pooled


if __name__ == "__main__":
    key = jax.random.PRNGKey(0)
    k_x, k_p = jax.random.split(key)

    B, S = 2, 8  # small batch / sequence; hidden size fixed at 2048 by module
    last_hidden = jax.random.normal(k_x, (B, S, NUM_FEATURES), jnp.float32)

    w1, b1, w2, b2 = _init_params(k_p)

    out = classification_llama_head(last_hidden, w1, b1, w2, b2)
    jax.block_until_ready(out)

    ref_logits, ref_feat = _reference(last_hidden, w1, b1, w2, b2)
    assert out["logits"].shape == (B, NUM_CLASSES)
    assert out["feat"].shape == (B, NUM_FEATURES)
    assert jnp.allclose(out["feat"], ref_feat, atol=1e-4, rtol=1e-4)
    assert jnp.allclose(out["logits"], ref_logits, atol=3e-3, rtol=3e-3)

    print("KERNEL_OK")
</pallas_src>

<mosaic_0001>
module attributes {stable_mosaic.version = 11 : i64} {
  func.func @_head_kernel(%arg0: i32, %arg1: i32, %arg2: memref<2x8x2048xf32, #tpu.memory_space<vmem>>, %arg3: memref<2048x768xbf16, #tpu.memory_space<vmem>>, %arg4: memref<1x768xf32, #tpu.memory_space<vmem>>, %arg5: memref<768x128xbf16, #tpu.memory_space<vmem>>, %arg6: memref<1x128xf32, #tpu.memory_space<vmem>>, %arg7: memref<2x128xf32, #tpu.memory_space<vmem>>, %arg8: memref<2x2048xf32, #tpu.memory_space<vmem>>, %arg9: memref<2x2048xf32, #tpu.memory_space<vmem>>) attributes {dimension_semantics = [#tpu.dimension_semantics<parallel>, #tpu.dimension_semantics<arbitrary>], iteration_bounds = array<i64: 1, 1>, scalar_prefetch = 0 : i64, scratch_operands = 1 : i64, tpu.core_type = #tpu.core_type<tc>, window_params = [{transform_indices = @transform_0, window_bounds = array<i64: 2, 8, 2048>}, {pipeline_mode = #tpu.pipeline_mode<synchronous>, transform_indices = @transform_1, window_bounds = array<i64: 2048, 768>}, {pipeline_mode = #tpu.pipeline_mode<synchronous>, transform_indices = @transform_2, window_bounds = array<i64: 1, 768>}, {pipeline_mode = #tpu.pipeline_mode<synchronous>, transform_indices = @transform_3, window_bounds = array<i64: 768, 128>}, {pipeline_mode = #tpu.pipeline_mode<synchronous>, transform_indices = @transform_4, window_bounds = array<i64: 1, 128>}, {transform_indices = @transform_5, window_bounds = array<i64: 2, 128>}, {transform_indices = @transform_6, window_bounds = array<i64: 2, 2048>}]} {
    %c0_i32 = arith.constant 0 : i32
    %0 = arith.cmpi eq, %arg1, %c0_i32 : i32
    %1 = arith.extui %0 : i1 to i32
    %c0_i32_0 = arith.constant 0 : i32
    %2 = arith.cmpi ne, %1, %c0_i32_0 : i32
    scf.if %2 {
      %cst_9 = arith.constant 0.000000e+00 : f32
      %11 = vector.broadcast %cst_9 : f32 to vector<2x2048xf32>
      %c0_10 = arith.constant 0 : index
      %c0_11 = arith.constant 0 : index
      %12 = vector.load %arg9[%c0_10, %c0_11] : memref<2x2048xf32, #tpu.memory_space<vmem>>, vector<2x2048xf32>
      tpu.vector_store %arg9[%c0_10, %c0_11], %11 {strides = array<i32>} : memref<2x2048xf32, #tpu.memory_space<vmem>>, vector<2x2048xf32>,
    } else {
    }
    %c0 = arith.constant 0 : index
    %c0_1 = arith.constant 0 : index
    %3 = vector.load %arg9[%c0, %c0_1] : memref<2x2048xf32, #tpu.memory_space<vmem>>, vector<2x2048xf32>
    %c0_2 = arith.constant 0 : index
    %c0_3 = arith.constant 0 : index
    %c0_4 = arith.constant 0 : index
    %4 = vector.load %arg2[%c0_2, %c0_3, %c0_4] : memref<2x8x2048xf32, #tpu.memory_space<vmem>>, vector<2x8x2048xf32>
    %cst = arith.constant dense<0.000000e+00> : vector<2x2048xf32>
    %5 = vector.multi_reduction <add>, %4, %cst [1] : vector<2x8x2048xf32> to vector<2x2048xf32>
    %6 = arith.addf %3, %5 : vector<2x2048xf32>
    %c0_5 = arith.constant 0 : index
    %c0_6 = arith.constant 0 : index
    %7 = vector.load %arg9[%c0_5, %c0_6] : memref<2x2048xf32, #tpu.memory_space<vmem>>, vector<2x2048xf32>
    tpu.vector_store %arg9[%c0_5, %c0_6], %6 {strides = array<i32>} : memref<2x2048xf32, #tpu.memory_space<vmem>>, vector<2x2048xf32>,
    %c0_i32_7 = arith.constant 0 : i32
    %8 = arith.cmpi eq, %arg1, %c0_i32_7 : i32
    %9 = arith.extui %8 : i1 to i32
    %c0_i32_8 = arith.constant 0 : i32
    %10 = arith.cmpi ne, %9, %c0_i32_8 : i32
    scf.if %10 {
      %c0_9 = arith.constant 0 : index
      %c0_10 = arith.constant 0 : index
      %11 = vector.load %arg9[%c0_9, %c0_10] : memref<2x2048xf32, #tpu.memory_space<vmem>>, vector<2x2048xf32>
      %cst_11 = arith.constant 1.250000e-01 : f32
      %12 = vector.broadcast %cst_11 : f32 to vector<2x2048xf32>
      %13 = arith.mulf %11, %12 : vector<2x2048xf32>
      %c0_12 = arith.constant 0 : index
      %c0_13 = arith.constant 0 : index
      %14 = vector.load %arg8[%c0_12, %c0_13] : memref<2x2048xf32, #tpu.memory_space<vmem>>, vector<2x2048xf32>
      tpu.vector_store %arg8[%c0_12, %c0_13], %13 {strides = array<i32>} : memref<2x2048xf32, #tpu.memory_space<vmem>>, vector<2x2048xf32>,
      %15 = arith.truncf %13 : vector<2x2048xf32> to vector<2x2048xbf16>
      %c0_14 = arith.constant 0 : index
      %c0_15 = arith.constant 0 : index
      %16 = vector.load %arg3[%c0_14, %c0_15] : memref<2048x768xbf16, #tpu.memory_space<vmem>>, vector<2048x768xbf16>
      %cst_16 = arith.constant dense<0.000000e+00> : vector<2x768xf32>
      %17 = tpu.matmul %15, %16, %cst_16 {dimension_numbers = #tpu.dot_dimension_numbers<[1], [0], [0], [1], [0, 0, 1, 1], [], []>} : vector<2x2048xbf16>, vector<2048x768xbf16>, vector<2x768xf32> -> vector<2x768xf32>
      %c0_17 = arith.constant 0 : index
      %c0_18 = arith.constant 0 : index
      %18 = vector.load %arg4[%c0_17, %c0_18] : memref<1x768xf32, #tpu.memory_space<vmem>>, vector<1x768xf32>
      %19 = vector.broadcast %18 : vector<1x768xf32> to vector<2x768xf32>
      %20 = arith.addf %17, %19 : vector<2x768xf32>
      %cst_19 = arith.constant 5.000000e-01 : f32
      %21 = vector.broadcast %cst_19 : f32 to vector<2x768xf32>
      %22 = arith.mulf %21, %20 : vector<2x768xf32>
      %cst_20 = arith.constant 0.707106769 : f32
      %23 = vector.broadcast %cst_20 : f32 to vector<2x768xf32>
      %24 = arith.mulf %20, %23 : vector<2x768xf32>
      %25 = math.erf %24 : vector<2x768xf32>
      %cst_21 = arith.constant 1.000000e+00 : f32
      %26 = vector.broadcast %cst_21 : f32 to vector<2x768xf32>
      %27 = arith.addf %26, %25 : vector<2x768xf32>
      %28 = arith.mulf %22, %27 : vector<2x768xf32>
      %29 = arith.truncf %28 : vector<2x768xf32> to vector<2x768xbf16>
      %c0_22 = arith.constant 0 : index
      %c0_23 = arith.constant 0 : index
      %30 = vector.load %arg5[%c0_22, %c0_23] : memref<768x128xbf16, #tpu.memory_space<vmem>>, vector<768x128xbf16>
      %cst_24 = arith.constant dense<0.000000e+00> : vector<2x128xf32>
      %31 = tpu.matmul %29, %30, %cst_24 {dimension_numbers = #tpu.dot_dimension_numbers<[1], [0], [0], [1], [0, 0, 1, 1], [], []>} : vector<2x768xbf16>, vector<768x128xbf16>, vector<2x128xf32> -> vector<2x128xf32>
      %c0_25 = arith.constant 0 : index
      %c0_26 = arith.constant 0 : index
      %32 = vector.load %arg6[%c0_25, %c0_26] : memref<1x128xf32, #tpu.memory_space<vmem>>, vector<1x128xf32>
      %33 = vector.broadcast %32 : vector<1x128xf32> to vector<2x128xf32>
      %34 = arith.addf %31, %33 : vector<2x128xf32>
      %c0_27 = arith.constant 0 : index
      %c0_28 = arith.constant 0 : index
      %35 = vector.load %arg7[%c0_27, %c0_28] : memref<2x128xf32, #tpu.memory_space<vmem>>, vector<2x128xf32>
      tpu.vector_store %arg7[%c0_27, %c0_28], %34 {strides = array<i32>} : memref<2x128xf32, #tpu.memory_space<vmem>>, vector<2x128xf32>,
    } else {
    }
    return
  }
  func.func @transform_0(%arg0: i32, %arg1: i32) -> (i32, i32, i32) {
    %c0_i32 = arith.constant 0 : i32
    %c0_i32_0 = arith.constant 0 : i32
    return %arg0, %arg1, %c0_i32 : i32, i32, i32
  }
  func.func @transform_1(%arg0: i32, %arg1: i32) -> (i32, i32) {
    %c0_i32 = arith.constant 0 : i32
    %c0_i32_0 = arith.constant 0 : i32
    %c0_i32_1 = arith.constant 0 : i32
    return %c0_i32, %c0_i32_0 : i32, i32
  }
  func.func @transform_2(%arg0: i32, %arg1: i32) -> (i32, i32) {
    %c0_i32 = arith.constant 0 : i32
    %c0_i32_0 = arith.constant 0 : i32
    %c0_i32_1 = arith.constant 0 : i32
    return %c0_i32, %c0_i32_0 : i32, i32
  }
  func.func @transform_3(%arg0: i32, %arg1: i32) -> (i32, i32) {
    %c0_i32 = arith.constant 0 : i32
    %c0_i32_0 = arith.constant 0 : i32
    %c0_i32_1 = arith.constant 0 : i32
    return %c0_i32, %c0_i32_0 : i32, i32
  }
  func.func @transform_4(%arg0: i32, %arg1: i32) -> (i32, i32) {
    %c0_i32 = arith.constant 0 : i32
    %c0_i32_0 = arith.constant 0 : i32
    %c0_i32_1 = arith.constant 0 : i32
    return %c0_i32, %c0_i32_0 : i32, i32
  }
  func.func @transform_5(%arg0: i32, %arg1: i32) -> (i32, i32) {
    %c0_i32 = arith.constant 0 : i32
    %c0_i32_0 = arith.constant 0 : i32
    return %arg0, %c0_i32 : i32, i32
  }
  func.func @transform_6(%arg0: i32, %arg1: i32) -> (i32, i32) {
    %c0_i32 = arith.constant 0 : i32
    %c0_i32_0 = arith.constant 0 : i32
    return %arg0, %c0_i32 : i32, i32
  }
}

</mosaic_0001>

<bundles_post_ra>
// kernel: tpu_custom_call.1
= control target key start
LH: loop header
LB: loop body
LE: loop exit
PB: predicated region body
PF: predicated region fallthrough
CT: control target
= control target key end

     0   :  { %12 = vsyncpa [#allocation4], 0  ;;  %s9561_s0 = inlined_call_operand.hbm [shape: f32[2,8,2048], index: 0, kind: input, shape index: {}]   ;;  %s9562_s1 = inlined_call_operand.hbm [shape: bf16[2048,768], index: 1, kind: input, shape index: {}]   ;;  %s9563_s2 = inlined_call_operand.hbm [shape: f32[1,768], index: 2, kind: input, shape index: {}]   ;;  %s9564_s3 = inlined_call_operand.hbm [shape: bf16[768,128], index: 3, kind: input, shape index: {}]   ;;  %s9565_s4 = inlined_call_operand.hbm [shape: f32[1,128], index: 4, kind: input, shape index: {}]   ;;  %s9566_s5 = inlined_call_operand.hbm [shape: f32[2,128], index: 5, kind: output, shape index: {0}]   ;;  %s9567_s6 = inlined_call_operand.hbm [shape: f32[2,2048], index: 6, kind: output, shape index: {1}]  }
   0x1   :  { %13 = vsyncpa [#allocation7], 0 }
   0x2   :  { %14 = vsyncpa [#allocation10], 0 }
   0x3   :  { %15 = vsyncpa [#allocation5], 0 }
   0x4   :  { %16 = vsyncpa [#allocation14], 0  ;;  %s9223_s21 = smov [#allocation6]   ;;  %s9059_s25 = scalar_lea.hbm %s9562_s1, 98304 }
   0x5   :  { %s34_s22 = sshll.u32 %s9223_s21, 4  ;;  %p9060_p0 = scmp.ne.s32.totalorder %s9562_s1, %s9059_s25  ;;  %s35_s22 = int_to_ptr.vmem [resolvable:$true] %s34_s22 }
   0x6   :  { %p9063_p1 = scmp.lt.u32.totalorder %s9059_s25, %s9562_s1 }
   0x8   :  { %p9065_p2 = pnand %p9063_p1, %p9060_p0 }
   0xa   :  { %9068 = shalt.err (!%p9065_p2)
}
   0xb   :  { %s9069_s30 = scalar_lea.vmem %s35_s22, 98304  ;;  %p9074_p4 = scmp.lt.s32.totalorder %s35_s22, %s35_s22 }
   0xc   :  { %p9070_p3 = scmp.ne.s32.totalorder %s35_s22, %s9069_s30  ;;  %p9075_p5 = scmp.lt.s32.totalorder %s9069_s30, %s9069_s30 }
   0xe   :  { %p9076_p6 = por %p9075_p5, %p9074_p4 }
  0x10   :  { %p9077_p7 = pnand %p9076_p6, %p9070_p3 }
  0x12   :  { %9080 = shalt.err (!%p9077_p7)
}
  0x13   :  { %s9224_s7 = smov 384   ;;  %s9225_s8 = smov 24  }
  0x14   :  { %40 = dma.hbm_to_vmem [thread:$0]  %s9562_s1, 98304, %s35_s22, [#allocation7], %s9224_s7, %s9224_s7, %s9225_s8  }
  0x15   :  { %s9226_s11 = smov [#allocation9]   ;;  %s9081_s15 = scalar_lea.hbm %s9564_s3, 6144 }
  0x16   :  { %s56_s12 = sshll.u32 %s9226_s11, 4  ;;  %p9082_p8 = scmp.ne.s32.totalorder %s9564_s3, %s9081_s15  ;;  %s57_s12 = int_to_ptr.vmem [resolvable:$true] %s56_s12 }
  0x17   :  { %p9085_p9 = scmp.lt.u32.totalorder %s9081_s15, %s9564_s3 }
  0x19   :  { %p9087_p10 = pnand %p9085_p9, %p9082_p8 }
  0x1b   :  { %9090 = shalt.err (!%p9087_p10)
}
  0x1c   :  { %s9091_s20 = scalar_lea.vmem %s57_s12, 6144  ;;  %p9096_p12 = scmp.lt.s32.totalorder %s57_s12, %s57_s12 }
  0x1d   :  { %p9092_p11 = scmp.ne.s32.totalorder %s57_s12, %s9091_s20  ;;  %p9097_p13 = scmp.lt.s32.totalorder %s9091_s20, %s9091_s20 }
  0x1f   :  { %p9098_p0 = por %p9097_p13, %p9096_p12 }
  0x21   :  { %p9099_p1 = pnand %p9098_p0, %p9092_p11 }
  0x23   :  { %9102 = shalt.err (!%p9099_p1)
}
  0x24   :  { %s9227_s1 = smov 64   ;;  %s9228_s21 = smov 4  }
  0x25   :  { %62 = dma.hbm_to_vmem [thread:$0]  %s9564_s3, 6144, %s57_s12, [#allocation10], %s9227_s1, %s9227_s1, %s9228_s21  }
  0x26   :  { %s9229_s24 = smov [#allocation3]   ;;  %s9103_s28 = scalar_lea.hbm %s9561_s0, 4096 }
  0x27   :  { %s22_s25 = sshll.u32 %s9229_s24, 4  ;;  %p9104_p2 = scmp.ne.s32.totalorder %s9561_s0, %s9103_s28  ;;  %s23_s25 = int_to_ptr.vmem [resolvable:$true] %s22_s25 }
  0x28   :  { %p9107_p3 = scmp.lt.u32.totalorder %s9103_s28, %s9561_s0 }
  0x2a   :  { %p9109_p4 = pnand %p9107_p3, %p9104_p2 }
  0x2c   :  { %9112 = shalt.err (!%p9109_p4)
}
  0x2d   :  { %s9113_s9 = scalar_lea.vmem %s23_s25, 4096  ;;  %p9118_p6 = scmp.lt.s32.totalorder %s23_s25, %s23_s25 }
  0x2e   :  { %p9114_p5 = scmp.ne.s32.totalorder %s23_s25, %s9113_s9  ;;  %p9119_p7 = scmp.lt.s32.totalorder %s9113_s9, %s9113_s9 }
  0x30   :  { %p9120_p8 = por %p9119_p7, %p9118_p6 }
  0x32   :  { %p9121_p9 = pnand %p9120_p8, %p9114_p5 }
  0x34   :  { %9124 = shalt.err (!%p9121_p9)
}
  0x35   :  { %s9230_s3 = smov 2048   ;;  %s9231_s10 = smov 128  }
  0x36   :  { %28 = dma.hbm_to_vmem [thread:$0]  %s9561_s0, 4096, %s23_s25, [#allocation4], %s9230_s3, %s9230_s3, %s9231_s10  }
  0x37   :  { %s9232_s13 = smov [#allocation8]   ;;  %s9233_s15 = smov [#allocation11]  }
  0x38   :  { %s47_s14 = sshll.u32 %s9232_s13, 4  ;;  %s69_s16 = sshll.u32 %s9233_s15, 4  ;;  %s48_s14 = int_to_ptr.vmem [resolvable:$true] %s47_s14  ;;  %s70_s16 = int_to_ptr.vmem [resolvable:$true] %s69_s16 }
  0x39   :  { %s9125_s19 = scalar_lea.hbm %s9563_s2, 96 }
  0x3a   :  { %p9126_p10 = scmp.ne.s32.totalorder %s9563_s2, %s9125_s19  ;;  %p9129_p11 = scmp.lt.u32.totalorder %s9125_s19, %s9563_s2 }
  0x3c   :  { %p9131_p12 = pnand %p9129_p11, %p9126_p10 }
  0x3e   :  { %9134 = shalt.err (!%p9131_p12)
}
  0x3f   :  { %s9135_s0 = scalar_lea.vmem %s48_s14, 96  ;;  %p9140_p0 = scmp.lt.s32.totalorder %s48_s14, %s48_s14 }
  0x40   :  { %p9136_p13 = scmp.ne.s32.totalorder %s48_s14, %s9135_s0  ;;  %p9141_p1 = scmp.lt.s32.totalorder %s9135_s0, %s9135_s0 }
  0x42   :  { %p9142_p2 = por %p9141_p1, %p9140_p0 }
  0x44   :  { %p9143_p3 = pnand %p9142_p2, %p9136_p13 }
  0x46   :  { %9146 = shalt.err (!%p9143_p3)
}
  0x47   :  { %50 = dma.hbm_to_vmem [thread:$0]  %s9563_s2, 96, %s48_s14, [#allocation7]  }
  0x48   :  { %s9147_s27 = scalar_lea.hbm %s9565_s4, 16 }
  0x49   :  { %p9148_p4 = scmp.ne.s32.totalorder %s9565_s4, %s9147_s27  ;;  %p9151_p5 = scmp.lt.u32.totalorder %s9147_s27, %s9565_s4 }
  0x4b   :  { %p9153_p6 = pnand %p9151_p5, %p9148_p4 }
  0x4d   :  { %9156 = shalt.err (!%p9153_p6)
}
  0x4e   :  { %s9157_s8 = scalar_lea.vmem %s70_s16, 16  ;;  %s9161_s9 = scalar_lea.vmem %s70_s16, 32 }
  0x4f   :  { %p9158_p7 = scmp.ne.s32.totalorder %s70_s16, %s9157_s8  ;;  %p9162_p8 = scmp.lt.s32.totalorder %s70_s16, %s70_s16 }
  0x50   :  { %p9163_p9 = scmp.lt.s32.totalorder %s9161_s9, %s9157_s8 }
  0x52   :  { %p9164_p10 = por %p9163_p9, %p9162_p8 }
  0x54   :  { %p9165_p11 = pnand %p9164_p10, %p9158_p7 }
  0x56   :  { %9168 = shalt.err (!%p9165_p11)
}
  0x57   :  { %72 = dma.hbm_to_vmem [thread:$0]  %s9565_s4, 16, %s70_s16, [#allocation10]  }
  0x58   :  { %9213 = dma.done.wait [#allocation4], 4096  }
  0x59   :  { %9214 = vsyncadd [#allocation4], 4294963200 }
  0x5a   :  { %9215 = dma.done.wait [#allocation7], 98400  }
  0x5b   :  { %9216 = vsyncadd [#allocation7], 4294868896 }
  0x5c   :  { %9217 = dma.done.wait [#allocation10], 6160  }
  0x5d   :  { %9218 = vsyncadd [#allocation10], 4294961136  ;;  %v7846_v0 = vld [vmem:[#allocation6 + $0x4] ss:$24 sps:$4 sm:$0xff]   ;;  %v7850_v2 = vld [vmem:[#allocation6] ss:$24 sps:$4 sm:$0xff]   ;;  %v362_v43 = vlaneseq }
  0x5e   :  { %v7848_v1 = vld [vmem:[#allocation6 + $0x904] ss:$24 sps:$4 sm:$0xff]   ;;  %5298 = vmatprep.subr.bf16.mxu1 %v7846_v0  ;;  %v7851_v3 = vld [vmem:[#allocation6 + $0x900] ss:$24 sps:$4 sm:$0xff]   ;;  %v7852_v4 = vld [vmem:[#allocation6 + $0x34] ss:$24 sps:$4 sm:$0xff]  }
  0x5f   :  { %5421 = vmatprep.subr.bf16.mxu0 %v7848_v1  ;;  %5299 = vmatpush1.bf16.msra.mxu1 %v7850_v2  ;;  %v7854_v5 = vld [vmem:[#allocation6 + $0x934] ss:$24 sps:$4 sm:$0xff]   ;;  %v7856_v6 = vld [vmem:[#allocation6 + $0x30] ss:$24 sps:$4 sm:$0xff]   ;;  %v7858_v8 = vld [vmem:[#allocation6 + $0x64] ss:$24 sps:$4 sm:$0xff]  }
  0x60   :  { %5422 = vmatpush1.bf16.msra.mxu0 %v7851_v3  ;;  %5300 = vmatprep.subr.bf16.mxu1 %v7852_v4  ;;  %v7857_v7 = vld [vmem:[#allocation6 + $0x930] ss:$24 sps:$4 sm:$0xff]   ;;  %v7860_v9 = vld [vmem:[#allocation6 + $0x964] ss:$24 sps:$4 sm:$0xff]   ;;  %v7862_v10 = vld [vmem:[#allocation6 + $0x60] ss:$24 sps:$4 sm:$0xff]  }
  0x61   :  { %5423 = vmatprep.subr.bf16.mxu0 %v7854_v5  ;;  %v7863_v11 = vld [vmem:[#allocation6 + $0x960] ss:$24 sps:$4 sm:$0xff]   ;;  %v7864_v12 = vld [vmem:[#allocation6 + $0x94] ss:$24 sps:$4 sm:$0xff]   ;;  %v7868_v14 = vld [vmem:[#allocation6 + $0x90] ss:$24 sps:$4 sm:$0xff]  }
  0x62   :  { %v7866_v13 = vld [vmem:[#allocation6 + $0x994] ss:$24 sps:$4 sm:$0xff]   ;;  %v7869_v15 = vld [vmem:[#allocation6 + $0x990] ss:$24 sps:$4 sm:$0xff]   ;;  %v7870_v16 = vld [vmem:[#allocation6 + $0xc4] ss:$24 sps:$4 sm:$0xff]  }
  0x63   :  { %5301 = vmatpush1.bf16.msra.mxu1 %v7856_v6  ;;  %v7872_v17 = vld [vmem:[#allocation6 + $0x9c4] ss:$24 sps:$4 sm:$0xff]   ;;  %v7874_v18 = vld [vmem:[#allocation6 + $0xc0] ss:$24 sps:$4 sm:$0xff]   ;;  %v7876_v20 = vld [vmem:[#allocation6 + $0xf4] ss:$24 sps:$4 sm:$0xff]  }
  0x64   :  { %5424 = vmatpush1.bf16.msra.mxu0 %v7857_v7  ;;  %5302 = vmatprep.subr.bf16.mxu1 %v7858_v8  ;;  %v7875_v19 = vld [vmem:[#allocation6 + $0x9c0] ss:$24 sps:$4 sm:$0xff]   ;;  %v7878_v21 = vld [vmem:[#allocation6 + $0x9f4] ss:$24 sps:$4 sm:$0xff]   ;;  %v7880_v22 = vld [vmem:[#allocation6 + $0xf0] ss:$24 sps:$4 sm:$0xff]  }
  0x65   :  { %5425 = vmatprep.subr.bf16.mxu0 %v7860_v9  ;;  %v7881_v23 = vld [vmem:[#allocation6 + $0x9f0] ss:$24 sps:$4 sm:$0xff]   ;;  %v7882_v24 = vld [vmem:[#allocation6 + $0x124] ss:$24 sps:$4 sm:$0xff]   ;;  %v7886_v26 = vld [vmem:[#allocation6 + $0x120] ss:$24 sps:$4 sm:$0xff]  }
  0x66   :  { %v7884_v25 = vld [vmem:[#allocation6 + $0xa24] ss:$24 sps:$4 sm:$0xff]   ;;  %v7887_v27 = vld [vmem:[#allocation6 + $0xa20] ss:$24 sps:$4 sm:$0xff]   ;;  %v7888_v28 = vld [vmem:[#allocation6 + $0x154] ss:$24 sps:$4 sm:$0xff]  }
  0x67   :  { %5303 = vmatpush1.bf16.msra.mxu1 %v7862_v10  ;;  %v7890_v29 = vld [vmem:[#allocation6 + $0xa54] ss:$24 sps:$4 sm:$0xff]   ;;  %v7892_v30 = vld [vmem:[#allocation6 + $0x150] ss:$24 sps:$4 sm:$0xff]   ;;  %v7894_v32 = vld [vmem:[#allocation6 + $0x184] ss:$24 sps:$4 sm:$0xff]  }
  0x68   :  { %5426 = vmatpush1.bf16.msra.mxu0 %v7863_v11  ;;  %5304 = vmatprep.subr.bf16.mxu1 %v7864_v12  ;;  %v7893_v31 = vld [vmem:[#allocation6 + $0xa50] ss:$24 sps:$4 sm:$0xff]   ;;  %v7896_v33 = vld [vmem:[#allocation6 + $0xa84] ss:$24 sps:$4 sm:$0xff]   ;;  %v7898_v34 = vld [vmem:[#allocation6 + $0x180] ss:$24 sps:$4 sm:$0xff]  }
  0x69   :  { %5427 = vmatprep.subr.bf16.mxu0 %v7866_v13  ;;  %v7899_v35 = vld [vmem:[#allocation6 + $0xa80] ss:$24 sps:$4 sm:$0xff]   ;;  %v7900_v36 = vld [vmem:[#allocation6 + $0x1b4] ss:$24 sps:$4 sm:$0xff]   ;;  %v7904_v38 = vld [vmem:[#allocation6 + $0x1b0] ss:$24 sps:$4 sm:$0xff]  }
  0x6a   :  { %v7902_v37 = vld [vmem:[#allocation6 + $0xab4] ss:$24 sps:$4 sm:$0xff]   ;;  %v7905_v39 = vld [vmem:[#allocation6 + $0xab0] ss:$24 sps:$4 sm:$0xff]   ;;  %v7906_v40 = vld [vmem:[#allocation6 + $0x1e4] ss:$24 sps:$4 sm:$0xff]  }
  0x6b   :  { %5305 = vmatpush1.bf16.msra.mxu1 %v7868_v14  ;;  %v9234_v41 = vmov 1983009808   ;;  %v7908_v44 = vld [vmem:[#allocation6 + $0xae4] ss:$24 sps:$4 sm:$0xff]   ;;  %v7910_v45 = vld [vmem:[#allocation6 + $0x1e0] ss:$24 sps:$4 sm:$0xff]  }
  0x6c   :  { %5428 = vmatpush1.bf16.msra.mxu0 %v7869_v15  ;;  %5306 = vmatprep.subr.bf16.mxu1 %v7870_v16  ;;  %v360_v42 = vunpack.c.l.s4 %v9234_v41  ;;  %v7911_v46 = vld [vmem:[#allocation6 + $0xae0] ss:$24 sps:$4 sm:$0xff]   ;;  %v7912_v47 = vld [vmem:[#allocation6 + $0x214] ss:$24 sps:$4 sm:$0xff]   ;;  %v9332_v49 = vshrl.u32 %v362_v43, 7  ;;  %vm498_vm0 = vcmask 1041409  }
  0x6d   :  { %5429 = vmatprep.subr.bf16.mxu0 %v7872_v17  ;;  %v7914_v50 = vld [vmem:[#allocation6 + $0xb14] ss:$24 sps:$4 sm:$0xff]   ;;  %v7916_v51 = vld [vmem:[#allocation6 + $0x210] ss:$24 sps:$4 sm:$0xff]   ;;  %v101_v53 = vld [vmem:[#allocation3] sm:$0xff]  ;;  %vm500_vm1 = vcmask 1043459  }
  0x6e   :  { %v361_v48 = vunpack.c.0.s8 %v360_v42  ;;  %v7917_v52 = vld [vmem:[#allocation6 + $0xb10] ss:$24 sps:$4 sm:$0xff]   ;;  %v7918_v54 = vld [vmem:[#allocation6 + $0x244] ss:$24 sps:$4 sm:$0xff]   ;;  %v133_v59 = vrot.slane %v101_v53, 4  ;;  %vm502_vm2 = vcmask 1045509  }
  0x6f   :  { %5307 = vmatpush1.bf16.msra.mxu1 %v7874_v18  ;;  %v7920_v55 = vld [vmem:[#allocation6 + $0xb44] ss:$24 sps:$4 sm:$0xff]   ;;  %v102_v56 = vld [vmem:[#allocation3 + $0x8] sm:$0xff]  ;;  %v103_v57 = vld [vmem:[#allocation3 + $0x10] sm:$0xff]  ;;  %vm504_vm3 = vcmask 1047559   ;;  %s9235_s4 = smov [#allocation13]  }
  0x70   :  { %5430 = vmatpush1.bf16.msra.mxu0 %v7875_v19  ;;  %5308 = vmatprep.subr.bf16.mxu1 %v7876_v20  ;;  %v104_v58 = vld [vmem:[#allocation3 + $0x18] sm:$0xff]  ;;  %v117_v60 = vld [vmem:[#allocation3 + $0x80] sm:$0xff]  ;;  %v118_v61 = vld [vmem:[#allocation3 + $0x88] sm:$0xff]  ;;  %v139_v63 = vrot.slane %v102_v56, 4  ;;  %v145_v0 = vrot.slane %v103_v57, 4  ;;  %v9335_v2 = vsub.s32 %v361_v48, %v9332_v49  ;;  %v134_v4 = vadd.f32 %v133_v59, %v101_v53  ;;  %s6846_s10 = sshll.u32 %s9235_s4, 4  ;;  %s6847_s10 = int_to_ptr.vmem [resolvable:$true] %s6846_s10 }
  0x71   :  { %5431 = vmatprep.subr.bf16.mxu0 %v7878_v21  ;;  %v119_v62 = vld [vmem:[#allocation3 + $0x90] sm:$0xff]  ;;  %v151_v1 = vrot.slane %v104_v58, 4  ;;  %v120_v3 = vld [vmem:[#allocation3 + $0x98] sm:$0xff]  ;;  %v229_v5 = vrot.slane %v117_v60, 4  ;;  %v235_v6 = vrot.slane %v118_v61, 4  ;;  %s9169_s11 = scalar_lea.vmem %s6847_s10, 512  ;;  %p9174_p13 = scmp.lt.s32.totalorder %s6847_s10, %s6847_s10 }
  0x72   :  { %v241_v7 = vrot.slane %v119_v62, 4  ;;  %v7922_v8 = vld [vmem:[#allocation6 + $0x240] ss:$24 sps:$4 sm:$0xff]   ;;  %v140_v9 = vadd.f32 %v139_v63, %v102_v56  ;;  %v146_v10 = vadd.f32 %v145_v0, %v103_v57  ;;  %v247_v12 = vrot.slane %v120_v3, 4  ;;  %v7924_v14 = vld [vmem:[#allocation6 + $0x274] ss:$24 sps:$4 sm:$0xff]   ;;  %p9170_p12 = scmp.ne.s32.totalorder %s6847_s10, %s9169_s11  ;;  %p9175_p0 = scmp.lt.s32.totalorder %s9169_s11, %s9169_s11 }
  0x73   :  { %5309 = vmatpush1.bf16.msra.mxu1 %v7880_v22  ;;  %v152_v11 = vadd.f32 %v151_v1, %v104_v58  ;;  %v7923_v13 = vld [vmem:[#allocation6 + $0xb40] ss:$24 sps:$4 sm:$0xff]   ;;  %v135_v15 = vrot.slane %v134_v4, 2  ;;  %v230_v16 = vadd.f32 %v229_v5, %v117_v60  ;;  %v236_v17 = vadd.f32 %v235_v6, %v118_v61  ;;  %v7926_v19 = vld [vmem:[#allocation6 + $0xb74] ss:$24 sps:$4 sm:$0xff]  }
  0x74   :  { %5432 = vmatpush1.bf16.msra.mxu0 %v7881_v23  ;;  %5310 = vmatprep.subr.bf16.mxu1 %v7882_v24  ;;  %v242_v18 = vadd.f32 %v241_v7, %v119_v62  ;;  %v141_v20 = vrot.slane %v140_v9, 2  ;;  %v147_v21 = vrot.slane %v146_v10, 2  ;;  %v248_v23 = vadd.f32 %v247_v12, %v120_v3  ;;  %v108_v56 = vld [vmem:[#allocation3 + $0x38] sm:$0xff]  ;;  %v7936_v63 = vld [vmem:[#allocation6 + $0x2d4] ss:$24 sps:$4 sm:$0xff]   ;;  %v121_v7 = vld [vmem:[#allocation3 + $0xa0] sm:$0xff]  ;;  %p9176_p1 = por %p9175_p0, %p9174_p13 }
  0x75   :  { %5433 = vmatprep.subr.bf16.mxu0 %v7884_v25  ;;  %v153_v22 = vrot.slane %v152_v11, 2  ;;  %v136_v24 = vadd.f32 %v135_v15, %v134_v4  ;;  %v231_v25 = vrot.slane %v230_v16, 2  ;;  %v7934_v57 = vld [vmem:[#allocation6 + $0x2a0] ss:$24 sps:$4 sm:$0xff]   ;;  %v7938_v5 = vld [vmem:[#allocation6 + $0xbd4] ss:$24 sps:$4 sm:$0xff]  }
  0x76   :  { %v7935_v58 = vld [vmem:[#allocation6 + $0xba0] ss:$24 sps:$4 sm:$0xff]   ;;  %v7941_v12 = vld [vmem:[#allocation6 + $0xbd0] ss:$24 sps:$4 sm:$0xff]   ;;  %p9177_p2 = pnand %p9176_p1, %p9170_p12 }
  0x77   :  { %5311 = vmatpush1.bf16.msra.mxu1 %v7886_v26  ;;  %v237_v26 = vrot.slane %v236_v17, 2 }
  0x78   :  { %5434 = vmatpush1.bf16.msra.mxu0 %v7887_v27  ;;  %5312 = vmatprep.subr.bf16.mxu1 %v7888_v28  ;;  %v243_v27 = vrot.slane %v242_v18, 2  ;;  %v7928_v28 = vld [vmem:[#allocation6 + $0x270] ss:$24 sps:$4 sm:$0xff]  }
  0x79   :  { %5435 = vmatprep.subr.bf16.mxu0 %v7890_v29  ;;  %v7929_v29 = vld [vmem:[#allocation6 + $0xb70] ss:$24 sps:$4 sm:$0xff]  }
  0x7b   :  { %5313 = vmatpush1.bf16.msra.mxu1 %v7892_v30  ;;  %v142_v30 = vadd.f32 %v141_v20, %v140_v9 }
  0x7c   :  { %5436 = vmatpush1.bf16.msra.mxu0 %v7893_v31  ;;  %5314 = vmatprep.subr.bf16.mxu1 %v7894_v32  ;;  %v148_v31 = vadd.f32 %v147_v21, %v146_v10  ;;  %v154_v32 = vadd.f32 %v153_v22, %v152_v11  ;;  %v175_v10 = vrot.slane %v108_v56, 4  ;;  %v7940_v11 = vld [vmem:[#allocation6 + $0x2d0] ss:$24 sps:$4 sm:$0xff]  }
  0x7d   :  { %5437 = vmatprep.subr.bf16.mxu0 %v7896_v33  ;;  %v249_v33 = vrot.slane %v248_v23, 2  ;;  %v143_v41 = vrot.slane %v142_v30, 1 }
  0x7e   :  { %v149_v42 = vrot.slane %v148_v31, 1  ;;  %v155_v43 = vrot.slane %v154_v32, 1  ;;  %v176_v22 = vadd.f32 %v175_v10, %v108_v56 }
  0x7f   :  { %5315 = vmatpush1.bf16.msra.mxu1 %v7898_v34  ;;  %v7930_v34 = vld [vmem:[#allocation6 + $0x2a4] ss:$24 sps:$4 sm:$0xff]  }
  0x80   :  { %5438 = vmatpush1.bf16.msra.mxu0 %v7899_v35  ;;  %5316 = vmatprep.subr.bf16.mxu1 %v7900_v36  ;;  %v7932_v35 = vld [vmem:[#allocation6 + $0xba4] ss:$24 sps:$4 sm:$0xff]   ;;  %v137_v36 = vrot.slane %v136_v24, 1  ;;  %v156_v53 = vadd.f32 %v155_v43, %v154_v32 }
  0x81   :  { %5439 = vmatprep.subr.bf16.mxu0 %v7902_v37  ;;  %v232_v37 = vadd.f32 %v231_v25, %v230_v16  ;;  %v122_v16 = vld [vmem:[#allocation3 + $0xa8] sm:$0xff]  ;;  %v7944_v25 = vld [vmem:[#allocation6 + $0x304] ss:$24 sps:$4 sm:$0xff]  }
  0x82   :  { %v259_v32 = vrot.slane %v122_v16, 4  ;;  %v124_v43 = vld [vmem:[#allocation3 + $0xb8] sm:$0xff] }
  0x83   :  { %5317 = vmatpush1.bf16.msra.mxu1 %v7904_v38  ;;  %v238_v38 = vadd.f32 %v237_v26, %v236_v17 }
  0x84   :  { %5440 = vmatpush1.bf16.msra.mxu0 %v7905_v39  ;;  %5318 = vmatprep.subr.bf16.mxu1 %v7906_v40  ;;  %v244_v39 = vadd.f32 %v243_v27, %v242_v18  ;;  %v105_v40 = vld [vmem:[#allocation3 + $0x20] sm:$0xff]  ;;  %v253_v27 = vrot.slane %v121_v7, 4 }
  0x85   :  { %5441 = vmatprep.subr.bf16.mxu0 %v7908_v44  ;;  %v250_v44 = vadd.f32 %v249_v33, %v248_v23  ;;  %v157_v62 = vrot.slane %v105_v40, 4 }
  0x86   :  { %v245_v48 = vrot.slane %v244_v39, 1 }
  0x87   :  { %5319 = vmatpush1.bf16.msra.mxu1 %v7910_v45  ;;  %v138_v45 = vadd.f32 %v137_v36, %v136_v24 }
  0x88   :  { %5442 = vmatpush1.bf16.msra.mxu0 %v7911_v46  ;;  %5320 = vmatprep.subr.bf16.mxu1 %v7912_v47  ;;  %v233_v46 = vrot.slane %v232_v37, 1  ;;  %v239_v47 = vrot.slane %v238_v38, 1  ;;  %v246_v61 = vadd.f32 %v245_v48, %v244_v39  ;;  %v260_v39 = vadd.f32 %v259_v32, %v122_v16 }
  0x89   :  { %5443 = vmatprep.subr.bf16.mxu0 %v7914_v50  ;;  %v106_v50 = vld [vmem:[#allocation3 + $0x28] sm:$0xff] }
  0x8a   :  { %v234_v59 = vadd.f32 %v233_v46, %v232_v37  ;;  %v240_v60 = vadd.f32 %v239_v47, %v238_v38  ;;  %v163_v4 = vrot.slane %v106_v50, 4 }
  0x8b   :  { %5321 = vmatpush1.bf16.msra.mxu1 %v7916_v51  ;;  %v144_v51 = vadd.f32 %v143_v41, %v142_v30 }
  0x8c   :  { %5444 = vmatpush1.bf16.msra.mxu0 %v7917_v52  ;;  %5322 = vmatprep.subr.bf16.mxu1 %v7918_v54  ;;  %v150_v52 = vadd.f32 %v149_v42, %v148_v31  ;;  %v251_v54 = vrot.slane %v250_v44, 1  ;;  %v425_v6 = vcombine.low %v234_v59, %v240_v60  ;;  %v164_v17 = vadd.f32 %v163_v4, %v106_v50 }
  0x8d   :  { %5445 = vmatprep.subr.bf16.mxu0 %v7920_v55  ;;  %v107_v55 = vld [vmem:[#allocation3 + $0x30] sm:$0xff]  ;;  %v357_v1 = vcombine.low %v138_v45, %v144_v51  ;;  %v177_v31 = vrot.slane %v176_v22, 2  ;;  %v261_v45 = vrot.slane %v260_v39, 2 }
  0x8e   :  { %v252_v0 = vadd.f32 %v251_v54, %v250_v44  ;;  %v358_v3 = vcombine.low %v150_v52, %v156_v53  ;;  %v169_v9 = vrot.slane %v107_v55, 4  ;;  %v433_v18 = vrot.slane %v425_v6, %v9335_v2 }
  0x8f   :  { %5323 = vmatpush1.bf16.msra.mxu1 %v7922_v8  ;;  %v158_v8 = vadd.f32 %v157_v62, %v105_v40  ;;  %v165_v26 = vrot.slane %v164_v17, 2  ;;  %v178_v38 = vadd.f32 %v177_v31, %v176_v22  ;;  %v262_v54 = vadd.f32 %v261_v45, %v260_v39  ;;  %v7950_v22 = vld [vmem:[#allocation6 + $0x334] ss:$24 sps:$4 sm:$0xff]  }
  0x90   :  { %5446 = vmatpush1.bf16.msra.mxu0 %v7923_v13  ;;  %5324 = vmatprep.subr.bf16.mxu1 %v7924_v14  ;;  %v365_v13 = vrot.slane %v357_v1, %v9335_v2  ;;  %v372_v14 = vrot.slane %v358_v3, %v9335_v2  ;;  %v426_v15 = vcombine.low %v246_v61, %v252_v0  ;;  %v7974_v45 = vld [vmem:[#allocation6 + $0x3f4] ss:$24 sps:$4 sm:$0xff]  }
  0x91   :  { %5447 = vmatprep.subr.bf16.mxu0 %v7926_v19  ;;  %v123_v19 = vld [vmem:[#allocation3 + $0xb0] sm:$0xff]  ;;  %v159_v20 = vrot.slane %v158_v8, 2  ;;  %v170_v21 = vadd.f32 %v169_v9, %v107_v55  ;;  %v179_v53 = vrot.slane %v178_v38, 1  ;;  %v263_v60 = vrot.slane %v262_v54, 1 }
  0x92   :  { %v373_v23 = vcombine.low %v365_v13, %v372_v14  ;;  %v440_v24 = vrot.slane %v426_v15, %v9335_v2  ;;  %v265_v36 = vrot.slane %v123_v19, 4 }
  0x93   :  { %5325 = vmatpush1.bf16.msra.mxu1 %v7928_v28  ;;  %v7947_v28 = vld [vmem:[#allocation6 + $0xc04] ss:$24 sps:$4 sm:$0xff]   ;;  %v171_v30 = vrot.slane %v170_v21, 2  ;;  %v180_v3 = vadd.f32 %v179_v53, %v178_v38  ;;  %v7960_v38 = vld [vmem:[#allocation6 + $0x390] ss:$24 sps:$4 sm:$0xff]  }
  0x94   :  { %5448 = vmatpush1.bf16.msra.mxu0 %v7929_v29  ;;  %5326 = vmatprep.subr.bf16.mxu1 %v7930_v34  ;;  %v160_v29 = vadd.f32 %v159_v20, %v158_v8  ;;  %v441_v33 = vcombine.low %v433_v18, %v440_v24  ;;  %v166_v34 = vadd.f32 %v165_v26, %v164_v17  ;;  %v7942_v18 = vld [vmem:[#allocation6 + $0x300] ss:$24 sps:$4 sm:$0xff]  }
  0x95   :  { %5449 = vmatprep.subr.bf16.mxu0 %v7932_v35  ;;  %v254_v35 = vadd.f32 %v253_v27, %v121_v7  ;;  %v172_v37 = vadd.f32 %v171_v30, %v170_v21  ;;  %v266_v42 = vadd.f32 %v265_v36, %v123_v19  ;;  %v264_v7 = vadd.f32 %v263_v60, %v262_v54  ;;  %v7956_v30 = vld [vmem:[#allocation6 + $0x364] ss:$24 sps:$4 sm:$0xff]   ;;  %v126_v54 = vld [vmem:[#allocation3 + $0xc8] sm:$0xff] }
  0x96   :  { %v497_v40 = vrot.slane %v441_v33, 7  ;;  %v161_v44 = vrot.slane %v160_v29, 1  ;;  %v167_v47 = vrot.slane %v166_v34, 1  ;;  %v125_v53 = vld [vmem:[#allocation3 + $0xc0] sm:$0xff]  ;;  %v7972_v60 = vld [vmem:[#allocation6 + $0x3f0] ss:$24 sps:$4 sm:$0xff]  }
  0x97   :  { %5327 = vmatpush1.bf16.msra.mxu1 %v7934_v57  ;;  %v255_v41 = vrot.slane %v254_v35, 2  ;;  %v267_v50 = vrot.slane %v266_v42, 2  ;;  %v173_v52 = vrot.slane %v172_v37, 1 }
  0x98   :  { %5450 = vmatpush1.bf16.msra.mxu0 %v7935_v58  ;;  %5328 = vmatprep.subr.bf16.mxu1 %v7936_v63  ;;  %v499_v46 = vsel %vm498_vm0, %v497_v40, %v373_v23  ;;  %v271_v58 = vrot.slane %v124_v43, 4  ;;  %v162_v62 = vadd.f32 %v161_v44, %v160_v29  ;;  %v168_v63 = vadd.f32 %v167_v47, %v166_v34  ;;  %v7948_v29 = vld [vmem:[#allocation6 + $0x330] ss:$24 sps:$4 sm:$0xff]   ;;  %v7954_v34 = vld [vmem:[#allocation6 + $0x360] ss:$24 sps:$4 sm:$0xff]  }
  0x99   :  { %5451 = vmatprep.subr.bf16.mxu0 %v7938_v5  ;;  %v256_v48 = vadd.f32 %v255_v41, %v254_v35  ;;  %v501_v51 = vsel %vm500_vm1, %v497_v40, %v499_v46  ;;  %v268_v57 = vadd.f32 %v267_v50, %v266_v42  ;;  %v174_v1 = vadd.f32 %v173_v52, %v172_v37  ;;  %v7962_v35 = vld [vmem:[#allocation6 + $0x394] ss:$24 sps:$4 sm:$0xff]   ;;  %v7966_v44 = vld [vmem:[#allocation6 + $0x3c0] ss:$24 sps:$4 sm:$0xff]  }
  0x9a   :  { %v503_v55 = vsel %vm502_vm2, %v497_v40, %v501_v51  ;;  %v272_v0 = vadd.f32 %v271_v58, %v124_v43  ;;  %v374_v14 = vcombine.low %v162_v62, %v168_v63  ;;  %v109_v46 = vld [vmem:[#allocation3 + $0x40] sm:$0xff]  ;;  %v111_v50 = vld [vmem:[#allocation3 + $0x50] sm:$0xff]  ;;  %v112_v51 = vld [vmem:[#allocation3 + $0x58] sm:$0xff]  ;;  %v277_v62 = vrot.slane %v125_v53, 4 }
  0x9b   :  { %5329 = vmatpush1.bf16.msra.mxu1 %v7940_v11  ;;  %v257_v56 = vrot.slane %v256_v48, 1  ;;  %v505_v59 = vsel %vm504_vm3, %v497_v40, %v503_v55  ;;  %v269_v5 = vrot.slane %v268_v57, 1  ;;  %v375_v15 = vcombine.low %v174_v1, %v180_v3  ;;  %v7968_v40 = vld [vmem:[#allocation6 + $0x3c4] ss:$24 sps:$4 sm:$0xff]   ;;  %v127_v55 = vld [vmem:[#allocation3 + $0xd0] sm:$0xff] }
  0x9c   :  { %5452 = vmatpush1.bf16.msra.mxu0 %v7941_v12  ;;  %5339 = vmatprep.subr.bf16.mxu1 %v7944_v25  ;;  %v546_v61 = vmul.f32 0.125, %v505_v59  ;;  %v273_v8 = vrot.slane %v272_v0, 2  ;;  %v382_v25 = vrot.slane %v374_v14, %v9335_v2  ;;  %v181_v52 = vrot.slane %v109_v46, 4 }
  0x9d   :  { %5462 = vmatprep.subr.bf16.mxu0 %v7947_v28  ;;  %v258_v4 = vadd.f32 %v257_v56, %v256_v48  ;;  %v270_v13 = vadd.f32 %v269_v5, %v268_v57  ;;  %v389_v26 = vrot.slane %v375_v15, %v9335_v2  ;;  %v110_v48 = vld [vmem:[#allocation3 + $0x48] sm:$0xff]  ;;  %v193_v57 = vrot.slane %v111_v50, 4 }
  0x9e   :  { %v565_v6 = vrot.slane %v546_v61, %v9335_v2  ;;  %550 = vst [vmem:[#allocation13] sm:$0xff] %v546_v61  ;;  %v558_v9 = vcombine.high %v546_v61, %v546_v61  ;;  %v274_v11 = vadd.f32 %v273_v8, %v272_v0  ;;  %v187_v56 = vrot.slane %v110_v48, 4  ;;  %v7980_v0 = vld [vmem:[#allocation6 + $0x424] ss:$24 sps:$4 sm:$0xff]  }
  0x9f   :  { %v442_v20 = vcombine.low %v258_v4, %v264_v7  ;;  %v390_v32 = vcombine.low %v382_v25, %v389_v26  ;;  %v199_v58 = vrot.slane %v112_v51, 4  ;;  %v182_v61 = vadd.f32 %v181_v52, %v109_v46  ;;  %v128_v8 = vld [vmem:[#allocation3 + $0xd8] sm:$0xff]  ;;  %v7953_v25 = vld [vmem:[#allocation6 + $0xc34] ss:$24 sps:$4 sm:$0xff]  }
  0xa0   :  { %v573_v10 = vcombine.high %v565_v6, %v565_v6  ;;  %v9347_v12 = vrot.slane %v558_v9, %v9335_v2  ;;  %v9349_v16 = vpack.c.bf16 %v565_v6, %v565_v6  ;;  %v275_v19 = vrot.slane %v274_v11, 1  ;;  %v7986_v26 = vld [vmem:[#allocation6 + $0x454] ss:$24 sps:$4 sm:$0xff]   ;;  %v7992_v46 = vld [vmem:[#allocation6 + $0x484] ss:$24 sps:$4 sm:$0xff]  }
  0xa1   :  { %v450_v28 = vrot.slane %v442_v20, %v9335_v2  ;;  %v283_v63 = vrot.slane %v126_v54, 4  ;;  %v188_v1 = vadd.f32 %v187_v56, %v110_v48  ;;  %v194_v3 = vadd.f32 %v193_v57, %v111_v50  ;;  %v7978_v20 = vld [vmem:[#allocation6 + $0x420] ss:$24 sps:$4 sm:$0xff]  }
  0xa2   :  { %v9351_v17 = vpack.c.bf16 %v573_v10, %v573_v10  ;;  %v574_v21 = vcombine.high %v9347_v12, %v9347_v12  ;;  %v276_v23 = vadd.f32 %v275_v19, %v274_v11  ;;  %v200_v4 = vadd.f32 %v199_v58, %v112_v51  ;;  %v7945_v19 = vld [vmem:[#allocation6 + $0xc00] ss:$24 sps:$4 sm:$0xff]   ;;  %v7965_v58 = vld [vmem:[#allocation6 + $0xc94] ss:$24 sps:$4 sm:$0xff]  }
  0xa3   :  { %v289_v5 = vrot.slane %v127_v55, 4  ;;  %v183_v9 = vrot.slane %v182_v61, 2  ;;  %v278_v10 = vadd.f32 %v277_v62, %v125_v53  ;;  %v189_v11 = vrot.slane %v188_v1, 2  ;;  %v7957_v56 = vld [vmem:[#allocation6 + $0xc60] ss:$24 sps:$4 sm:$0xff]  }
  0xa4   :  { %5330 = vmatprep.mubr.bf16.mxu1 %v9351_v17  ;;  %v9356_v24 = vpack.c.bf16 %v574_v21, %v574_v21  ;;  %v443_v27 = vcombine.low %v270_v13, %v276_v23  ;;  %v195_v13 = vrot.slane %v194_v3, 2  ;;  %v201_v14 = vrot.slane %v200_v4, 2 }
  0xa5   :  { %5331 = vmatmul.mubr.bf16.vlgmr.msra.gmra.mrb[0].mxu1 %v9349_v16  ;;  %v284_v15 = vadd.f32 %v283_v63, %v126_v54  ;;  %v184_v21 = vadd.f32 %v183_v9, %v182_v61  ;;  %v290_v23 = vadd.f32 %v289_v5, %v127_v55  ;;  %v7998_v61 = vld [vmem:[#allocation6 + $0x4b4] ss:$24 sps:$4 sm:$0xff]   ;;  %v7971_v5 = vld [vmem:[#allocation6 + $0xcc4] ss:$24 sps:$4 sm:$0xff]  }
  0xa6   :  { %5340 = vmatpush1.bf16.msra.mxu1 %v7942_v18  ;;  %5371 = vmatprep.mubr.bf16.mxu1 %v9356_v24  ;;  %v457_v31 = vrot.slane %v443_v27, %v9335_v2  ;;  %v190_v27 = vadd.f32 %v189_v11, %v188_v1  ;;  %v8004_v9 = vld [vmem:[#allocation6 + $0x4e4] ss:$24 sps:$4 sm:$0xff]  }
  0xa7   :  { %5341 = vmatprep.subr.bf16.mxu1 %v7950_v22  ;;  %v279_v22 = vrot.slane %v278_v10, 2 }
  0xa8   :  { %v458_v33 = vcombine.low %v450_v28, %v457_v31  ;;  %v196_v28 = vadd.f32 %v195_v13, %v194_v3  ;;  %v185_v31 = vrot.slane %v184_v21, 1 }
  0xaa   :  { %5342 = vmatpush1.bf16.msra.mxu1 %v7948_v29  ;;  %v508_v36 = vrot.slane %v458_v33, 7  ;;  %v202_v29 = vadd.f32 %v201_v14, %v200_v4  ;;  %v291_v33 = vrot.slane %v290_v23, 2  ;;  %v7963_v4 = vld [vmem:[#allocation6 + $0xc90] ss:$24 sps:$4 sm:$0xff]  }
  0xab   :  { %5343 = vmatprep.subr.bf16.mxu1 %v7956_v30  ;;  %v285_v30 = vrot.slane %v284_v15, 2 }
  0xac   :  { %v509_v37 = vsel %vm498_vm0, %v508_v36, %v390_v32  ;;  %v280_v32 = vadd.f32 %v279_v22, %v278_v10  ;;  %v8010_v22 = vld [vmem:[#allocation6 + $0x514] ss:$24 sps:$4 sm:$0xff]  }
  0xad   :  { %v510_v39 = vsel %vm500_vm1, %v508_v36, %v509_v37  ;;  %v197_v37 = vrot.slane %v196_v28, 1 }
  0xae   :  { %5344 = vmatpush1.bf16.msra.mxu1 %v7954_v34  ;;  %v511_v41 = vsel %vm502_vm2, %v508_v36, %v510_v39  ;;  %v295_v34 = vrot.slane %v128_v8, 4  ;;  %v286_v39 = vadd.f32 %v285_v30, %v284_v15  ;;  %v7969_v15 = vld [vmem:[#allocation6 + $0xcc0] ss:$24 sps:$4 sm:$0xff]   ;;  %v8016_v30 = vld [vmem:[#allocation6 + $0x544] ss:$24 sps:$4 sm:$0xff]  }
  0xaf   :  { %5345 = vmatprep.subr.bf16.mxu1 %v7962_v35  ;;  %v512_v42 = vsel %vm504_vm3, %v508_v36, %v511_v41  ;;  %v7951_v35 = vld [vmem:[#allocation6 + $0xc30] ss:$24 sps:$4 sm:$0xff]   ;;  %v191_v36 = vrot.slane %v190_v27, 1  ;;  %v198_v50 = vadd.f32 %v197_v37, %v196_v28  ;;  %v8022_v37 = vld [vmem:[#allocation6 + $0x574] ss:$24 sps:$4 sm:$0xff]  }
  0xb0   :  { %v9368_v43 = vmul.f32 0.125, %v512_v42  ;;  %v7984_v41 = vld [vmem:[#allocation6 + $0x450] ss:$24 sps:$4 sm:$0xff]   ;;  %v281_v42 = vrot.slane %v280_v32, 1  ;;  %v287_v51 = vrot.slane %v286_v39, 1 }
  0xb1   :  { %v192_v48 = vadd.f32 %v191_v36, %v190_v27  ;;  %v7983_v27 = vld [vmem:[#allocation6 + $0xd24] ss:$24 sps:$4 sm:$0xff]   ;;  %v8008_v28 = vld [vmem:[#allocation6 + $0x510] ss:$24 sps:$4 sm:$0xff]  }
  0xb2   :  { %5346 = vmatpush1.bf16.msra.mxu1 %v7960_v38  ;;  %v575_v47 = vcombine.high %v9368_v43, %v9368_v43  ;;  %551 = vst [vmem:[#allocation13 + $0x8] sm:$0xff] %v9368_v43  ;;  %v203_v38 = vrot.slane %v202_v29, 1  ;;  %v282_v53 = vadd.f32 %v281_v42, %v280_v32  ;;  %v288_v57 = vadd.f32 %v287_v51, %v286_v39  ;;  %v7981_v32 = vld [vmem:[#allocation6 + $0xd20] ss:$24 sps:$4 sm:$0xff]   ;;  %v8020_v42 = vld [vmem:[#allocation6 + $0x570] ss:$24 sps:$4 sm:$0xff]  }
  0xb3   :  { %5347 = vmatprep.subr.bf16.mxu1 %v7968_v40  ;;  %v7959_v40 = vld [vmem:[#allocation6 + $0xc64] ss:$24 sps:$4 sm:$0xff]  }
  0xb4   :  { %v589_v59 = vrot.slane %v575_v47, %v9335_v2  ;;  %v186_v47 = vadd.f32 %v185_v31, %v184_v21  ;;  %v204_v52 = vadd.f32 %v203_v38, %v202_v29  ;;  %v459_v3 = vcombine.low %v282_v53, %v288_v57  ;;  %v8040_v57 = vld [vmem:[#allocation6 + $0x604] ss:$24 sps:$4 sm:$0xff]  }
  0xb5   :  { %v9402_v53 = vrot.slane %v9368_v43, %v9335_v2  ;;  %v8038_v43 = vld [vmem:[#allocation6 + $0x600] ss:$24 sps:$4 sm:$0xff]  }
  0xb6   :  { %5348 = vmatpush1.bf16.msra.mxu1 %v7966_v44  ;;  %v591_v6 = vcombine.high %v589_v59, %v589_v59  ;;  %v9374_v7 = vpack.c.bf16 %v589_v59, %v589_v59  ;;  %v292_v44 = vadd.f32 %v291_v33, %v290_v23  ;;  %v7990_v59 = vld [vmem:[#allocation6 + $0x480] ss:$24 sps:$4 sm:$0xff]   ;;  %v391_v62 = vcombine.low %v186_v47, %v192_v48  ;;  %v8001_v48 = vld [vmem:[#allocation6 + $0xdb4] ss:$24 sps:$4 sm:$0xff]  }
  0xb7   :  { %5349 = vmatprep.subr.bf16.mxu1 %v7974_v45  ;;  %v296_v45 = vadd.f32 %v295_v34, %v128_v8  ;;  %v392_v1 = vcombine.low %v198_v50, %v204_v52  ;;  %v467_v14 = vrot.slane %v459_v3, %v9335_v2  ;;  %v7989_v34 = vld [vmem:[#allocation6 + $0xd54] ss:$24 sps:$4 sm:$0xff]   ;;  %v7993_v47 = vld [vmem:[#allocation6 + $0xd80] ss:$24 sps:$4 sm:$0xff]   ;;  %v8044_v3 = vld [vmem:[#allocation6 + $0x630] ss:$24 sps:$4 sm:$0xff]  }
  0xb8   :  { %v9376_v18 = vpack.c.bf16 %v591_v6, %v591_v6  ;;  %v293_v54 = vrot.slane %v292_v44, 1  ;;  %v7996_v6 = vld [vmem:[#allocation6 + $0x4b0] ss:$24 sps:$4 sm:$0xff]   ;;  %v399_v10 = vrot.slane %v391_v62, %v9335_v2  ;;  %v8026_v50 = vld [vmem:[#allocation6 + $0x5a0] ss:$24 sps:$4 sm:$0xff]  }
  0xb9   :  { %v297_v55 = vrot.slane %v296_v45, 2  ;;  %v406_v11 = vrot.slane %v392_v1, %v9335_v2  ;;  %v8034_v52 = vld [vmem:[#allocation6 + $0x5d4] ss:$24 sps:$4 sm:$0xff]   ;;  %v8019_v1 = vld [vmem:[#allocation6 + $0xe44] ss:$24 sps:$4 sm:$0xff]  }
  0xba   :  { %5350 = vmatpush1.bf16.msra.mxu1 %v7972_v60  ;;  %5453 = vmatprep.mubr.bf16.mxu0 %v9376_v18  ;;  %v294_v63 = vadd.f32 %v293_v54, %v292_v44  ;;  %v7999_v54 = vld [vmem:[#allocation6 + $0xdb0] ss:$24 sps:$4 sm:$0xff]   ;;  %v8046_v62 = vld [vmem:[#allocation6 + $0x634] ss:$24 sps:$4 sm:$0xff]  }
  0xbb   :  { %5351 = vmatprep.subr.bf16.mxu1 %v7980_v0  ;;  %5454 = vmatmul.mubr.bf16.vlgmr.msra.gmra.mrb[0].mxu0 %v9374_v7  ;;  %v298_v60 = vadd.f32 %v297_v55, %v296_v45  ;;  %v407_v23 = vcombine.low %v399_v10, %v406_v11  ;;  %v8028_v45 = vld [vmem:[#allocation6 + $0x5a4] ss:$24 sps:$4 sm:$0xff]   ;;  %v8056_v11 = vld [vmem:[#allocation6 + $0x690] ss:$24 sps:$4 sm:$0xff]  }
  0xbc   :  { %5463 = vmatpush1.bf16.msra.mxu0 %v7945_v19  ;;  %v7977_v19 = vld [vmem:[#allocation6 + $0xcf4] ss:$24 sps:$4 sm:$0xff]   ;;  %v8007_v55 = vld [vmem:[#allocation6 + $0xde4] ss:$24 sps:$4 sm:$0xff]  }
  0xbd   :  { %5464 = vmatprep.subr.bf16.mxu0 %v7953_v25  ;;  %v299_v0 = vrot.slane %v298_v60, 1  ;;  %v8031_v10 = vld [vmem:[#allocation6 + $0xea4] ss:$24 sps:$4 sm:$0xff]  }
  0xbe   :  { %5352 = vmatpush1.bf16.msra.mxu1 %v7978_v20  ;;  %v8002_v20 = vld [vmem:[#allocation6 + $0x4e0] ss:$24 sps:$4 sm:$0xff]  }
  0xbf   :  { %5353 = vmatprep.subr.bf16.mxu1 %v7986_v26  ;;  %v300_v8 = vadd.f32 %v299_v0, %v298_v60  ;;  %v7975_v26 = vld [vmem:[#allocation6 + $0xcf0] ss:$24 sps:$4 sm:$0xff]   ;;  %v9408_v60 = vpack.c.bf16 %v9347_v12, %v9347_v12  ;;  %v8052_v12 = vld [vmem:[#allocation6 + $0x664] ss:$24 sps:$4 sm:$0xff]  }
  0xc0   :  { %5465 = vmatpush1.bf16.msra.mxu0 %v7951_v35  ;;  %v8014_v35 = vld [vmem:[#allocation6 + $0x540] ss:$24 sps:$4 sm:$0xff]   ;;  %v8011_v0 = vld [vmem:[#allocation6 + $0xe10] ss:$24 sps:$4 sm:$0xff]  }
  0xc1   :  { %5466 = vmatprep.subr.bf16.mxu0 %v7959_v40  ;;  %v460_v13 = vcombine.low %v294_v63, %v300_v8  ;;  %v7987_v40 = vld [vmem:[#allocation6 + $0xd50] ss:$24 sps:$4 sm:$0xff]   ;;  %v8058_v8 = vld [vmem:[#allocation6 + $0x694] ss:$24 sps:$4 sm:$0xff]  }
  0xc2   :  { %5354 = vmatpush1.bf16.msra.mxu1 %v7984_v41  ;;  %v7995_v41 = vld [vmem:[#allocation6 + $0xd84] ss:$24 sps:$4 sm:$0xff]  }
  0xc3   :  { %5355 = vmatprep.subr.bf16.mxu1 %v7992_v46  ;;  %v474_v21 = vrot.slane %v460_v13, %v9335_v2  ;;  %v8064_v13 = vld [vmem:[#allocation6 + $0x6c4] ss:$24 sps:$4 sm:$0xff]  }
  0xc4   :  { %5467 = vmatpush1.bf16.msra.mxu0 %v7957_v56  ;;  %v8032_v56 = vld [vmem:[#allocation6 + $0x5d0] ss:$24 sps:$4 sm:$0xff]  }
  0xc5   :  { %5468 = vmatprep.subr.bf16.mxu0 %v7965_v58  ;;  %v475_v25 = vcombine.low %v467_v14, %v474_v21  ;;  %v590_v58 = vcombine.high %v9402_v53, %v9402_v53  ;;  %v8070_v21 = vld [vmem:[#allocation6 + $0x6f4] ss:$24 sps:$4 sm:$0xff]  }
  0xc6   :  { %5356 = vmatpush1.bf16.msra.mxu1 %v7990_v59  ;;  %v8005_v59 = vld [vmem:[#allocation6 + $0xde0] ss:$24 sps:$4 sm:$0xff]  }
  0xc7   :  { %5357 = vmatprep.subr.bf16.mxu1 %v7998_v61  ;;  %v515_v29 = vrot.slane %v475_v25, 7  ;;  %v8013_v61 = vld [vmem:[#allocation6 + $0xe14] ss:$24 sps:$4 sm:$0xff]   ;;  %v9410_v63 = vpack.c.bf16 %v590_v58, %v590_v58  ;;  %v8043_v25 = vld [vmem:[#allocation6 + $0xf04] ss:$24 sps:$4 sm:$0xff]  }
  0xc8   :  { %5469 = vmatpush1.bf16.msra.mxu0 %v7963_v4  ;;  %v8017_v4 = vld [vmem:[#allocation6 + $0xe40] ss:$24 sps:$4 sm:$0xff]   ;;  %v8071_v58 = vld [vmem:[#allocation6 + $0xff0] ss:$24 sps:$4 sm:$0xff]  }
  0xc9   :  { %5470 = vmatprep.subr.bf16.mxu0 %v7971_v5  ;;  %v516_v31 = vsel %vm498_vm0, %v515_v29, %v407_v23  ;;  %v8025_v5 = vld [vmem:[#allocation6 + $0xe74] ss:$24 sps:$4 sm:$0xff]   ;;  %v8035_v23 = vld [vmem:[#allocation6 + $0xed0] ss:$24 sps:$4 sm:$0xff]  }
  0xca   :  { %5358 = vmatpush1.bf16.msra.mxu1 %v7996_v6  ;;  %v517_v33 = vsel %vm500_vm1, %v515_v29, %v516_v31  ;;  %v8050_v6 = vld [vmem:[#allocation6 + $0x660] ss:$24 sps:$4 sm:$0xff]   ;;  %v8049_v31 = vld [vmem:[#allocation6 + $0xf34] ss:$24 sps:$4 sm:$0xff]  }
  0xcb   :  { %5359 = vmatprep.subr.bf16.mxu1 %v8004_v9  ;;  %v518_v36 = vsel %vm502_vm2, %v515_v29, %v517_v33  ;;  %v8023_v9 = vld [vmem:[#allocation6 + $0xe70] ss:$24 sps:$4 sm:$0xff]   ;;  %v8082_v33 = vld [vmem:[#allocation6 + $0x754] ss:$24 sps:$4 sm:$0xff]  }
  0xcc   :  { %5471 = vmatpush1.bf16.msra.mxu0 %v7969_v15  ;;  %v519_v38 = vsel %vm504_vm3, %v515_v29, %v518_v36  ;;  %v8029_v15 = vld [vmem:[#allocation6 + $0xea0] ss:$24 sps:$4 sm:$0xff]   ;;  %v8055_v36 = vld [vmem:[#allocation6 + $0xf64] ss:$24 sps:$4 sm:$0xff]  }
  0xcd   :  { %5472 = vmatprep.subr.bf16.mxu0 %v7977_v19  ;;  %v9388_v39 = vmul.f32 0.125, %v519_v38  ;;  %v8037_v19 = vld [vmem:[#allocation6 + $0xed4] ss:$24 sps:$4 sm:$0xff]   ;;  %v8041_v29 = vld [vmem:[#allocation6 + $0xf00] ss:$24 sps:$4 sm:$0xff]  }
  0xce   :  { %5360 = vmatpush1.bf16.msra.mxu1 %v8002_v20  ;;  %v8062_v20 = vld [vmem:[#allocation6 + $0x6c0] ss:$24 sps:$4 sm:$0xff]   ;;  %v8088_v38 = vld [vmem:[#allocation6 + $0x784] ss:$24 sps:$4 sm:$0xff]  }
  0xcf   :  { %5361 = vmatprep.subr.bf16.mxu1 %v8010_v22  ;;  %v9392_v44 = vrot.slane %v9388_v39, %v9335_v2  ;;  %552 = vst [vmem:[#allocation13 + $0x10] sm:$0xff] %v9388_v39  ;;  %v592_v14 = vcombine.high %v9388_v39, %v9388_v39  ;;  %v8053_v39 = vld [vmem:[#allocation6 + $0xf60] ss:$24 sps:$4 sm:$0xff]  }
  0xd0   :  { %5473 = vmatpush1.bf16.msra.mxu0 %v7975_v26  ;;  %v8068_v26 = vld [vmem:[#allocation6 + $0x6f0] ss:$24 sps:$4 sm:$0xff]  }
  0xd1   :  { %5474 = vmatprep.subr.bf16.mxu0 %v7983_v27  ;;  %v607_v46 = vcombine.high %v9392_v44, %v9392_v44  ;;  %v9417_v22 = vrot.slane %v592_v14, %v9335_v2  ;;  %v8076_v27 = vld [vmem:[#allocation6 + $0x724] ss:$24 sps:$4 sm:$0xff]  }
  0xd2   :  { %5362 = vmatpush1.bf16.msra.mxu1 %v8008_v28 }
  0xd3   :  { %5363 = vmatprep.subr.bf16.mxu1 %v8016_v30  ;;  %v9397_v51 = vpack.c.bf16 %v607_v46, %v607_v46  ;;  %v608_v28 = vcombine.high %v9417_v22, %v9417_v22  ;;  %v9423_v30 = vpack.c.bf16 %v9392_v44, %v9392_v44  ;;  %v8059_v44 = vld [vmem:[#allocation6 + $0xf90] ss:$24 sps:$4 sm:$0xff]  }
  0xd4   :  { %5475 = vmatpush1.bf16.msra.mxu0 %v7981_v32  ;;  %v8074_v32 = vld [vmem:[#allocation6 + $0x720] ss:$24 sps:$4 sm:$0xff]   ;;  %v8092_v46 = vld [vmem:[#allocation6 + $0x7b0] ss:$24 sps:$4 sm:$0xff]  }
  0xd5   :  { %5476 = vmatprep.subr.bf16.mxu0 %v7989_v34  ;;  %5494 = vmatprep.mubr.bf16.mxu0 %v9397_v51  ;;  %v9425_v34 = vpack.c.bf16 %v608_v28, %v608_v28 }
  0xd6   :  { %5364 = vmatpush1.bf16.msra.mxu1 %v8014_v35  ;;  %v8047_v35 = vld [vmem:[#allocation6 + $0xf30] ss:$24 sps:$4 sm:$0xff]  }
  0xd7   :  { %5365 = vmatprep.subr.bf16.mxu1 %v8022_v37  ;;  %v8080_v37 = vld [vmem:[#allocation6 + $0x750] ss:$24 sps:$4 sm:$0xff]  }
  0xd8   :  { %5477 = vmatpush1.bf16.msra.mxu0 %v7987_v40  ;;  %v8061_v40 = vld [vmem:[#allocation6 + $0xf94] ss:$24 sps:$4 sm:$0xff]  }
  0xd9   :  { %5478 = vmatprep.subr.bf16.mxu0 %v7995_v41  ;;  %v8086_v41 = vld [vmem:[#allocation6 + $0x780] ss:$24 sps:$4 sm:$0xff]  }
  0xda   :  { %5366 = vmatpush1.bf16.msra.mxu1 %v8020_v42  ;;  %v8094_v42 = vld [vmem:[#allocation6 + $0x7b4] ss:$24 sps:$4 sm:$0xff]  }
  0xdb   :  { %5367 = vmatprep.subr.bf16.mxu1 %v8028_v45  ;;  %v8067_v45 = vld [vmem:[#allocation6 + $0xfc4] ss:$24 sps:$4 sm:$0xff]  }
  0xdc   :  { %5479 = vmatpush1.bf16.msra.mxu0 %v7993_v47  ;;  %v8100_v47 = vld [vmem:[#allocation6 + $0x7e4] ss:$24 sps:$4 sm:$0xff]  }
  0xdd   :  { %5480 = vmatprep.subr.bf16.mxu0 %v8001_v48  ;;  %v8065_v48 = vld [vmem:[#allocation6 + $0xfc0] ss:$24 sps:$4 sm:$0xff]  }
  0xde   :  { %5368 = vmatpush1.bf16.msra.mxu1 %v8026_v50  ;;  %v8073_v50 = vld [vmem:[#allocation6 + $0xff4] ss:$24 sps:$4 sm:$0xff]  }
  0xdf   :  { %5369 = vmatprep.subr.bf16.mxu1 %v8034_v52  ;;  %v8098_v52 = vld [vmem:[#allocation6 + $0x7e0] ss:$24 sps:$4 sm:$0xff]  }
  0xe0   :  { %5481 = vmatpush1.bf16.msra.mxu0 %v7999_v54  ;;  %v8106_v54 = vld [vmem:[#allocation6 + $0x814] ss:$24 sps:$4 sm:$0xff]  }
  0xe1   :  { %5482 = vmatprep.subr.bf16.mxu0 %v8007_v55  ;;  %v113_v55 = vld [vmem:[#allocation3 + $0x60] sm:$0xff] }
  0xe2   :  { %5370 = vmatpush1.bf16.msra.mxu1 %v8032_v56  ;;  %v114_v56 = vld [vmem:[#allocation3 + $0x68] sm:$0xff] }
  0xe3   :  { %5380 = vmatprep.subr.bf16.mxu1 %v8040_v57  ;;  %v115_v57 = vld [vmem:[#allocation3 + $0x70] sm:$0xff] }
  0xe4   :  { %5483 = vmatpush1.bf16.msra.mxu0 %v8005_v59  ;;  %v116_v59 = vld [vmem:[#allocation3 + $0x78] sm:$0xff] }
  0xe5   :  { %5372 = vmatmul.mubr.bf16.vlgmr.msra.gmra.mrb[0].mxu1 %v9408_v60  ;;  %5484 = vmatprep.subr.bf16.mxu0 %v8013_v61  ;;  %v129_v61 = vld [vmem:[#allocation3 + $0xe0] sm:$0xff] }
  0xe6   :  { %5381 = vmatpush1.bf16.msra.mxu1 %v8038_v43  ;;  %5412 = vmatprep.mubr.bf16.mxu1 %v9410_v63  ;;  %v130_v43 = vld [vmem:[#allocation3 + $0xe8] sm:$0xff] }
  0xe7   :  { %5382 = vmatprep.subr.bf16.mxu1 %v8046_v62  ;;  %v205_v62 = vrot.slane %v113_v55, 4 }
  0xe8   :  { %5485 = vmatpush1.bf16.msra.mxu0 %v8011_v0  ;;  %v211_v0 = vrot.slane %v114_v56, 4 }
  0xe9   :  { %5486 = vmatprep.subr.bf16.mxu0 %v8019_v1  ;;  %v217_v1 = vrot.slane %v115_v57, 4 }
  0xea   :  { %5383 = vmatpush1.bf16.msra.mxu1 %v8044_v3  ;;  %v131_v3 = vld [vmem:[#allocation3 + $0xf0] sm:$0xff] }
  0xeb   :  { %5384 = vmatprep.subr.bf16.mxu1 %v8052_v12  ;;  %v132_v12 = vld [vmem:[#allocation3 + $0xf8] sm:$0xff]  ;;  %v313_v14 = vrot.slane %v131_v3, 4 }
  0xec   :  { %5487 = vmatpush1.bf16.msra.mxu0 %v8017_v4  ;;  %v223_v4 = vrot.slane %v116_v59, 4 }
  0xed   :  { %5488 = vmatprep.subr.bf16.mxu0 %v8025_v5  ;;  %v301_v5 = vrot.slane %v129_v61, 4  ;;  %v314_v28 = vadd.f32 %v313_v14, %v131_v3 }
  0xee   :  { %5385 = vmatpush1.bf16.msra.mxu1 %v8050_v6  ;;  %v307_v6 = vrot.slane %v130_v43, 4 }
  0xef   :  { %5386 = vmatprep.subr.bf16.mxu1 %v8058_v8  ;;  %v8079_v8 = vld [vmem:[#allocation6 + $0x1024] ss:$24 sps:$4 sm:$0xff]  }
  0xf0   :  { %5489 = vmatpush1.bf16.msra.mxu0 %v8023_v9  ;;  %v8104_v9 = vld [vmem:[#allocation6 + $0x810] ss:$24 sps:$4 sm:$0xff]  }
  0xf1   :  { %5490 = vmatprep.subr.bf16.mxu0 %v8031_v10  ;;  %v206_v10 = vadd.f32 %v205_v62, %v113_v55  ;;  %v8083_v55 = vld [vmem:[#allocation6 + $0x1050] ss:$24 sps:$4 sm:$0xff]  }
  0xf2   :  { %5387 = vmatpush1.bf16.msra.mxu1 %v8056_v11  ;;  %v212_v11 = vadd.f32 %v211_v0, %v114_v56 }
  0xf3   :  { %5388 = vmatprep.subr.bf16.mxu1 %v8064_v13  ;;  %v218_v13 = vadd.f32 %v217_v1, %v115_v57 }
  0xf4   :  { %5491 = vmatpush1.bf16.msra.mxu0 %v8029_v15  ;;  %v8112_v15 = vld [vmem:[#allocation6 + $0x844] ss:$24 sps:$4 sm:$0xff]  }
  0xf5   :  { %5492 = vmatprep.subr.bf16.mxu0 %v8037_v19  ;;  %v224_v19 = vadd.f32 %v223_v4, %v116_v59 }
  0xf6   :  { %5389 = vmatpush1.bf16.msra.mxu1 %v8062_v20  ;;  %v302_v20 = vadd.f32 %v301_v5, %v129_v61  ;;  %v8091_v61 = vld [vmem:[#allocation6 + $0x1084] ss:$24 sps:$4 sm:$0xff]  }
  0xf7   :  { %5390 = vmatprep.subr.bf16.mxu1 %v8070_v21  ;;  %v308_v21 = vadd.f32 %v307_v6, %v130_v43  ;;  %v8116_v43 = vld [vmem:[#allocation6 + $0x870] ss:$24 sps:$4 sm:$0xff]  }
  0xf8   :  { %5493 = vmatpush1.bf16.msra.mxu0 %v8035_v23  ;;  %v319_v23 = vrot.slane %v132_v12, 4 }
  0xf9   :  { %5503 = vmatprep.subr.bf16.mxu0 %v8043_v25  ;;  %v207_v25 = vrot.slane %v206_v10, 2 }
  0xfa   :  { %5391 = vmatpush1.bf16.msra.mxu1 %v8068_v26  ;;  %v213_v26 = vrot.slane %v212_v11, 2 }
  0xfb   :  { %5392 = vmatprep.subr.bf16.mxu1 %v8076_v27  ;;  %5495 = vmatmul.mubr.bf16.vlgmr.msra.gmra.mrb[0].mxu0 %v9423_v30  ;;  %v219_v27 = vrot.slane %v218_v13, 2 }
  0xfc   :  { %5504 = vmatpush1.bf16.msra.mxu0 %v8041_v29  ;;  %5535 = vmatprep.mubr.bf16.mxu0 %v9425_v34  ;;  %v8077_v29 = vld [vmem:[#allocation6 + $0x1020] ss:$24 sps:$4 sm:$0xff]  }
  0xfd   :  { %5505 = vmatprep.subr.bf16.mxu0 %v8049_v31  ;;  %v225_v31 = vrot.slane %v224_v19, 2 }
  0xfe   :  { %5393 = vmatpush1.bf16.msra.mxu1 %v8074_v32  ;;  %v303_v32 = vrot.slane %v302_v20, 2 }
  0xff   :  { %5394 = vmatprep.subr.bf16.mxu1 %v8082_v33  ;;  %v309_v33 = vrot.slane %v308_v21, 2 }
 0x100   :  { %5506 = vmatpush1.bf16.msra.mxu0 %v8047_v35  ;;  %v320_v35 = vadd.f32 %v319_v23, %v132_v12  ;;  %v8124_v12 = vld [vmem:[#allocation6 + $0x8a4] ss:$24 sps:$4 sm:$0xff]   ;;  %v8130_v23 = vld [vmem:[#allocation6 + $0x8d4] ss:$24 sps:$4 sm:$0xff]  }
 0x101   :  { %5507 = vmatprep.subr.bf16.mxu0 %v8055_v36  ;;  %v8110_v36 = vld [vmem:[#allocation6 + $0x840] ss:$24 sps:$4 sm:$0xff]  }
 0x102   :  { %5395 = vmatpush1.bf16.msra.mxu1 %v8080_v37  ;;  %v208_v37 = vadd.f32 %v207_v25, %v206_v10 }
 0x103   :  { %5396 = vmatprep.subr.bf16.mxu1 %v8088_v38  ;;  %v214_v38 = vadd.f32 %v213_v26, %v212_v11  ;;  %v8089_v11 = vld [vmem:[#allocation6 + $0x1080] ss:$24 sps:$4 sm:$0xff]  }
 0x104   :  { %5508 = vmatpush1.bf16.msra.mxu0 %v8053_v39  ;;  %v220_v39 = vadd.f32 %v219_v27, %v218_v13 }
 0x105   :  { %5509 = vmatprep.subr.bf16.mxu0 %v8061_v40  ;;  %v315_v40 = vrot.slane %v314_v28, 2 }
 0x106   :  { %5397 = vmatpush1.bf16.msra.mxu1 %v8086_v41  ;;  %v8085_v41 = vld [vmem:[#allocation6 + $0x1054] ss:$24 sps:$4 sm:$0xff]  }
 0x107   :  { %5398 = vmatprep.subr.bf16.mxu1 %v8094_v42  ;;  %v8118_v42 = vld [vmem:[#allocation6 + $0x874] ss:$24 sps:$4 sm:$0xff]  }
 0x108   :  { %5510 = vmatpush1.bf16.msra.mxu0 %v8059_v44  ;;  %v226_v44 = vadd.f32 %v225_v31, %v224_v19  ;;  %v8097_v19 = vld [vmem:[#allocation6 + $0x10b4] ss:$24 sps:$4 sm:$0xff]   ;;  %v8103_v31 = vld [vmem:[#allocation6 + $0x10e4] ss:$24 sps:$4 sm:$0xff]  }
 0x109   :  { %5511 = vmatprep.subr.bf16.mxu0 %v8067_v45  ;;  %v304_v45 = vadd.f32 %v303_v32, %v302_v20  ;;  %v8122_v20 = vld [vmem:[#allocation6 + $0x8a0] ss:$24 sps:$4 sm:$0xff]   ;;  %v8128_v32 = vld [vmem:[#allocation6 + $0x8d0] ss:$24 sps:$4 sm:$0xff]  }
 0x10a   :  { %5399 = vmatpush1.bf16.msra.mxu1 %v8092_v46  ;;  %v310_v46 = vadd.f32 %v309_v33, %v308_v21  ;;  %v227_v56 = vrot.slane %v226_v44, 1  ;;  %v8139_v33 = vld [vmem:[#allocation6 + $0xc] ss:$24 sps:$4 sm:$0xff]  }
 0x10b   :  { %5400 = vmatprep.subr.bf16.mxu1 %v8100_v47  ;;  %v321_v47 = vrot.slane %v320_v35, 2  ;;  %v305_v57 = vrot.slane %v304_v45, 1 }
 0x10c   :  { %5512 = vmatpush1.bf16.msra.mxu0 %v8065_v48  ;;  %v209_v48 = vrot.slane %v208_v37, 1  ;;  %v228_v4 = vadd.f32 %v227_v56, %v226_v44  ;;  %v8121_v56 = vld [vmem:[#allocation6 + $0x1174] ss:$24 sps:$4 sm:$0xff]  }
 0x10d   :  { %5513 = vmatprep.subr.bf16.mxu0 %v8073_v50  ;;  %v215_v50 = vrot.slane %v214_v38, 1  ;;  %v322_v59 = vadd.f32 %v321_v47, %v320_v35  ;;  %v306_v5 = vadd.f32 %v305_v57, %v304_v45  ;;  %v8149_v57 = vld [vmem:[#allocation6 + $0x68] ss:$24 sps:$4 sm:$0xff]  }
 0x10e   :  { %5401 = vmatpush1.bf16.msra.mxu1 %v8098_v52  ;;  %v221_v52 = vrot.slane %v220_v39, 1  ;;  %v210_v62 = vadd.f32 %v209_v48, %v208_v37  ;;  %v8101_v37 = vld [vmem:[#allocation6 + $0x10e0] ss:$24 sps:$4 sm:$0xff]  }
 0x10f   :  { %5402 = vmatprep.subr.bf16.mxu1 %v8106_v54  ;;  %v316_v54 = vadd.f32 %v315_v40, %v314_v28  ;;  %v216_v0 = vadd.f32 %v215_v50, %v214_v38  ;;  %v8095_v28 = vld [vmem:[#allocation6 + $0x10b0] ss:$24 sps:$4 sm:$0xff]   ;;  %v9435_v38 = vpack.c.bf16 %v9402_v53, %v9402_v53  ;;  %v8109_v40 = vld [vmem:[#allocation6 + $0x1114] ss:$24 sps:$4 sm:$0xff]   ;;  %v8115_v53 = vld [vmem:[#allocation6 + $0x1144] ss:$24 sps:$4 sm:$0xff]  }
 0x110   :  { %5514 = vmatpush1.bf16.msra.mxu0 %v8071_v58  ;;  %v311_v58 = vrot.slane %v310_v46, 1  ;;  %v222_v1 = vadd.f32 %v221_v52, %v220_v39  ;;  %v8143_v48 = vld [vmem:[#allocation6 + $0x38] ss:$24 sps:$4 sm:$0xff]   ;;  %v8151_v52 = vld [vmem:[#allocation6 + $0x6c] ss:$24 sps:$4 sm:$0xff]  }
 0x111   :  { %5515 = vmatprep.subr.bf16.mxu0 %v8079_v8  ;;  %v317_v3 = vrot.slane %v316_v54, 1  ;;  %v323_v8 = vrot.slane %v322_v59, 1  ;;  %v408_v10 = vcombine.low %v210_v62, %v216_v0  ;;  %v8163_v62 = vld [vmem:[#allocation6 + $0xcc] ss:$24 sps:$4 sm:$0xff]   ;;  %v8125_v0 = vld [vmem:[#allocation6 + $0x11a0] ss:$24 sps:$4 sm:$0xff]  }
 0x112   :  { %5403 = vmatpush1.bf16.msra.mxu1 %v8104_v9  ;;  %v312_v6 = vadd.f32 %v311_v58, %v310_v46  ;;  %v409_v14 = vcombine.low %v222_v1, %v228_v4  ;;  %v8107_v46 = vld [vmem:[#allocation6 + $0x1110] ss:$24 sps:$4 sm:$0xff]   ;;  %v8157_v58 = vld [vmem:[#allocation6 + $0x9c] ss:$24 sps:$4 sm:$0xff]  }
 0x113   :  { %5404 = vmatprep.subr.bf16.mxu1 %v8112_v15  ;;  %v318_v9 = vadd.f32 %v317_v3, %v316_v54  ;;  %v324_v13 = vadd.f32 %v323_v8, %v322_v59  ;;  %v416_v21 = vrot.slane %v408_v10, %v9335_v2  ;;  %v8119_v59 = vld [vmem:[#allocation6 + $0x1170] ss:$24 sps:$4 sm:$0xff]   ;;  %v8133_v1 = vld [vmem:[#allocation6 + $0x11d4] ss:$24 sps:$4 sm:$0xff]  }
 0x114   :  { %5516 = vmatpush1.bf16.msra.mxu0 %v8077_v29  ;;  %v476_v15 = vcombine.low %v306_v5, %v312_v6  ;;  %v423_v25 = vrot.slane %v409_v14, %v9335_v2  ;;  %v8161_v3 = vld [vmem:[#allocation6 + $0xc8] ss:$24 sps:$4 sm:$0xff]   ;;  %v8136_v6 = vld [vmem:[#allocation6 + $0x1204] ss:$24 sps:$4 sm:$0xff]   ;;  %v8167_v8 = vld [vmem:[#allocation6 + $0xf8] ss:$24 sps:$4 sm:$0xff]  }
 0x115   :  { %5517 = vmatprep.subr.bf16.mxu0 %v8085_v41  ;;  %v477_v26 = vcombine.low %v318_v9, %v324_v13  ;;  %v8137_v41 = vld [vmem:[#allocation6 + $0x8] ss:$24 sps:$4 sm:$0xff]   ;;  %v8175_v9 = vld [vmem:[#allocation6 + $0x12c] ss:$24 sps:$4 sm:$0xff]   ;;  %v9454_v13 = vpack.c.bf16 %v9417_v22, %v9417_v22 }
 0x116   :  { %5405 = vmatpush1.bf16.msra.mxu1 %v8110_v36  ;;  %v484_v27 = vrot.slane %v476_v15, %v9335_v2  ;;  %v424_v35 = vcombine.low %v416_v21, %v423_v25  ;;  %v8131_v5 = vld [vmem:[#allocation6 + $0x11d0] ss:$24 sps:$4 sm:$0xff]   ;;  %v8142_v15 = vld [vmem:[#allocation6 + $0x1234] ss:$24 sps:$4 sm:$0xff]  }
 0x117   :  { %5406 = vmatprep.subr.bf16.mxu1 %v8118_v42  ;;  %v491_v29 = vrot.slane %v477_v26, %v9335_v2  ;;  %v8145_v42 = vld [vmem:[#allocation6 + $0x3c] ss:$24 sps:$4 sm:$0xff]   ;;  %v8173_v14 = vld [vmem:[#allocation6 + $0x128] ss:$24 sps:$4 sm:$0xff]   ;;  %v8179_v25 = vld [vmem:[#allocation6 + $0x158] ss:$24 sps:$4 sm:$0xff]  }
 0x118   :  { %5518 = vmatpush1.bf16.msra.mxu0 %v8083_v55  ;;  %v8113_v55 = vld [vmem:[#allocation6 + $0x1140] ss:$24 sps:$4 sm:$0xff]   ;;  %v8140_v21 = vld [vmem:[#allocation6 + $0x1230] ss:$24 sps:$4 sm:$0xff]   ;;  %v8187_v22 = vld [vmem:[#allocation6 + $0x18c] ss:$24 sps:$4 sm:$0xff]  }
 0x119   :  { %5519 = vmatprep.subr.bf16.mxu0 %v8091_v61  ;;  %v492_v36 = vcombine.low %v484_v27, %v491_v29  ;;  %v8127_v61 = vld [vmem:[#allocation6 + $0x11a4] ss:$24 sps:$4 sm:$0xff]   ;;  %v8146_v26 = vld [vmem:[#allocation6 + $0x1260] ss:$24 sps:$4 sm:$0xff]   ;;  %v8154_v27 = vld [vmem:[#allocation6 + $0x1294] ss:$24 sps:$4 sm:$0xff]  }
 0x11a   :  { %5407 = vmatpush1.bf16.msra.mxu1 %v8116_v43  ;;  %v8155_v43 = vld [vmem:[#allocation6 + $0x98] ss:$24 sps:$4 sm:$0xff]   ;;  %v8193_v29 = vld [vmem:[#allocation6 + $0x1bc] ss:$24 sps:$4 sm:$0xff]  }
 0x11b   :  { %5408 = vmatprep.subr.bf16.mxu1 %v8124_v12  ;;  %v522_v39 = vrot.slane %v492_v36, 7  ;;  %v8169_v12 = vld [vmem:[#allocation6 + $0xfc] ss:$24 sps:$4 sm:$0xff]   ;;  %v8158_v36 = vld [vmem:[#allocation6 + $0x12c0] ss:$24 sps:$4 sm:$0xff]  }
 0x11c   :  { %5520 = vmatpush1.bf16.msra.mxu0 %v8089_v11  ;;  %v8134_v11 = vld [vmem:[#allocation6 + $0x1200] ss:$24 sps:$4 sm:$0xff]  }
 0x11d   :  { %5521 = vmatprep.subr.bf16.mxu0 %v8097_v19  ;;  %v523_v44 = vsel %vm498_vm0, %v522_v39, %v424_v35  ;;  %v8181_v19 = vld [vmem:[#allocation6 + $0x15c] ss:$24 sps:$4 sm:$0xff]   ;;  %v8199_v35 = vld [vmem:[#allocation6 + $0x1ec] ss:$24 sps:$4 sm:$0xff]  }
 0x11e   :  { %5409 = vmatpush1.bf16.msra.mxu1 %v8122_v20  ;;  %v524_v45 = vsel %vm500_vm1, %v522_v39, %v523_v44  ;;  %v8203_v44 = vld [vmem:[#allocation6 + $0x218] ss:$24 sps:$4 sm:$0xff]  }
 0x11f   :  { %5410 = vmatprep.subr.bf16.mxu1 %v8130_v23  ;;  %v525_v47 = vsel %vm502_vm2, %v522_v39, %v524_v45  ;;  %v8148_v23 = vld [vmem:[#allocation6 + $0x1264] ss:$24 sps:$4 sm:$0xff]  }
 0x120   :  { %5522 = vmatpush1.bf16.msra.mxu0 %v8095_v28  ;;  %v526_v50 = vsel %vm504_vm3, %v522_v39, %v525_v47  ;;  %v8185_v28 = vld [vmem:[#allocation6 + $0x188] ss:$24 sps:$4 sm:$0xff]   ;;  %v8211_v45 = vld [vmem:[#allocation6 + $0x24c] ss:$24 sps:$4 sm:$0xff]  }
 0x121   :  { %5523 = vmatprep.subr.bf16.mxu0 %v8103_v31  ;;  %v9442_v54 = vmul.f32 0.125, %v526_v50  ;;  %v8152_v31 = vld [vmem:[#allocation6 + $0x1290] ss:$24 sps:$4 sm:$0xff]   ;;  %v8178_v47 = vld [vmem:[#allocation6 + $0x1354] ss:$24 sps:$4 sm:$0xff]  }
 0x122   :  { %5411 = vmatpush1.bf16.msra.mxu1 %v8128_v32  ;;  %v8160_v32 = vld [vmem:[#allocation6 + $0x12c4] ss:$24 sps:$4 sm:$0xff]   ;;  %v8197_v39 = vld [vmem:[#allocation6 + $0x1e8] ss:$24 sps:$4 sm:$0xff]  }
 0x123   :  { %5626 = vmatprep.subr.bf16.mxu1 %v8139_v33  ;;  %553 = vst [vmem:[#allocation13 + $0x18] sm:$0xff] %v9442_v54  ;;  %v9448_v4 = vrot.slane %v9442_v54, %v9335_v2  ;;  %v8191_v33 = vld [vmem:[#allocation6 + $0x1b8] ss:$24 sps:$4 sm:$0xff]  }
 0x124   :  { %5524 = vmatpush1.bf16.msra.mxu0 %v8101_v37  ;;  %v8166_v37 = vld [vmem:[#allocation6 + $0x12f4] ss:$24 sps:$4 sm:$0xff]   ;;  %v8176_v50 = vld [vmem:[#allocation6 + $0x1350] ss:$24 sps:$4 sm:$0xff]  }
 0x125   :  { %5413 = vmatmul.mubr.bf16.vlgmr.msra.gmra.mrb[0].mxu1 %v9435_v38  ;;  %5525 = vmatprep.subr.bf16.mxu0 %v8109_v40  ;;  %v624_v10 = vcombine.high %v9448_v4, %v9448_v4  ;;  %v8205_v40 = vld [vmem:[#allocation6 + $0x21c] ss:$24 sps:$4 sm:$0xff]  }
 0x126   :  { %5627 = vmatpush1.bf16.msra.mxu1 %v8137_v41  ;;  %5658 = vmatprep.mubr.bf16.mxu1 %v9351_v17  ;;  %v8164_v41 = vld [vmem:[#allocation6 + $0x12f0] ss:$24 sps:$4 sm:$0xff]  }
 0x127   :  { %5628 = vmatprep.subr.bf16.mxu1 %v8145_v42  ;;  %v9456_v20 = vpack.c.bf16 %v624_v10, %v624_v10  ;;  %v8172_v42 = vld [vmem:[#allocation6 + $0x1324] ss:$24 sps:$4 sm:$0xff]   ;;  %v8239_v10 = vld [vmem:[#allocation6 + $0x338] ss:$24 sps:$4 sm:$0xff]  }
 0x128   :  { %5526 = vmatpush1.bf16.msra.mxu0 %v8107_v46  ;;  %v8170_v46 = vld [vmem:[#allocation6 + $0x1320] ss:$24 sps:$4 sm:$0xff]  }
 0x129   :  { %5527 = vmatprep.subr.bf16.mxu0 %v8115_v53  ;;  %v8209_v53 = vld [vmem:[#allocation6 + $0x248] ss:$24 sps:$4 sm:$0xff]  }
 0x12a   :  { %5629 = vmatpush1.bf16.msra.mxu1 %v8143_v48  ;;  %v8217_v48 = vld [vmem:[#allocation6 + $0x27c] ss:$24 sps:$4 sm:$0xff]  }
 0x12b   :  { %5630 = vmatprep.subr.bf16.mxu1 %v8151_v52  ;;  %v8184_v52 = vld [vmem:[#allocation6 + $0x1384] ss:$24 sps:$4 sm:$0xff]  }
 0x12c   :  { %5528 = vmatpush1.bf16.msra.mxu0 %v8113_v55  ;;  %v8215_v55 = vld [vmem:[#allocation6 + $0x278] ss:$24 sps:$4 sm:$0xff]  }
 0x12d   :  { %5529 = vmatprep.subr.bf16.mxu0 %v8121_v56  ;;  %v8223_v56 = vld [vmem:[#allocation6 + $0x2ac] ss:$24 sps:$4 sm:$0xff]  }
 0x12e   :  { %5631 = vmatpush1.bf16.msra.mxu1 %v8149_v57  ;;  %v8182_v57 = vld [vmem:[#allocation6 + $0x1380] ss:$24 sps:$4 sm:$0xff]  }
 0x12f   :  { %5632 = vmatprep.subr.bf16.mxu1 %v8157_v58  ;;  %v8190_v58 = vld [vmem:[#allocation6 + $0x13b4] ss:$24 sps:$4 sm:$0xff]  }
 0x130   :  { %5530 = vmatpush1.bf16.msra.mxu0 %v8119_v59  ;;  %v8221_v59 = vld [vmem:[#allocation6 + $0x2a8] ss:$24 sps:$4 sm:$0xff]  }
 0x131   :  { %5531 = vmatprep.subr.bf16.mxu0 %v8127_v61  ;;  %v8229_v61 = vld [vmem:[#allocation6 + $0x2dc] ss:$24 sps:$4 sm:$0xff]  }
 0x132   :  { %5633 = vmatpush1.bf16.msra.mxu1 %v8155_v43  ;;  %v8188_v43 = vld [vmem:[#allocation6 + $0x13b0] ss:$24 sps:$4 sm:$0xff]  }
 0x133   :  { %5634 = vmatprep.subr.bf16.mxu1 %v8163_v62  ;;  %v8196_v62 = vld [vmem:[#allocation6 + $0x13e4] ss:$24 sps:$4 sm:$0xff]  }
 0x134   :  { %5532 = vmatpush1.bf16.msra.mxu0 %v8125_v0  ;;  %v8227_v0 = vld [vmem:[#allocation6 + $0x2d8] ss:$24 sps:$4 sm:$0xff]  }
 0x135   :  { %5533 = vmatprep.subr.bf16.mxu0 %v8133_v1  ;;  %v8235_v1 = vld [vmem:[#allocation6 + $0x30c] ss:$24 sps:$4 sm:$0xff]  }
 0x136   :  { %5635 = vmatpush1.bf16.msra.mxu1 %v8161_v3  ;;  %v8194_v3 = vld [vmem:[#allocation6 + $0x13e0] ss:$24 sps:$4 sm:$0xff]  }
 0x137   :  { %5636 = vmatprep.subr.bf16.mxu1 %v8169_v12  ;;  %v8202_v12 = vld [vmem:[#allocation6 + $0x1414] ss:$24 sps:$4 sm:$0xff]  }
 0x138   :  { %5534 = vmatpush1.bf16.msra.mxu0 %v8131_v5  ;;  %v8233_v5 = vld [vmem:[#allocation6 + $0x308] ss:$24 sps:$4 sm:$0xff]  }
 0x139   :  { %5544 = vmatprep.subr.bf16.mxu0 %v8136_v6  ;;  %v8241_v6 = vld [vmem:[#allocation6 + $0x33c] ss:$24 sps:$4 sm:$0xff]  }
 0x13a   :  { %5637 = vmatpush1.bf16.msra.mxu1 %v8167_v8  ;;  %v8200_v8 = vld [vmem:[#allocation6 + $0x1410] ss:$24 sps:$4 sm:$0xff]  }
 0x13b   :  { %5638 = vmatprep.subr.bf16.mxu1 %v8175_v9  ;;  %5536 = vmatmul.mubr.bf16.vlgmr.msra.gmra.mrb[0].mxu0 %v9454_v13  ;;  %v8208_v9 = vld [vmem:[#allocation6 + $0x1444] ss:$24 sps:$4 sm:$0xff]  }
 0x13c   :  { %5545 = vmatpush1.bf16.msra.mxu0 %v8134_v11  ;;  %5576 = vmatprep.mubr.bf16.mxu0 %v9456_v20  ;;  %v8247_v11 = vld [vmem:[#allocation6 + $0x36c] ss:$24 sps:$4 sm:$0xff]  }
 0x13d   :  { %5546 = vmatprep.subr.bf16.mxu0 %v8142_v15  ;;  %v8214_v15 = vld [vmem:[#allocation6 + $0x1474] ss:$24 sps:$4 sm:$0xff]  }
 0x13e   :  { %5639 = vmatpush1.bf16.msra.mxu1 %v8173_v14  ;;  %v8206_v14 = vld [vmem:[#allocation6 + $0x1440] ss:$24 sps:$4 sm:$0xff]  }
 0x13f   :  { %5640 = vmatprep.subr.bf16.mxu1 %v8181_v19  ;;  %v8245_v19 = vld [vmem:[#allocation6 + $0x368] ss:$24 sps:$4 sm:$0xff]  }
 0x140   :  { %5547 = vmatpush1.bf16.msra.mxu0 %v8140_v21  ;;  %v8253_v21 = vld [vmem:[#allocation6 + $0x39c] ss:$24 sps:$4 sm:$0xff]  }
 0x141   :  { %5548 = vmatprep.subr.bf16.mxu0 %v8148_v23  ;;  %v8212_v23 = vld [vmem:[#allocation6 + $0x1470] ss:$24 sps:$4 sm:$0xff]  }
 0x142   :  { %5641 = vmatpush1.bf16.msra.mxu1 %v8179_v25  ;;  %v8220_v25 = vld [vmem:[#allocation6 + $0x14a4] ss:$24 sps:$4 sm:$0xff]  }
 0x143   :  { %5642 = vmatprep.subr.bf16.mxu1 %v8187_v22  ;;  %v8251_v22 = vld [vmem:[#allocation6 + $0x398] ss:$24 sps:$4 sm:$0xff]  }
 0x144   :  { %5549 = vmatpush1.bf16.msra.mxu0 %v8146_v26  ;;  %v8259_v26 = vld [vmem:[#allocation6 + $0x3cc] ss:$24 sps:$4 sm:$0xff]  }
 0x145   :  { %5550 = vmatprep.subr.bf16.mxu0 %v8154_v27  ;;  %v609_v27 = vcombine.high %v9442_v54, %v9442_v54 }
 0x146   :  { %5643 = vmatpush1.bf16.msra.mxu1 %v8185_v28  ;;  %v8218_v28 = vld [vmem:[#allocation6 + $0x14a0] ss:$24 sps:$4 sm:$0xff]  }
 0x147   :  { %5644 = vmatprep.subr.bf16.mxu1 %v8193_v29  ;;  %v8226_v29 = vld [vmem:[#allocation6 + $0x14d4] ss:$24 sps:$4 sm:$0xff]  }
 0x148   :  { %5551 = vmatpush1.bf16.msra.mxu0 %v8152_v31  ;;  %v8257_v31 = vld [vmem:[#allocation6 + $0x3c8] ss:$24 sps:$4 sm:$0xff]  }
 0x149   :  { %5552 = vmatprep.subr.bf16.mxu0 %v8160_v32  ;;  %v8265_v32 = vld [vmem:[#allocation6 + $0x3fc] ss:$24 sps:$4 sm:$0xff]  }
 0x14a   :  { %5645 = vmatpush1.bf16.msra.mxu1 %v8191_v33  ;;  %v9465_v33 = vrot.slane %v609_v27, %v9335_v2  ;;  %v8269_v2 = vld [vmem:[#allocation6 + $0x428] ss:$24 sps:$4 sm:$0xff]   ;;  %v8292_v27 = vld [vmem:[#allocation6 + $0x16e4] ss:$24 sps:$4 sm:$0xff]  }
 0x14b   :  { %5646 = vmatprep.subr.bf16.mxu1 %v8199_v35  ;;  %v8224_v35 = vld [vmem:[#allocation6 + $0x14d0] ss:$24 sps:$4 sm:$0xff]  }
 0x14c   :  { %5553 = vmatpush1.bf16.msra.mxu0 %v8158_v36  ;;  %v8232_v36 = vld [vmem:[#allocation6 + $0x1504] ss:$24 sps:$4 sm:$0xff]   ;;  %v625_v54 = vcombine.high %v9465_v33, %v9465_v33 }
 0x14d   :  { %5554 = vmatprep.subr.bf16.mxu0 %v8166_v37  ;;  %v8263_v37 = vld [vmem:[#allocation6 + $0x3f8] ss:$24 sps:$4 sm:$0xff]  }
 0x14e   :  { %5647 = vmatpush1.bf16.msra.mxu1 %v8197_v39  ;;  %v8271_v39 = vld [vmem:[#allocation6 + $0x42c] ss:$24 sps:$4 sm:$0xff]  }
 0x14f   :  { %5648 = vmatprep.subr.bf16.mxu1 %v8205_v40  ;;  %v9471_v40 = vpack.c.bf16 %v9448_v4, %v9448_v4  ;;  %v8283_v4 = vld [vmem:[#allocation6 + $0x48c] ss:$24 sps:$4 sm:$0xff]  }
 0x150   :  { %5555 = vmatpush1.bf16.msra.mxu0 %v8164_v41  ;;  %v8230_v41 = vld [vmem:[#allocation6 + $0x1500] ss:$24 sps:$4 sm:$0xff]  }
 0x151   :  { %5556 = vmatprep.subr.bf16.mxu0 %v8172_v42  ;;  %v8238_v42 = vld [vmem:[#allocation6 + $0x1534] ss:$24 sps:$4 sm:$0xff]  }
 0x152   :  { %5649 = vmatpush1.bf16.msra.mxu1 %v8203_v44  ;;  %v8277_v44 = vld [vmem:[#allocation6 + $0x45c] ss:$24 sps:$4 sm:$0xff]  }
 0x153   :  { %5650 = vmatprep.subr.bf16.mxu1 %v8211_v45  ;;  %v9473_v45 = vpack.c.bf16 %v625_v54, %v625_v54  ;;  %v8332_v54 = vld [vmem:[#allocation6 + $0x638] ss:$24 sps:$4 sm:$0xff]  }
 0x154   :  { %5557 = vmatpush1.bf16.msra.mxu0 %v8170_v46  ;;  %v8236_v46 = vld [vmem:[#allocation6 + $0x1530] ss:$24 sps:$4 sm:$0xff]  }
 0x155   :  { %5558 = vmatprep.subr.bf16.mxu0 %v8178_v47  ;;  %v8244_v47 = vld [vmem:[#allocation6 + $0x1564] ss:$24 sps:$4 sm:$0xff]  }
 0x156   :  { %5651 = vmatpush1.bf16.msra.mxu1 %v8209_v53  ;;  %v8275_v53 = vld [vmem:[#allocation6 + $0x458] ss:$24 sps:$4 sm:$0xff]  }
 0x157   :  { %5652 = vmatprep.subr.bf16.mxu1 %v8217_v48  ;;  %v8242_v48 = vld [vmem:[#allocation6 + $0x1560] ss:$24 sps:$4 sm:$0xff]  }
 0x158   :  { %5559 = vmatpush1.bf16.msra.mxu0 %v8176_v50  ;;  %v8250_v50 = vld [vmem:[#allocation6 + $0x1594] ss:$24 sps:$4 sm:$0xff]  }
 0x159   :  { %5560 = vmatprep.subr.bf16.mxu0 %v8184_v52  ;;  %v8281_v52 = vld [vmem:[#allocation6 + $0x488] ss:$24 sps:$4 sm:$0xff]  }
 0x15a   :  { %5653 = vmatpush1.bf16.msra.mxu1 %v8215_v55  ;;  %v8289_v55 = vld [vmem:[#allocation6 + $0x4bc] ss:$24 sps:$4 sm:$0xff]  }
 0x15b   :  { %5654 = vmatprep.subr.bf16.mxu1 %v8223_v56  ;;  %v8248_v56 = vld [vmem:[#allocation6 + $0x1590] ss:$24 sps:$4 sm:$0xff]  }
 0x15c   :  { %5561 = vmatpush1.bf16.msra.mxu0 %v8182_v57  ;;  %v8256_v57 = vld [vmem:[#allocation6 + $0x15c4] ss:$24 sps:$4 sm:$0xff]  }
 0x15d   :  { %5562 = vmatprep.subr.bf16.mxu0 %v8190_v58  ;;  %v8287_v58 = vld [vmem:[#allocation6 + $0x4b8] ss:$24 sps:$4 sm:$0xff]  }
 0x15e   :  { %5655 = vmatpush1.bf16.msra.mxu1 %v8221_v59  ;;  %v8295_v59 = vld [vmem:[#allocation6 + $0x4ec] ss:$24 sps:$4 sm:$0xff]  }
 0x15f   :  { %5656 = vmatprep.subr.bf16.mxu1 %v8229_v61  ;;  %v8254_v61 = vld [vmem:[#allocation6 + $0x15c0] ss:$24 sps:$4 sm:$0xff]  }
 0x160   :  { %5563 = vmatpush1.bf16.msra.mxu0 %v8188_v43  ;;  %v8262_v43 = vld [vmem:[#allocation6 + $0x15f4] ss:$24 sps:$4 sm:$0xff]  }
 0x161   :  { %5564 = vmatprep.subr.bf16.mxu0 %v8196_v62  ;;  %v8293_v62 = vld [vmem:[#allocation6 + $0x4e8] ss:$24 sps:$4 sm:$0xff]  }
 0x162   :  { %5657 = vmatpush1.bf16.msra.mxu1 %v8227_v0  ;;  %v8301_v0 = vld [vmem:[#allocation6 + $0x51c] ss:$24 sps:$4 sm:$0xff]  }
 0x163   :  { %5667 = vmatprep.subr.bf16.mxu1 %v8235_v1  ;;  %v8260_v1 = vld [vmem:[#allocation6 + $0x15f0] ss:$24 sps:$4 sm:$0xff]  }
 0x164   :  { %5565 = vmatpush1.bf16.msra.mxu0 %v8194_v3  ;;  %v8299_v3 = vld [vmem:[#allocation6 + $0x518] ss:$24 sps:$4 sm:$0xff]  }
 0x165   :  { %5659 = vmatmul.mubr.bf16.vlgmr.msra.gmra.mrb[4].mxu1 %v9349_v16  ;;  %5566 = vmatprep.subr.bf16.mxu0 %v8202_v12  ;;  %v8268_v12 = vld [vmem:[#allocation6 + $0x1624] ss:$24 sps:$4 sm:$0xff]  }
 0x166   :  { %5668 = vmatpush1.bf16.msra.mxu1 %v8233_v5  ;;  %5699 = vmatprep.mubr.bf16.mxu1 %v9356_v24  ;;  %v8307_v5 = vld [vmem:[#allocation6 + $0x54c] ss:$24 sps:$4 sm:$0xff]  }
 0x167   :  { %5669 = vmatprep.subr.bf16.mxu1 %v8241_v6  ;;  %v8266_v6 = vld [vmem:[#allocation6 + $0x1620] ss:$24 sps:$4 sm:$0xff]  }
 0x168   :  { %5567 = vmatpush1.bf16.msra.mxu0 %v8200_v8  ;;  %v8274_v8 = vld [vmem:[#allocation6 + $0x1654] ss:$24 sps:$4 sm:$0xff]  }
 0x169   :  { %5568 = vmatprep.subr.bf16.mxu0 %v8208_v9  ;;  %v8305_v9 = vld [vmem:[#allocation6 + $0x548] ss:$24 sps:$4 sm:$0xff]  }
 0x16a   :  { %5670 = vmatpush1.bf16.msra.mxu1 %v8239_v10  ;;  %v8313_v10 = vld [vmem:[#allocation6 + $0x57c] ss:$24 sps:$4 sm:$0xff]  }
 0x16b   :  { %5671 = vmatprep.subr.bf16.mxu1 %v8247_v11  ;;  %v8272_v11 = vld [vmem:[#allocation6 + $0x1650] ss:$24 sps:$4 sm:$0xff]  }
 0x16c   :  { %5569 = vmatpush1.bf16.msra.mxu0 %v8206_v14  ;;  %v8280_v14 = vld [vmem:[#allocation6 + $0x1684] ss:$24 sps:$4 sm:$0xff]  }
 0x16d   :  { %5570 = vmatprep.subr.bf16.mxu0 %v8214_v15  ;;  %v8311_v15 = vld [vmem:[#allocation6 + $0x578] ss:$24 sps:$4 sm:$0xff]  }
 0x16e   :  { %5672 = vmatpush1.bf16.msra.mxu1 %v8245_v19  ;;  %v8319_v19 = vld [vmem:[#allocation6 + $0x5ac] ss:$24 sps:$4 sm:$0xff]  }
 0x16f   :  { %5673 = vmatprep.subr.bf16.mxu1 %v8253_v21  ;;  %v8278_v21 = vld [vmem:[#allocation6 + $0x1680] ss:$24 sps:$4 sm:$0xff]  }
 0x170   :  { %5571 = vmatpush1.bf16.msra.mxu0 %v8212_v23  ;;  %v8286_v23 = vld [vmem:[#allocation6 + $0x16b4] ss:$24 sps:$4 sm:$0xff]  }
 0x171   :  { %5572 = vmatprep.subr.bf16.mxu0 %v8220_v25  ;;  %v8317_v25 = vld [vmem:[#allocation6 + $0x5a8] ss:$24 sps:$4 sm:$0xff]  }
 0x172   :  { %5674 = vmatpush1.bf16.msra.mxu1 %v8251_v22  ;;  %v8325_v22 = vld [vmem:[#allocation6 + $0x5dc] ss:$24 sps:$4 sm:$0xff]  }
 0x173   :  { %5675 = vmatprep.subr.bf16.mxu1 %v8259_v26  ;;  %v8284_v26 = vld [vmem:[#allocation6 + $0x16b0] ss:$24 sps:$4 sm:$0xff]  }
 0x174   :  { %5573 = vmatpush1.bf16.msra.mxu0 %v8218_v28  ;;  %v8323_v28 = vld [vmem:[#allocation6 + $0x5d8] ss:$24 sps:$4 sm:$0xff]  }
 0x175   :  { %5574 = vmatprep.subr.bf16.mxu0 %v8226_v29  ;;  %v8328_v29 = vld [vmem:[#allocation6 + $0x60c] ss:$24 sps:$4 sm:$0xff]  }
 0x176   :  { %5676 = vmatpush1.bf16.msra.mxu1 %v8257_v31  ;;  %v8290_v31 = vld [vmem:[#allocation6 + $0x16e0] ss:$24 sps:$4 sm:$0xff]  }
 0x177   :  { %5677 = vmatprep.subr.bf16.mxu1 %v8265_v32  ;;  %v8298_v32 = vld [vmem:[#allocation6 + $0x1714] ss:$24 sps:$4 sm:$0xff]  }
 0x178   :  { %5575 = vmatpush1.bf16.msra.mxu0 %v8224_v35  ;;  %v8326_v35 = vld [vmem:[#allocation6 + $0x608] ss:$24 sps:$4 sm:$0xff]  }
 0x179   :  { %5585 = vmatprep.subr.bf16.mxu0 %v8232_v36  ;;  %v8334_v36 = vld [vmem:[#allocation6 + $0x63c] ss:$24 sps:$4 sm:$0xff]  }
 0x17a   :  { %5678 = vmatpush1.bf16.msra.mxu1 %v8263_v37  ;;  %v8296_v37 = vld [vmem:[#allocation6 + $0x1710] ss:$24 sps:$4 sm:$0xff]  }
 0x17b   :  { %5679 = vmatprep.subr.bf16.mxu1 %v8271_v39  ;;  %5577 = vmatmul.mubr.bf16.vlgmr.msra.gmra.mrb[0].mxu0 %v9471_v40  ;;  %v8304_v39 = vld [vmem:[#allocation6 + $0x1744] ss:$24 sps:$4 sm:$0xff]  }
 0x17c   :  { %5586 = vmatpush1.bf16.msra.mxu0 %v8230_v41  ;;  %5617 = vmatprep.mubr.bf16.mxu0 %v9473_v45  ;;  %v8340_v41 = vld [vmem:[#allocation6 + $0x66c] ss:$24 sps:$4 sm:$0xff]  }
 0x17d   :  { %5587 = vmatprep.subr.bf16.mxu0 %v8238_v42  ;;  %v8302_v42 = vld [vmem:[#allocation6 + $0x1740] ss:$24 sps:$4 sm:$0xff]  }
 0x17e   :  { %5680 = vmatpush1.bf16.msra.mxu1 %v8269_v2  ;;  %v8310_v2 = vld [vmem:[#allocation6 + $0x1774] ss:$24 sps:$4 sm:$0xff]  }
 0x17f   :  { %5681 = vmatprep.subr.bf16.mxu1 %v8277_v44  ;;  %v8338_v44 = vld [vmem:[#allocation6 + $0x668] ss:$24 sps:$4 sm:$0xff]  }
 0x180   :  { %5588 = vmatpush1.bf16.msra.mxu0 %v8236_v46  ;;  %v8346_v46 = vld [vmem:[#allocation6 + $0x69c] ss:$24 sps:$4 sm:$0xff]  }
 0x181   :  { %5589 = vmatprep.subr.bf16.mxu0 %v8244_v47  ;;  %v8308_v47 = vld [vmem:[#allocation6 + $0x1770] ss:$24 sps:$4 sm:$0xff]  }
 0x182   :  { %5682 = vmatpush1.bf16.msra.mxu1 %v8275_v53  ;;  %v8316_v53 = vld [vmem:[#allocation6 + $0x17a4] ss:$24 sps:$4 sm:$0xff]  }
 0x183   :  { %5683 = vmatprep.subr.bf16.mxu1 %v8283_v4  ;;  %v8344_v4 = vld [vmem:[#allocation6 + $0x698] ss:$24 sps:$4 sm:$0xff]  }
 0x184   :  { %5590 = vmatpush1.bf16.msra.mxu0 %v8242_v48  ;;  %v8352_v48 = vld [vmem:[#allocation6 + $0x6cc] ss:$24 sps:$4 sm:$0xff]  }
 0x185   :  { %5591 = vmatprep.subr.bf16.mxu0 %v8250_v50  ;;  %v8314_v50 = vld [vmem:[#allocation6 + $0x17a0] ss:$24 sps:$4 sm:$0xff]  }
 0x186   :  { %5684 = vmatpush1.bf16.msra.mxu1 %v8281_v52  ;;  %v8322_v52 = vld [vmem:[#allocation6 + $0x17d4] ss:$24 sps:$4 sm:$0xff]  }
 0x187   :  { %5685 = vmatprep.subr.bf16.mxu1 %v8289_v55  ;;  %v8350_v55 = vld [vmem:[#allocation6 + $0x6c8] ss:$24 sps:$4 sm:$0xff]  }
 0x188   :  { %5592 = vmatpush1.bf16.msra.mxu0 %v8248_v56  ;;  %v8358_v56 = vld [vmem:[#allocation6 + $0x6fc] ss:$24 sps:$4 sm:$0xff]  }
 0x189   :  { %5593 = vmatprep.subr.bf16.mxu0 %v8256_v57  ;;  %v8320_v57 = vld [vmem:[#allocation6 + $0x17d0] ss:$24 sps:$4 sm:$0xff]  }
 0x18a   :  { %5686 = vmatpush1.bf16.msra.mxu1 %v8287_v58  ;;  %v8331_v58 = vld [vmem:[#allocation6 + $0x14] ss:$24 sps:$4 sm:$0xff]  }
 0x18b   :  { %5687 = vmatprep.subr.bf16.mxu1 %v8295_v59  ;;  %v8356_v59 = vld [vmem:[#allocation6 + $0x6f8] ss:$24 sps:$4 sm:$0xff]  }
 0x18c   :  { %5594 = vmatpush1.bf16.msra.mxu0 %v8254_v61  ;;  %v8364_v61 = vld [vmem:[#allocation6 + $0x72c] ss:$24 sps:$4 sm:$0xff]  }
 0x18d   :  { %5595 = vmatprep.subr.bf16.mxu0 %v8262_v43  ;;  %v9481_v43 = vpack.c.bf16 %v9465_v33, %v9465_v33  ;;  %v8341_v33 = vld [vmem:[#allocation6 + $0x70] ss:$24 sps:$4 sm:$0xff]  }
 0x18e   :  { %5688 = vmatpush1.bf16.msra.mxu1 %v8293_v62  ;;  %v8329_v62 = vld [vmem:[#allocation6 + $0x10] ss:$24 sps:$4 sm:$0xff]  }
 0x18f   :  { %5689 = vmatprep.subr.bf16.mxu1 %v8301_v0  ;;  %v8337_v0 = vld [vmem:[#allocation6 + $0x44] ss:$24 sps:$4 sm:$0xff]  }
 0x190   :  { %5596 = vmatpush1.bf16.msra.mxu0 %v8260_v1  ;;  %v8362_v1 = vld [vmem:[#allocation6 + $0x728] ss:$24 sps:$4 sm:$0xff]  }
 0x191   :  { %5597 = vmatprep.subr.bf16.mxu0 %v8268_v12  ;;  %v8335_v12 = vld [vmem:[#allocation6 + $0x40] ss:$24 sps:$4 sm:$0xff]  }
 0x192   :  { %5690 = vmatpush1.bf16.msra.mxu1 %v8299_v3  ;;  %v8370_v3 = vld [vmem:[#allocation6 + $0x75c] ss:$24 sps:$4 sm:$0xff]  }
 0x193   :  { %5691 = vmatprep.subr.bf16.mxu1 %v8307_v5  ;;  %v8343_v5 = vld [vmem:[#allocation6 + $0x74] ss:$24 sps:$4 sm:$0xff]  }
 0x194   :  { %5598 = vmatpush1.bf16.msra.mxu0 %v8266_v6  ;;  %v8368_v6 = vld [vmem:[#allocation6 + $0x758] ss:$24 sps:$4 sm:$0xff]  }
 0x195   :  { %5599 = vmatprep.subr.bf16.mxu0 %v8274_v8  ;;  %v8376_v8 = vld [vmem:[#allocation6 + $0x78c] ss:$24 sps:$4 sm:$0xff]  }
 0x196   :  { %5692 = vmatpush1.bf16.msra.mxu1 %v8305_v9  ;;  %v8349_v9 = vld [vmem:[#allocation6 + $0xa4] ss:$24 sps:$4 sm:$0xff]  }
 0x197   :  { %5693 = vmatprep.subr.bf16.mxu1 %v8313_v10  ;;  %v8374_v10 = vld [vmem:[#allocation6 + $0x788] ss:$24 sps:$4 sm:$0xff]  }
 0x198   :  { %5600 = vmatpush1.bf16.msra.mxu0 %v8272_v11  ;;  %v8382_v11 = vld [vmem:[#allocation6 + $0x7bc] ss:$24 sps:$4 sm:$0xff]  }
 0x199   :  { %5601 = vmatprep.subr.bf16.mxu0 %v8280_v14  ;;  %v8347_v14 = vld [vmem:[#allocation6 + $0xa0] ss:$24 sps:$4 sm:$0xff]  }
 0x19a   :  { %5694 = vmatpush1.bf16.msra.mxu1 %v8311_v15  ;;  %v8355_v15 = vld [vmem:[#allocation6 + $0xd4] ss:$24 sps:$4 sm:$0xff]  }
 0x19b   :  { %5695 = vmatprep.subr.bf16.mxu1 %v8319_v19  ;;  %v8380_v19 = vld [vmem:[#allocation6 + $0x7b8] ss:$24 sps:$4 sm:$0xff]  }
 0x19c   :  { %5602 = vmatpush1.bf16.msra.mxu0 %v8278_v21  ;;  %v8388_v21 = vld [vmem:[#allocation6 + $0x7ec] ss:$24 sps:$4 sm:$0xff]  }
 0x19d   :  { %5603 = vmatprep.subr.bf16.mxu0 %v8286_v23  ;;  %v8353_v23 = vld [vmem:[#allocation6 + $0xd0] ss:$24 sps:$4 sm:$0xff]  }
 0x19e   :  { %5696 = vmatpush1.bf16.msra.mxu1 %v8317_v25  ;;  %v8361_v25 = vld [vmem:[#allocation6 + $0x104] ss:$24 sps:$4 sm:$0xff]  }
 0x19f   :  { %5697 = vmatprep.subr.bf16.mxu1 %v8325_v22  ;;  %v8394_v22 = vld [vmem:[#allocation6 + $0x81c] ss:$24 sps:$4 sm:$0xff]  }
 0x1a0   :  { %5604 = vmatpush1.bf16.msra.mxu0 %v8284_v26  ;;  %v8359_v26 = vld [vmem:[#allocation6 + $0x100] ss:$24 sps:$4 sm:$0xff]  }
 0x1a1   :  { %5605 = vmatprep.subr.bf16.mxu0 %v8292_v27  ;;  %v8367_v27 = vld [vmem:[#allocation6 + $0x134] ss:$24 sps:$4 sm:$0xff]  }
 0x1a2   :  { %5698 = vmatpush1.bf16.msra.mxu1 %v8323_v28  ;;  %v8392_v28 = vld [vmem:[#allocation6 + $0x818] ss:$24 sps:$4 sm:$0xff]  }
 0x1a3   :  { %5708 = vmatprep.subr.bf16.mxu1 %v8328_v29  ;;  %v8400_v29 = vld [vmem:[#allocation6 + $0x84c] ss:$24 sps:$4 sm:$0xff]  }
 0x1a4   :  { %5606 = vmatpush1.bf16.msra.mxu0 %v8290_v31  ;;  %v8365_v31 = vld [vmem:[#allocation6 + $0x130] ss:$24 sps:$4 sm:$0xff]  }
 0x1a5   :  { %5700 = vmatmul.mubr.bf16.vlgmr.msra.gmra.mrb[4].mxu1 %v9408_v60  ;;  %5607 = vmatprep.subr.bf16.mxu0 %v8298_v32  ;;  %v8373_v32 = vld [vmem:[#allocation6 + $0x164] ss:$24 sps:$4 sm:$0xff]  }
 0x1a6   :  { %5709 = vmatpush1.bf16.msra.mxu1 %v8326_v35  ;;  %5740 = vmatprep.mubr.bf16.mxu1 %v9410_v63  ;;  %v8398_v35 = vld [vmem:[#allocation6 + $0x848] ss:$24 sps:$4 sm:$0xff]  }
 0x1a7   :  { %5710 = vmatprep.subr.bf16.mxu1 %v8334_v36  ;;  %v8406_v36 = vld [vmem:[#allocation6 + $0x87c] ss:$24 sps:$4 sm:$0xff]  }
 0x1a8   :  { %5608 = vmatpush1.bf16.msra.mxu0 %v8296_v37  ;;  %v8371_v37 = vld [vmem:[#allocation6 + $0x160] ss:$24 sps:$4 sm:$0xff]  }
 0x1a9   :  { %5609 = vmatprep.subr.bf16.mxu0 %v8304_v39  ;;  %v8379_v39 = vld [vmem:[#allocation6 + $0x194] ss:$24 sps:$4 sm:$0xff]  }
 0x1aa   :  { %5711 = vmatpush1.bf16.msra.mxu1 %v8332_v54  ;;  %v8404_v54 = vld [vmem:[#allocation6 + $0x878] ss:$24 sps:$4 sm:$0xff]  }
 0x1ab   :  { %5712 = vmatprep.subr.bf16.mxu1 %v8340_v41  ;;  %v8412_v41 = vld [vmem:[#allocation6 + $0x8ac] ss:$24 sps:$4 sm:$0xff]  }
 0x1ac   :  { %5610 = vmatpush1.bf16.msra.mxu0 %v8302_v42  ;;  %v8377_v42 = vld [vmem:[#allocation6 + $0x190] ss:$24 sps:$4 sm:$0xff]  }
 0x1ad   :  { %5611 = vmatprep.subr.bf16.mxu0 %v8310_v2  ;;  %v8385_v2 = vld [vmem:[#allocation6 + $0x1c4] ss:$24 sps:$4 sm:$0xff]  }
 0x1ae   :  { %5713 = vmatpush1.bf16.msra.mxu1 %v8338_v44  ;;  %v8410_v44 = vld [vmem:[#allocation6 + $0x8a8] ss:$24 sps:$4 sm:$0xff]  }
 0x1af   :  { %5714 = vmatprep.subr.bf16.mxu1 %v8346_v46  ;;  %v8418_v46 = vld [vmem:[#allocation6 + $0x8dc] ss:$24 sps:$4 sm:$0xff]  }
 0x1b0   :  { %5612 = vmatpush1.bf16.msra.mxu0 %v8308_v47  ;;  %v8383_v47 = vld [vmem:[#allocation6 + $0x1c0] ss:$24 sps:$4 sm:$0xff]  }
 0x1b1   :  { %5613 = vmatprep.subr.bf16.mxu0 %v8316_v53  ;;  %v8391_v53 = vld [vmem:[#allocation6 + $0x1f4] ss:$24 sps:$4 sm:$0xff]  }
 0x1b2   :  { %5715 = vmatpush1.bf16.msra.mxu1 %v8344_v4  ;;  %v8416_v4 = vld [vmem:[#allocation6 + $0x8d8] ss:$24 sps:$4 sm:$0xff]  }
 0x1b3   :  { %5716 = vmatprep.subr.bf16.mxu1 %v8352_v48  ;;  %v8424_v48 = vld [vmem:[#allocation6 + $0x90c] ss:$24 sps:$4 sm:$0xff]  }
 0x1b4   :  { %5614 = vmatpush1.bf16.msra.mxu0 %v8314_v50  ;;  %v8389_v50 = vld [vmem:[#allocation6 + $0x1f0] ss:$24 sps:$4 sm:$0xff]  }
 0x1b5   :  { %5615 = vmatprep.subr.bf16.mxu0 %v8322_v52  ;;  %v8397_v52 = vld [vmem:[#allocation6 + $0x224] ss:$24 sps:$4 sm:$0xff]  }
 0x1b6   :  { %5717 = vmatpush1.bf16.msra.mxu1 %v8350_v55  ;;  %v8422_v55 = vld [vmem:[#allocation6 + $0x908] ss:$24 sps:$4 sm:$0xff]  }
 0x1b7   :  { %5718 = vmatprep.subr.bf16.mxu1 %v8358_v56  ;;  %v8430_v56 = vld [vmem:[#allocation6 + $0x93c] ss:$24 sps:$4 sm:$0xff]  }
 0x1b8   :  { %5616 = vmatpush1.bf16.msra.mxu0 %v8320_v57  ;;  %v8395_v57 = vld [vmem:[#allocation6 + $0x220] ss:$24 sps:$4 sm:$0xff]  }
 0x1b9   :  { %5954 = vmatprep.subr.bf16.mxu0 %v8331_v58  ;;  %v8403_v58 = vld [vmem:[#allocation6 + $0x254] ss:$24 sps:$4 sm:$0xff]  }
 0x1ba   :  { %5719 = vmatpush1.bf16.msra.mxu1 %v8356_v59  ;;  %v8428_v59 = vld [vmem:[#allocation6 + $0x938] ss:$24 sps:$4 sm:$0xff]  }
 0x1bb   :  { %5720 = vmatprep.subr.bf16.mxu1 %v8364_v61  ;;  %5618 = vmatmul.mubr.bf16.vlgmr.msra.gmra.mrb[0].mxu0 %v9481_v43  ;;  %v8436_v61 = vld [vmem:[#allocation6 + $0x96c] ss:$24 sps:$4 sm:$0xff]  }
 0x1bc   :  { %5955 = vmatpush1.bf16.msra.mxu0 %v8329_v62  ;;  %5986 = vmatprep.mubr.bf16.mxu0 %v9351_v17  ;;  %v8386_v17 = vld [vmem:[#allocation6 + $0x7e8] ss:$24 sps:$4 sm:$0xff]  }
 0x1bd   :  { %5956 = vmatprep.subr.bf16.mxu0 %v8337_v0  ;;  %v8401_v62 = vld [vmem:[#allocation6 + $0x250] ss:$24 sps:$4 sm:$0xff]   ;;  %v8409_v0 = vld [vmem:[#allocation6 + $0x284] ss:$24 sps:$4 sm:$0xff]  }
 0x1be   :  { %5721 = vmatpush1.bf16.msra.mxu1 %v8362_v1  ;;  %v8434_v1 = vld [vmem:[#allocation6 + $0x968] ss:$24 sps:$4 sm:$0xff]  }
 0x1bf   :  { %5722 = vmatprep.subr.bf16.mxu1 %v8370_v3  ;;  %v8442_v3 = vld [vmem:[#allocation6 + $0x99c] ss:$24 sps:$4 sm:$0xff]  }
 0x1c0   :  { %5957 = vmatpush1.bf16.msra.mxu0 %v8335_v12  ;;  %v8407_v12 = vld [vmem:[#allocation6 + $0x280] ss:$24 sps:$4 sm:$0xff]  }
 0x1c1   :  { %5958 = vmatprep.subr.bf16.mxu0 %v8343_v5  ;;  %v8415_v5 = vld [vmem:[#allocation6 + $0x2b4] ss:$24 sps:$4 sm:$0xff]  }
 0x1c2   :  { %5723 = vmatpush1.bf16.msra.mxu1 %v8368_v6  ;;  %v8440_v6 = vld [vmem:[#allocation6 + $0x998] ss:$24 sps:$4 sm:$0xff]  }
 0x1c3   :  { %5724 = vmatprep.subr.bf16.mxu1 %v8376_v8  ;;  %v8448_v8 = vld [vmem:[#allocation6 + $0x9cc] ss:$24 sps:$4 sm:$0xff]  }
 0x1c4   :  { %5959 = vmatpush1.bf16.msra.mxu0 %v8341_v33  ;;  %v8413_v33 = vld [vmem:[#allocation6 + $0x2b0] ss:$24 sps:$4 sm:$0xff]  }
 0x1c5   :  { %5960 = vmatprep.subr.bf16.mxu0 %v8349_v9  ;;  %v8421_v9 = vld [vmem:[#allocation6 + $0x2e4] ss:$24 sps:$4 sm:$0xff]  }
 0x1c6   :  { %5725 = vmatpush1.bf16.msra.mxu1 %v8374_v10  ;;  %v8446_v10 = vld [vmem:[#allocation6 + $0x9c8] ss:$24 sps:$4 sm:$0xff]  }
 0x1c7   :  { %5726 = vmatprep.subr.bf16.mxu1 %v8382_v11  ;;  %v8454_v11 = vld [vmem:[#allocation6 + $0x9fc] ss:$24 sps:$4 sm:$0xff]  }
 0x1c8   :  { %5961 = vmatpush1.bf16.msra.mxu0 %v8347_v14  ;;  %v8419_v14 = vld [vmem:[#allocation6 + $0x2e0] ss:$24 sps:$4 sm:$0xff]  }
 0x1c9   :  { %5962 = vmatprep.subr.bf16.mxu0 %v8355_v15  ;;  %v8427_v15 = vld [vmem:[#allocation6 + $0x314] ss:$24 sps:$4 sm:$0xff]  }
 0x1ca   :  { %5727 = vmatpush1.bf16.msra.mxu1 %v8380_v19  ;;  %v8452_v19 = vld [vmem:[#allocation6 + $0x9f8] ss:$24 sps:$4 sm:$0xff]  }
 0x1cb   :  { %5728 = vmatprep.subr.bf16.mxu1 %v8388_v21  ;;  %v8460_v21 = vld [vmem:[#allocation6 + $0xa2c] ss:$24 sps:$4 sm:$0xff]  }
 0x1cc   :  { %5963 = vmatpush1.bf16.msra.mxu0 %v8353_v23 }
 0x1cd   :  { %5964 = vmatprep.subr.bf16.mxu0 %v8361_v25 }
 0x1ce   :  { %5729 = vmatpush1.bf16.msra.mxu1 %v8386_v17  ;;  %v8425_v17 = vld [vmem:[#allocation6 + $0x310] ss:$24 sps:$4 sm:$0xff]  }
 0x1cf   :  { %5730 = vmatprep.subr.bf16.mxu1 %v8394_v22 }
 0x1d0   :  { %5965 = vmatpush1.bf16.msra.mxu0 %v8359_v26  ;;  %v8458_v26 = vld [vmem:[#allocation6 + $0xa28] ss:$24 sps:$4 sm:$0xff]  }
 0x1d1   :  { %5966 = vmatprep.subr.bf16.mxu0 %v8367_v27  ;;  %v8433_v27 = vld [vmem:[#allocation6 + $0x344] ss:$24 sps:$4 sm:$0xff]  }
 0x1d2   :  { %5731 = vmatpush1.bf16.msra.mxu1 %v8392_v28 }
 0x1d3   :  { %5732 = vmatprep.subr.bf16.mxu1 %v8400_v29  ;;  %v8466_v29 = vld [vmem:[#allocation6 + $0xa5c] ss:$24 sps:$4 sm:$0xff]  }
 0x1d4   :  { %5967 = vmatpush1.bf16.msra.mxu0 %v8365_v31  ;;  %v8431_v31 = vld [vmem:[#allocation6 + $0x340] ss:$24 sps:$4 sm:$0xff]  }
 0x1d5   :  { %5968 = vmatprep.subr.bf16.mxu0 %v8373_v32  ;;  %v8439_v32 = vld [vmem:[#allocation6 + $0x374] ss:$24 sps:$4 sm:$0xff]  }
 0x1d6   :  { %5733 = vmatpush1.bf16.msra.mxu1 %v8398_v35  ;;  %v8464_v35 = vld [vmem:[#allocation6 + $0xa58] ss:$24 sps:$4 sm:$0xff]  }
 0x1d7   :  { %5734 = vmatprep.subr.bf16.mxu1 %v8406_v36  ;;  %v8472_v36 = vld [vmem:[#allocation6 + $0xa8c] ss:$24 sps:$4 sm:$0xff]  }
 0x1d8   :  { %5969 = vmatpush1.bf16.msra.mxu0 %v8371_v37  ;;  %v8437_v37 = vld [vmem:[#allocation6 + $0x370] ss:$24 sps:$4 sm:$0xff]  }
 0x1d9   :  { %5970 = vmatprep.subr.bf16.mxu0 %v8379_v39  ;;  %v8445_v39 = vld [vmem:[#allocation6 + $0x3a4] ss:$24 sps:$4 sm:$0xff]  }
 0x1da   :  { %5735 = vmatpush1.bf16.msra.mxu1 %v8404_v54  ;;  %v8470_v54 = vld [vmem:[#allocation6 + $0xa88] ss:$24 sps:$4 sm:$0xff]  }
 0x1db   :  { %5736 = vmatprep.subr.bf16.mxu1 %v8412_v41  ;;  %v8478_v41 = vld [vmem:[#allocation6 + $0xabc] ss:$24 sps:$4 sm:$0xff]  }
 0x1dc   :  { %5971 = vmatpush1.bf16.msra.mxu0 %v8377_v42  ;;  %v8451_v42 = vld [vmem:[#allocation6 + $0x3d4] ss:$24 sps:$4 sm:$0xff]  }
 0x1dd   :  { %5972 = vmatprep.subr.bf16.mxu0 %v8385_v2  ;;  %v8476_v2 = vld [vmem:[#allocation6 + $0xab8] ss:$24 sps:$4 sm:$0xff]  }
 0x1de   :  { %5737 = vmatpush1.bf16.msra.mxu1 %v8410_v44  ;;  %v8484_v44 = vld [vmem:[#allocation6 + $0xaec] ss:$24 sps:$4 sm:$0xff]  }
 0x1df   :  { %5738 = vmatprep.subr.bf16.mxu1 %v8418_v46  ;;  %v8449_v46 = vld [vmem:[#allocation6 + $0x3d0] ss:$24 sps:$4 sm:$0xff]  }
 0x1e0   :  { %5973 = vmatpush1.bf16.msra.mxu0 %v8383_v47  ;;  %v8457_v47 = vld [vmem:[#allocation6 + $0x404] ss:$24 sps:$4 sm:$0xff]  }
 0x1e1   :  { %5974 = vmatprep.subr.bf16.mxu0 %v8391_v53  ;;  %v8490_v53 = vld [vmem:[#allocation6 + $0xb1c] ss:$24 sps:$4 sm:$0xff]  }
 0x1e2   :  { %5739 = vmatpush1.bf16.msra.mxu1 %v8416_v4  ;;  %v8455_v4 = vld [vmem:[#allocation6 + $0x400] ss:$24 sps:$4 sm:$0xff]  }
 0x1e3   :  { %5749 = vmatprep.subr.bf16.mxu1 %v8424_v48  ;;  %v8488_v48 = vld [vmem:[#allocation6 + $0xb18] ss:$24 sps:$4 sm:$0xff]  }
 0x1e4   :  { %5975 = vmatpush1.bf16.msra.mxu0 %v8389_v50  ;;  %v8463_v50 = vld [vmem:[#allocation6 + $0x434] ss:$24 sps:$4 sm:$0xff]  }
 0x1e5   :  { %5741 = vmatmul.mubr.bf16.vlgmr.msra.gmra.mrb[4].mxu1 %v9435_v38  ;;  %5976 = vmatprep.subr.bf16.mxu0 %v8397_v52  ;;  %v8496_v52 = vld [vmem:[#allocation6 + $0xb4c] ss:$24 sps:$4 sm:$0xff]  }
 0x1e6   :  { %5750 = vmatpush1.bf16.msra.mxu1 %v8422_v55  ;;  %5781 = vmatprep.mubr.bf16.mxu1 %v9376_v18  ;;  %v8461_v55 = vld [vmem:[#allocation6 + $0x430] ss:$24 sps:$4 sm:$0xff]  }
 0x1e7   :  { %5751 = vmatprep.subr.bf16.mxu1 %v8430_v56  ;;  %v8494_v56 = vld [vmem:[#allocation6 + $0xb48] ss:$24 sps:$4 sm:$0xff]  }
 0x1e8   :  { %5977 = vmatpush1.bf16.msra.mxu0 %v8395_v57  ;;  %v8469_v57 = vld [vmem:[#allocation6 + $0x464] ss:$24 sps:$4 sm:$0xff]  }
 0x1e9   :  { %5978 = vmatprep.subr.bf16.mxu0 %v8403_v58  ;;  %v8502_v58 = vld [vmem:[#allocation6 + $0xb7c] ss:$24 sps:$4 sm:$0xff]  }
 0x1ea   :  { %5752 = vmatpush1.bf16.msra.mxu1 %v8428_v59  ;;  %v8467_v59 = vld [vmem:[#allocation6 + $0x460] ss:$24 sps:$4 sm:$0xff]  }
 0x1eb   :  { %5753 = vmatprep.subr.bf16.mxu1 %v8436_v61  ;;  %v8500_v61 = vld [vmem:[#allocation6 + $0xb78] ss:$24 sps:$4 sm:$0xff]  }
 0x1ec   :  { %5979 = vmatpush1.bf16.msra.mxu0 %v8401_v62  ;;  %v8475_v62 = vld [vmem:[#allocation6 + $0x494] ss:$24 sps:$4 sm:$0xff]  }
 0x1ed   :  { %5980 = vmatprep.subr.bf16.mxu0 %v8409_v0  ;;  %v8508_v0 = vld [vmem:[#allocation6 + $0xbac] ss:$24 sps:$4 sm:$0xff]  }
 0x1ee   :  { %5754 = vmatpush1.bf16.msra.mxu1 %v8434_v1  ;;  %v8473_v1 = vld [vmem:[#allocation6 + $0x490] ss:$24 sps:$4 sm:$0xff]  }
 0x1ef   :  { %5755 = vmatprep.subr.bf16.mxu1 %v8442_v3  ;;  %v8506_v3 = vld [vmem:[#allocation6 + $0xba8] ss:$24 sps:$4 sm:$0xff]  }
 0x1f0   :  { %5981 = vmatpush1.bf16.msra.mxu0 %v8407_v12  ;;  %v8481_v12 = vld [vmem:[#allocation6 + $0x4c4] ss:$24 sps:$4 sm:$0xff]  }
 0x1f1   :  { %5982 = vmatprep.subr.bf16.mxu0 %v8415_v5  ;;  %v8514_v5 = vld [vmem:[#allocation6 + $0xbdc] ss:$24 sps:$4 sm:$0xff]  }
 0x1f2   :  { %5756 = vmatpush1.bf16.msra.mxu1 %v8440_v6  ;;  %v8479_v6 = vld [vmem:[#allocation6 + $0x4c0] ss:$24 sps:$4 sm:$0xff]  }
 0x1f3   :  { %5757 = vmatprep.subr.bf16.mxu1 %v8448_v8  ;;  %v8512_v8 = vld [vmem:[#allocation6 + $0xbd8] ss:$24 sps:$4 sm:$0xff]  }
 0x1f4   :  { %5983 = vmatpush1.bf16.msra.mxu0 %v8413_v33  ;;  %v8487_v33 = vld [vmem:[#allocation6 + $0x4f4] ss:$24 sps:$4 sm:$0xff]  }
 0x1f5   :  { %5984 = vmatprep.subr.bf16.mxu0 %v8421_v9  ;;  %v8520_v9 = vld [vmem:[#allocation6 + $0xc0c] ss:$24 sps:$4 sm:$0xff]  }
 0x1f6   :  { %5758 = vmatpush1.bf16.msra.mxu1 %v8446_v10  ;;  %v8485_v10 = vld [vmem:[#allocation6 + $0x4f0] ss:$24 sps:$4 sm:$0xff]  }
 0x1f7   :  { %5759 = vmatprep.subr.bf16.mxu1 %v8454_v11  ;;  %v8518_v11 = vld [vmem:[#allocation6 + $0xc08] ss:$24 sps:$4 sm:$0xff]  }
 0x1f8   :  { %v9487_v23 = vpop.f32.mrb[0].mxu1  ;;  %5985 = vmatpush1.bf16.msra.mxu0 %v8419_v14  ;;  %v8493_v14 = vld [vmem:[#allocation6 + $0x524] ss:$24 sps:$4 sm:$0xff]  }
 0x1f9   :  { %v9489_v25 = vpop.f32.mrb[1].mxu1  ;;  %5995 = vmatprep.subr.bf16.mxu0 %v8427_v15  ;;  %v8526_v15 = vld [vmem:[#allocation6 + $0xc3c] ss:$24 sps:$4 sm:$0xff]  }
 0x1fa   :  { %v5418_v22 = vpop.f32.mrb[2].mxu1  ;;  %5760 = vmatpush1.bf16.msra.mxu1 %v8452_v19  ;;  %v8491_v19 = vld [vmem:[#allocation6 + $0x520] ss:$24 sps:$4 sm:$0xff]  }
 0x1fb   :  { %v5419_v28 = vpop.f32.mrb[3].mxu1  ;;  %5761 = vmatprep.subr.bf16.mxu1 %v8460_v21  ;;  %5987 = vmatmul.mubr.bf16.vlgmr.msra.gmra.mrb[4].mxu0 %v9349_v16  ;;  %v8443_v16 = vld [vmem:[#allocation6 + $0x3a0] ss:$24 sps:$4 sm:$0xff]   ;;  %v8499_v21 = vld [vmem:[#allocation6 + $0x554] ss:$24 sps:$4 sm:$0xff]  }
 0x1fc   :  { %5996 = vmatpush1.bf16.msra.mxu0 %v8425_v17  ;;  %6027 = vmatprep.mubr.bf16.mxu0 %v9356_v24  ;;  %v8482_v24 = vld [vmem:[#allocation6 + $0xae8] ss:$24 sps:$4 sm:$0xff]   ;;  %v8524_v17 = vld [vmem:[#allocation6 + $0xc38] ss:$24 sps:$4 sm:$0xff]   ;;  %v8532_v22 = vld [vmem:[#allocation6 + $0xc6c] ss:$24 sps:$4 sm:$0xff]  }
 0x1fd   :  { %5997 = vmatprep.subr.bf16.mxu0 %v8433_v27  ;;  %v8505_v27 = vld [vmem:[#allocation6 + $0x584] ss:$24 sps:$4 sm:$0xff]   ;;  %v8530_v28 = vld [vmem:[#allocation6 + $0xc68] ss:$24 sps:$4 sm:$0xff]  }
 0x1fe   :  { %5762 = vmatpush1.bf16.msra.mxu1 %v8458_v26  ;;  %v8497_v26 = vld [vmem:[#allocation6 + $0x550] ss:$24 sps:$4 sm:$0xff]  }
 0x1ff   :  { %5763 = vmatprep.subr.bf16.mxu1 %v8466_v29  ;;  %v8538_v29 = vld [vmem:[#allocation6 + $0xc9c] ss:$24 sps:$4 sm:$0xff]  }
 0x200   :  { %5998 = vmatpush1.bf16.msra.mxu0 %v8431_v31  ;;  %v8503_v31 = vld [vmem:[#allocation6 + $0x580] ss:$24 sps:$4 sm:$0xff]  }
 0x201   :  { %5999 = vmatprep.subr.bf16.mxu0 %v8439_v32  ;;  %v8511_v32 = vld [vmem:[#allocation6 + $0x5b4] ss:$24 sps:$4 sm:$0xff]  }
 0x202   :  { %5764 = vmatpush1.bf16.msra.mxu1 %v8464_v35  ;;  %v8536_v35 = vld [vmem:[#allocation6 + $0xc98] ss:$24 sps:$4 sm:$0xff]  }
 0x203   :  { %5765 = vmatprep.subr.bf16.mxu1 %v8472_v36  ;;  %v8544_v36 = vld [vmem:[#allocation6 + $0xccc] ss:$24 sps:$4 sm:$0xff]  }
 0x204   :  { %6000 = vmatpush1.bf16.msra.mxu0 %v8437_v37  ;;  %v8509_v37 = vld [vmem:[#allocation6 + $0x5b0] ss:$24 sps:$4 sm:$0xff]  }
 0x205   :  { %6001 = vmatprep.subr.bf16.mxu0 %v8445_v39  ;;  %v8517_v39 = vld [vmem:[#allocation6 + $0x5e4] ss:$24 sps:$4 sm:$0xff]  }
 0x206   :  { %5766 = vmatpush1.bf16.msra.mxu1 %v8470_v54  ;;  %v8542_v54 = vld [vmem:[#allocation6 + $0xcc8] ss:$24 sps:$4 sm:$0xff]  }
 0x207   :  { %5767 = vmatprep.subr.bf16.mxu1 %v8478_v41  ;;  %v8550_v41 = vld [vmem:[#allocation6 + $0xcfc] ss:$24 sps:$4 sm:$0xff]  }
 0x208   :  { %6002 = vmatpush1.bf16.msra.mxu0 %v8443_v16  ;;  %v8515_v16 = vld [vmem:[#allocation6 + $0x5e0] ss:$24 sps:$4 sm:$0xff]  }
 0x209   :  { %6003 = vmatprep.subr.bf16.mxu0 %v8451_v42  ;;  %v8523_v42 = vld [vmem:[#allocation6 + $0x614] ss:$24 sps:$4 sm:$0xff]  }
 0x20a   :  { %5768 = vmatpush1.bf16.msra.mxu1 %v8476_v2  ;;  %v8548_v2 = vld [vmem:[#allocation6 + $0xcf8] ss:$24 sps:$4 sm:$0xff]  }
 0x20b   :  { %5769 = vmatprep.subr.bf16.mxu1 %v8484_v44  ;;  %v8556_v44 = vld [vmem:[#allocation6 + $0xd2c] ss:$24 sps:$4 sm:$0xff]  }
 0x20c   :  { %6004 = vmatpush1.bf16.msra.mxu0 %v8449_v46  ;;  %v8521_v46 = vld [vmem:[#allocation6 + $0x610] ss:$24 sps:$4 sm:$0xff]  }
 0x20d   :  { %6005 = vmatprep.subr.bf16.mxu0 %v8457_v47  ;;  %v8529_v47 = vld [vmem:[#allocation6 + $0x644] ss:$24 sps:$4 sm:$0xff]  }
 0x20e   :  { %5770 = vmatpush1.bf16.msra.mxu1 %v8482_v24  ;;  %v8554_v24 = vld [vmem:[#allocation6 + $0xd28] ss:$24 sps:$4 sm:$0xff]  }
 0x20f   :  { %5771 = vmatprep.subr.bf16.mxu1 %v8490_v53  ;;  %v8562_v53 = vld [vmem:[#allocation6 + $0xd5c] ss:$24 sps:$4 sm:$0xff]  }
 0x210   :  { %6006 = vmatpush1.bf16.msra.mxu0 %v8455_v4  ;;  %v8527_v4 = vld [vmem:[#allocation6 + $0x640] ss:$24 sps:$4 sm:$0xff]  }
 0x211   :  { %6007 = vmatprep.subr.bf16.mxu0 %v8463_v50  ;;  %v8560_v50 = vld [vmem:[#allocation6 + $0xd58] ss:$24 sps:$4 sm:$0xff]  }
 0x212   :  { %5772 = vmatpush1.bf16.msra.mxu1 %v8488_v48  ;;  %v8535_v48 = vld [vmem:[#allocation6 + $0x674] ss:$24 sps:$4 sm:$0xff]  }
 0x213   :  { %5773 = vmatprep.subr.bf16.mxu1 %v8496_v52  ;;  %v8568_v52 = vld [vmem:[#allocation6 + $0xd8c] ss:$24 sps:$4 sm:$0xff]  }
 0x214   :  { %6008 = vmatpush1.bf16.msra.mxu0 %v8461_v55  ;;  %v8533_v55 = vld [vmem:[#allocation6 + $0x670] ss:$24 sps:$4 sm:$0xff]  }
 0x215   :  { %6009 = vmatprep.subr.bf16.mxu0 %v8469_v57  ;;  %v8566_v57 = vld [vmem:[#allocation6 + $0xd88] ss:$24 sps:$4 sm:$0xff]  }
 0x216   :  { %5774 = vmatpush1.bf16.msra.mxu1 %v8494_v56  ;;  %v8541_v56 = vld [vmem:[#allocation6 + $0x6a4] ss:$24 sps:$4 sm:$0xff]  }
 0x217   :  { %5775 = vmatprep.subr.bf16.mxu1 %v8502_v58  ;;  %v8574_v58 = vld [vmem:[#allocation6 + $0xdbc] ss:$24 sps:$4 sm:$0xff]  }
 0x218   :  { %6010 = vmatpush1.bf16.msra.mxu0 %v8467_v59  ;;  %v8547_v59 = vld [vmem:[#allocation6 + $0x6d4] ss:$24 sps:$4 sm:$0xff]  }
 0x219   :  { %6011 = vmatprep.subr.bf16.mxu0 %v8475_v62  ;;  %v8580_v62 = vld [vmem:[#allocation6 + $0xdec] ss:$24 sps:$4 sm:$0xff]  }
 0x21a   :  { %5776 = vmatpush1.bf16.msra.mxu1 %v8500_v61  ;;  %v8572_v61 = vld [vmem:[#allocation6 + $0xdb8] ss:$24 sps:$4 sm:$0xff]  }
 0x21b   :  { %5777 = vmatprep.subr.bf16.mxu1 %v8508_v0  ;;  %v8545_v0 = vld [vmem:[#allocation6 + $0x6d0] ss:$24 sps:$4 sm:$0xff]  }
 0x21c   :  { %6012 = vmatpush1.bf16.msra.mxu0 %v8473_v1  ;;  %v8553_v1 = vld [vmem:[#allocation6 + $0x704] ss:$24 sps:$4 sm:$0xff]  }
 0x21d   :  { %6013 = vmatprep.subr.bf16.mxu0 %v8481_v12  ;;  %v8551_v12 = vld [vmem:[#allocation6 + $0x700] ss:$24 sps:$4 sm:$0xff]  }
 0x21e   :  { %5778 = vmatpush1.bf16.msra.mxu1 %v8506_v3  ;;  %v8586_v3 = vld [vmem:[#allocation6 + $0xe1c] ss:$24 sps:$4 sm:$0xff]  }
 0x21f   :  { %5779 = vmatprep.subr.bf16.mxu1 %v8514_v5  ;;  %v8584_v5 = vld [vmem:[#allocation6 + $0xe18] ss:$24 sps:$4 sm:$0xff]  }
 0x220   :  { %6014 = vmatpush1.bf16.msra.mxu0 %v8479_v6  ;;  %v8559_v6 = vld [vmem:[#allocation6 + $0x734] ss:$24 sps:$4 sm:$0xff]  }
 0x221   :  { %6015 = vmatprep.subr.bf16.mxu0 %v8487_v33  ;;  %v8557_v33 = vld [vmem:[#allocation6 + $0x730] ss:$24 sps:$4 sm:$0xff]  }
 0x222   :  { %5780 = vmatpush1.bf16.msra.mxu1 %v8512_v8  ;;  %v8592_v8 = vld [vmem:[#allocation6 + $0xe4c] ss:$24 sps:$4 sm:$0xff]  }
 0x223   :  { %5790 = vmatprep.subr.bf16.mxu1 %v8520_v9  ;;  %v8590_v9 = vld [vmem:[#allocation6 + $0xe48] ss:$24 sps:$4 sm:$0xff]  }
 0x224   :  { %6016 = vmatpush1.bf16.msra.mxu0 %v8485_v10  ;;  %v8565_v10 = vld [vmem:[#allocation6 + $0x764] ss:$24 sps:$4 sm:$0xff]  }
 0x225   :  { %5782 = vmatmul.mubr.bf16.vlgmr.msra.gmra.mrb[4].mxu1 %v9374_v7  ;;  %6017 = vmatprep.subr.bf16.mxu0 %v8493_v14  ;;  %v8563_v14 = vld [vmem:[#allocation6 + $0x760] ss:$24 sps:$4 sm:$0xff]  }
 0x226   :  { %5791 = vmatpush1.bf16.msra.mxu1 %v8518_v11  ;;  %5822 = vmatprep.mubr.bf16.mxu1 %v9397_v51  ;;  %v8598_v11 = vld [vmem:[#allocation6 + $0xe7c] ss:$24 sps:$4 sm:$0xff]  }
 0x227   :  { %5792 = vmatprep.subr.bf16.mxu1 %v8526_v15  ;;  %v8596_v15 = vld [vmem:[#allocation6 + $0xe78] ss:$24 sps:$4 sm:$0xff]  }
 0x228   :  { %6018 = vmatpush1.bf16.msra.mxu0 %v8491_v19  ;;  %v8571_v19 = vld [vmem:[#allocation6 + $0x794] ss:$24 sps:$4 sm:$0xff]  }
 0x229   :  { %6019 = vmatprep.subr.bf16.mxu0 %v8499_v21  ;;  %v8604_v21 = vld [vmem:[#allocation6 + $0xeac] ss:$24 sps:$4 sm:$0xff]  }
 0x22a   :  { %5793 = vmatpush1.bf16.msra.mxu1 %v8524_v17  ;;  %v8569_v17 = vld [vmem:[#allocation6 + $0x790] ss:$24 sps:$4 sm:$0xff]  }
 0x22b   :  { %5794 = vmatprep.subr.bf16.mxu1 %v8532_v22  ;;  %v8602_v22 = vld [vmem:[#allocation6 + $0xea8] ss:$24 sps:$4 sm:$0xff]  }
 0x22c   :  { %6020 = vmatpush1.bf16.msra.mxu0 %v8497_v26  ;;  %v8577_v26 = vld [vmem:[#allocation6 + $0x7c4] ss:$24 sps:$4 sm:$0xff]  }
 0x22d   :  { %6021 = vmatprep.subr.bf16.mxu0 %v8505_v27  ;;  %v8610_v27 = vld [vmem:[#allocation6 + $0xedc] ss:$24 sps:$4 sm:$0xff]  }
 0x22e   :  { %5795 = vmatpush1.bf16.msra.mxu1 %v8530_v28  ;;  %v8575_v28 = vld [vmem:[#allocation6 + $0x7c0] ss:$24 sps:$4 sm:$0xff]  }
 0x22f   :  { %5796 = vmatprep.subr.bf16.mxu1 %v8538_v29  ;;  %v8608_v29 = vld [vmem:[#allocation6 + $0xed8] ss:$24 sps:$4 sm:$0xff]  }
 0x230   :  { %6022 = vmatpush1.bf16.msra.mxu0 %v8503_v31  ;;  %v8583_v31 = vld [vmem:[#allocation6 + $0x7f4] ss:$24 sps:$4 sm:$0xff]  }
 0x231   :  { %6023 = vmatprep.subr.bf16.mxu0 %v8511_v32  ;;  %v8616_v32 = vld [vmem:[#allocation6 + $0xf0c] ss:$24 sps:$4 sm:$0xff]  }
 0x232   :  { %5797 = vmatpush1.bf16.msra.mxu1 %v8536_v35  ;;  %v8581_v35 = vld [vmem:[#allocation6 + $0x7f0] ss:$24 sps:$4 sm:$0xff]  }
 0x233   :  { %5798 = vmatprep.subr.bf16.mxu1 %v8544_v36  ;;  %v8614_v36 = vld [vmem:[#allocation6 + $0xf08] ss:$24 sps:$4 sm:$0xff]  }
 0x234   :  { %6024 = vmatpush1.bf16.msra.mxu0 %v8509_v37  ;;  %v8589_v37 = vld [vmem:[#allocation6 + $0x824] ss:$24 sps:$4 sm:$0xff]  }
 0x235   :  { %6025 = vmatprep.subr.bf16.mxu0 %v8517_v39  ;;  %v8622_v39 = vld [vmem:[#allocation6 + $0xf3c] ss:$24 sps:$4 sm:$0xff]  }
 0x236   :  { %5799 = vmatpush1.bf16.msra.mxu1 %v8542_v54  ;;  %v8587_v54 = vld [vmem:[#allocation6 + $0x820] ss:$24 sps:$4 sm:$0xff]  }
 0x237   :  { %5800 = vmatprep.subr.bf16.mxu1 %v8550_v41  ;;  %v8620_v41 = vld [vmem:[#allocation6 + $0xf38] ss:$24 sps:$4 sm:$0xff]  }
 0x238   :  { %6026 = vmatpush1.bf16.msra.mxu0 %v8515_v16  ;;  %v8595_v16 = vld [vmem:[#allocation6 + $0x854] ss:$24 sps:$4 sm:$0xff]  }
 0x239   :  { %6036 = vmatprep.subr.bf16.mxu0 %v8523_v42  ;;  %v8628_v42 = vld [vmem:[#allocation6 + $0xf6c] ss:$24 sps:$4 sm:$0xff]  }
 0x23a   :  { %5801 = vmatpush1.bf16.msra.mxu1 %v8548_v2  ;;  %v8593_v2 = vld [vmem:[#allocation6 + $0x850] ss:$24 sps:$4 sm:$0xff]  }
 0x23b   :  { %5802 = vmatprep.subr.bf16.mxu1 %v8556_v44  ;;  %6028 = vmatmul.mubr.bf16.vlgmr.msra.gmra.mrb[4].mxu0 %v9408_v60  ;;  %v8539_v60 = vld [vmem:[#allocation6 + $0x6a0] ss:$24 sps:$4 sm:$0xff]  }
 0x23c   :  { %6037 = vmatpush1.bf16.msra.mxu0 %v8521_v46  ;;  %6068 = vmatprep.mubr.bf16.mxu0 %v9410_v63  ;;  %v8578_v63 = vld [vmem:[#allocation6 + $0xde8] ss:$24 sps:$4 sm:$0xff]   ;;  %v8601_v46 = vld [vmem:[#allocation6 + $0x884] ss:$24 sps:$4 sm:$0xff]  }
 0x23d   :  { %6038 = vmatprep.subr.bf16.mxu0 %v8529_v47  ;;  %v8626_v44 = vld [vmem:[#allocation6 + $0xf68] ss:$24 sps:$4 sm:$0xff]   ;;  %v8634_v47 = vld [vmem:[#allocation6 + $0xf9c] ss:$24 sps:$4 sm:$0xff]  }
 0x23e   :  { %5803 = vmatpush1.bf16.msra.mxu1 %v8554_v24  ;;  %v8599_v24 = vld [vmem:[#allocation6 + $0x880] ss:$24 sps:$4 sm:$0xff]  }
 0x23f   :  { %5804 = vmatprep.subr.bf16.mxu1 %v8562_v53  ;;  %v8632_v53 = vld [vmem:[#allocation6 + $0xf98] ss:$24 sps:$4 sm:$0xff]  }
 0x240   :  { %6039 = vmatpush1.bf16.msra.mxu0 %v8527_v4  ;;  %v8607_v4 = vld [vmem:[#allocation6 + $0x8b4] ss:$24 sps:$4 sm:$0xff]  }
 0x241   :  { %6040 = vmatprep.subr.bf16.mxu0 %v8535_v48  ;;  %v8640_v48 = vld [vmem:[#allocation6 + $0xfcc] ss:$24 sps:$4 sm:$0xff]  }
 0x242   :  { %5805 = vmatpush1.bf16.msra.mxu1 %v8560_v50  ;;  %v8605_v50 = vld [vmem:[#allocation6 + $0x8b0] ss:$24 sps:$4 sm:$0xff]  }
 0x243   :  { %5806 = vmatprep.subr.bf16.mxu1 %v8568_v52  ;;  %v8638_v52 = vld [vmem:[#allocation6 + $0xfc8] ss:$24 sps:$4 sm:$0xff]  }
 0x244   :  { %6041 = vmatpush1.bf16.msra.mxu0 %v8533_v55  ;;  %v8613_v55 = vld [vmem:[#allocation6 + $0x8e4] ss:$24 sps:$4 sm:$0xff]  }
 0x245   :  { %6042 = vmatprep.subr.bf16.mxu0 %v8541_v56  ;;  %v8646_v56 = vld [vmem:[#allocation6 + $0xffc] ss:$24 sps:$4 sm:$0xff]  }
 0x246   :  { %5807 = vmatpush1.bf16.msra.mxu1 %v8566_v57  ;;  %v8611_v57 = vld [vmem:[#allocation6 + $0x8e0] ss:$24 sps:$4 sm:$0xff]  }
 0x247   :  { %5808 = vmatprep.subr.bf16.mxu1 %v8574_v58  ;;  %v8644_v58 = vld [vmem:[#allocation6 + $0xff8] ss:$24 sps:$4 sm:$0xff]  }
 0x248   :  { %6043 = vmatpush1.bf16.msra.mxu0 %v8539_v60  ;;  %v8619_v60 = vld [vmem:[#allocation6 + $0x914] ss:$24 sps:$4 sm:$0xff]  }
 0x249   :  { %6044 = vmatprep.subr.bf16.mxu0 %v8547_v59  ;;  %v8652_v59 = vld [vmem:[#allocation6 + $0x102c] ss:$24 sps:$4 sm:$0xff]  }
 0x24a   :  { %5809 = vmatpush1.bf16.msra.mxu1 %v8572_v61  ;;  %v8617_v61 = vld [vmem:[#allocation6 + $0x910] ss:$24 sps:$4 sm:$0xff]  }
 0x24b   :  { %5810 = vmatprep.subr.bf16.mxu1 %v8580_v62  ;;  %v8650_v62 = vld [vmem:[#allocation6 + $0x1028] ss:$24 sps:$4 sm:$0xff]  }
 0x24c   :  { %6045 = vmatpush1.bf16.msra.mxu0 %v8545_v0  ;;  %v8625_v0 = vld [vmem:[#allocation6 + $0x944] ss:$24 sps:$4 sm:$0xff]  }
 0x24d   :  { %6046 = vmatprep.subr.bf16.mxu0 %v8553_v1  ;;  %v8623_v1 = vld [vmem:[#allocation6 + $0x940] ss:$24 sps:$4 sm:$0xff]  }
 0x24e   :  { %5811 = vmatpush1.bf16.msra.mxu1 %v8578_v63  ;;  %v8658_v63 = vld [vmem:[#allocation6 + $0x105c] ss:$24 sps:$4 sm:$0xff]  }
 0x24f   :  { %5812 = vmatprep.subr.bf16.mxu1 %v8586_v3  ;;  %v8656_v3 = vld [vmem:[#allocation6 + $0x1058] ss:$24 sps:$4 sm:$0xff]  }
 0x250   :  { %6047 = vmatpush1.bf16.msra.mxu0 %v8551_v12  ;;  %v8631_v12 = vld [vmem:[#allocation6 + $0x974] ss:$24 sps:$4 sm:$0xff]  }
 0x251   :  { %6048 = vmatprep.subr.bf16.mxu0 %v8559_v6  ;;  %v8629_v6 = vld [vmem:[#allocation6 + $0x970] ss:$24 sps:$4 sm:$0xff]  }
 0x252   :  { %5813 = vmatpush1.bf16.msra.mxu1 %v8584_v5  ;;  %v8664_v5 = vld [vmem:[#allocation6 + $0x108c] ss:$24 sps:$4 sm:$0xff]  }
 0x253   :  { %5814 = vmatprep.subr.bf16.mxu1 %v8592_v8  ;;  %v8662_v8 = vld [vmem:[#allocation6 + $0x1088] ss:$24 sps:$4 sm:$0xff]  }
 0x254   :  { %6049 = vmatpush1.bf16.msra.mxu0 %v8557_v33  ;;  %v8637_v33 = vld [vmem:[#allocation6 + $0x9a4] ss:$24 sps:$4 sm:$0xff]  }
 0x255   :  { %6050 = vmatprep.subr.bf16.mxu0 %v8565_v10  ;;  %v8668_v10 = vld [vmem:[#allocation6 + $0x10b8] ss:$24 sps:$4 sm:$0xff]  }
 0x256   :  { %5815 = vmatpush1.bf16.msra.mxu1 %v8590_v9  ;;  %v8670_v9 = vld [vmem:[#allocation6 + $0x10bc] ss:$24 sps:$4 sm:$0xff]  }
 0x257   :  { %5816 = vmatprep.subr.bf16.mxu1 %v8598_v11  ;;  %v1430_v11 = vsub.s32 0, %v9332_v49 }
 0x258   :  { %6051 = vmatpush1.bf16.msra.mxu0 %v8563_v14  ;;  %v8643_v14 = vld [vmem:[#allocation6 + $0x9d4] ss:$24 sps:$4 sm:$0xff]  }
 0x259   :  { %6052 = vmatprep.subr.bf16.mxu0 %v8571_v19  ;;  %v1426_v19 = vld [vmem:[#allocation8] sm:$0x3f] }
 0x25a   :  { %5817 = vmatpush1.bf16.msra.mxu1 %v8596_v15  ;;  %v8676_v15 = vld [vmem:[#allocation6 + $0x10ec] ss:$24 sps:$4 sm:$0xff]  }
 0x25b   :  { %5818 = vmatprep.subr.bf16.mxu1 %v8604_v21  ;;  %v8641_v21 = vld [vmem:[#allocation6 + $0x9d0] ss:$24 sps:$4 sm:$0xff]  }
 0x25c   :  { %6053 = vmatpush1.bf16.msra.mxu0 %v8569_v17  ;;  %v8674_v17 = vld [vmem:[#allocation6 + $0x10e8] ss:$24 sps:$4 sm:$0xff]  }
 0x25d   :  { %6054 = vmatprep.subr.bf16.mxu0 %v8577_v26  ;;  %v8649_v26 = vld [vmem:[#allocation6 + $0xa04] ss:$24 sps:$4 sm:$0xff]  }
 0x25e   :  { %5819 = vmatpush1.bf16.msra.mxu1 %v8602_v22  ;;  %v1431_v22 = vrot.slane %v1426_v19, %v1430_v11  ;;  %v8736_v11 = vld [vmem:[#allocation6 + $0x12cc] ss:$24 sps:$4 sm:$0xff]  }
 0x25f   :  { %5820 = vmatprep.subr.bf16.mxu1 %v8610_v27  ;;  %v8682_v27 = vld [vmem:[#allocation6 + $0x111c] ss:$24 sps:$4 sm:$0xff]  }
 0x260   :  { %6055 = vmatpush1.bf16.msra.mxu0 %v8575_v28 }
 0x261   :  { %6056 = vmatprep.subr.bf16.mxu0 %v8583_v31  ;;  %v8680_v31 = vld [vmem:[#allocation6 + $0x1118] ss:$24 sps:$4 sm:$0xff]  }
 0x262   :  { %5821 = vmatpush1.bf16.msra.mxu1 %v8608_v29  ;;  %v8647_v29 = vld [vmem:[#allocation6 + $0xa00] ss:$24 sps:$4 sm:$0xff]  }
 0x263   :  { %5831 = vmatprep.subr.bf16.mxu1 %v8616_v32  ;;  %v7744_v32 = vadd.f32 %v9487_v23, %v1431_v22  ;;  %v8661_v23 = vld [vmem:[#allocation6 + $0xa64] ss:$24 sps:$4 sm:$0xff]   ;;  %v8715_v22 = vld [vmem:[#allocation6 + $0xc14] ss:$24 sps:$4 sm:$0xff]  }
 0x264   :  { %6057 = vmatpush1.bf16.msra.mxu0 %v8581_v35  ;;  %v8655_v35 = vld [vmem:[#allocation6 + $0xa34] ss:$24 sps:$4 sm:$0xff]  }
 0x265   :  { %5823 = vmatmul.mubr.bf16.vlgmr.msra.gmra.mrb[4].mxu1 %v9423_v30  ;;  %6058 = vmatprep.subr.bf16.mxu0 %v8589_v37 }
 0x266   :  { %5832 = vmatpush1.bf16.msra.mxu1 %v8614_v36  ;;  %5863 = vmatprep.mubr.bf16.mxu1 %v9425_v34  ;;  %v8688_v36 = vld [vmem:[#allocation6 + $0x114c] ss:$24 sps:$4 sm:$0xff]  }
 0x267   :  { %5833 = vmatprep.subr.bf16.mxu1 %v8622_v39 }
 0x268   :  { %6059 = vmatpush1.bf16.msra.mxu0 %v8587_v54 }
 0x269   :  { %6060 = vmatprep.subr.bf16.mxu0 %v8595_v16 }
 0x26a   :  { %5834 = vmatpush1.bf16.msra.mxu1 %v8620_v41 }
 0x26b   :  { %5835 = vmatprep.subr.bf16.mxu1 %v8628_v42 }
 0x26c   :  { %6061 = vmatpush1.bf16.msra.mxu0 %v8593_v2  ;;  %v8653_v2 = vld [vmem:[#allocation6 + $0xa30] ss:$24 sps:$4 sm:$0xff]  }
 0x26d   :  { %6062 = vmatprep.subr.bf16.mxu0 %v8601_v46 }
 0x26e   :  { %5836 = vmatpush1.bf16.msra.mxu1 %v8626_v44  ;;  %v8686_v44 = vld [vmem:[#allocation6 + $0x1148] ss:$24 sps:$4 sm:$0xff]  }
 0x26f   :  { %5837 = vmatprep.subr.bf16.mxu1 %v8634_v47  ;;  %v8694_v47 = vld [vmem:[#allocation6 + $0x117c] ss:$24 sps:$4 sm:$0xff]  }
 0x270   :  { %6063 = vmatpush1.bf16.msra.mxu0 %v8599_v24  ;;  %v8659_v24 = vld [vmem:[#allocation6 + $0xa60] ss:$24 sps:$4 sm:$0xff]  }
 0x271   :  { %6064 = vmatprep.subr.bf16.mxu0 %v8607_v4  ;;  %v8700_v4 = vld [vmem:[#allocation6 + $0x11ac] ss:$24 sps:$4 sm:$0xff]  }
 0x272   :  { %5838 = vmatpush1.bf16.msra.mxu1 %v8632_v53  ;;  %v8667_v53 = vld [vmem:[#allocation6 + $0xa94] ss:$24 sps:$4 sm:$0xff]  }
 0x273   :  { %5839 = vmatprep.subr.bf16.mxu1 %v8640_v48  ;;  %v8665_v48 = vld [vmem:[#allocation6 + $0xa90] ss:$24 sps:$4 sm:$0xff]  }
 0x274   :  { %6065 = vmatpush1.bf16.msra.mxu0 %v8605_v50  ;;  %v8698_v50 = vld [vmem:[#allocation6 + $0x11a8] ss:$24 sps:$4 sm:$0xff]  }
 0x275   :  { %6066 = vmatprep.subr.bf16.mxu0 %v8613_v55  ;;  %v8706_v55 = vld [vmem:[#allocation6 + $0x11dc] ss:$24 sps:$4 sm:$0xff]  }
 0x276   :  { %5840 = vmatpush1.bf16.msra.mxu1 %v8638_v52  ;;  %v8673_v52 = vld [vmem:[#allocation6 + $0xac4] ss:$24 sps:$4 sm:$0xff]  }
 0x277   :  { %5841 = vmatprep.subr.bf16.mxu1 %v8646_v56  ;;  %v8671_v56 = vld [vmem:[#allocation6 + $0xac0] ss:$24 sps:$4 sm:$0xff]  }
 0x278   :  { %6067 = vmatpush1.bf16.msra.mxu0 %v8611_v57  ;;  %v8704_v57 = vld [vmem:[#allocation6 + $0x11d8] ss:$24 sps:$4 sm:$0xff]  }
 0x279   :  { %6077 = vmatprep.subr.bf16.mxu0 %v8619_v60  ;;  %v8712_v60 = vld [vmem:[#allocation6 + $0x120c] ss:$24 sps:$4 sm:$0xff]  }
 0x27a   :  { %5842 = vmatpush1.bf16.msra.mxu1 %v8644_v58  ;;  %v8679_v58 = vld [vmem:[#allocation6 + $0xaf4] ss:$24 sps:$4 sm:$0xff]  }
 0x27b   :  { %5843 = vmatprep.subr.bf16.mxu1 %v8652_v59  ;;  %6069 = vmatmul.mubr.bf16.vlgmr.msra.gmra.mrb[4].mxu0 %v9435_v38  ;;  %v8635_v38 = vld [vmem:[#allocation6 + $0x9a0] ss:$24 sps:$4 sm:$0xff]   ;;  %v8677_v59 = vld [vmem:[#allocation6 + $0xaf0] ss:$24 sps:$4 sm:$0xff]  }
 0x27c   :  { %6078 = vmatpush1.bf16.msra.mxu0 %v8617_v61  ;;  %6109 = vmatprep.mubr.bf16.mxu0 %v9376_v18  ;;  %v1434_v18 = vsub.s32 1, %v9332_v49  ;;  %v8710_v61 = vld [vmem:[#allocation6 + $0x1208] ss:$24 sps:$4 sm:$0xff]  }
 0x27d   :  { %6079 = vmatprep.subr.bf16.mxu0 %v8625_v0  ;;  %v8718_v0 = vld [vmem:[#allocation6 + $0x123c] ss:$24 sps:$4 sm:$0xff]  }
 0x27e   :  { %5844 = vmatpush1.bf16.msra.mxu1 %v8650_v62  ;;  %v1435_v28 = vrot.slane %v1426_v19, %v1434_v18  ;;  %v8685_v62 = vld [vmem:[#allocation6 + $0xb24] ss:$24 sps:$4 sm:$0xff]  }
 0x27f   :  { %5845 = vmatprep.subr.bf16.mxu1 %v8658_v63  ;;  %v8683_v63 = vld [vmem:[#allocation6 + $0xb20] ss:$24 sps:$4 sm:$0xff]   ;;  %v8709_v19 = vld [vmem:[#allocation6 + $0xbe4] ss:$24 sps:$4 sm:$0xff]  }
 0x280   :  { %6080 = vmatpush1.bf16.msra.mxu0 %v8623_v1  ;;  %v7746_v37 = vadd.f32 %v9489_v25, %v1435_v28  ;;  %v8692_v25 = vld [vmem:[#allocation6 + $0x1178] ss:$24 sps:$4 sm:$0xff]   ;;  %v8742_v18 = vld [vmem:[#allocation6 + $0x12fc] ss:$24 sps:$4 sm:$0xff]   ;;  %v8746_v28 = vld [vmem:[#allocation6 + $0x1328] ss:$24 sps:$4 sm:$0xff]  }
 0x281   :  { %6081 = vmatprep.subr.bf16.mxu0 %v8631_v12  ;;  %v8716_v1 = vld [vmem:[#allocation6 + $0x1238] ss:$24 sps:$4 sm:$0xff]   ;;  %v8724_v12 = vld [vmem:[#allocation6 + $0x126c] ss:$24 sps:$4 sm:$0xff]  }
 0x282   :  { %5846 = vmatpush1.bf16.msra.mxu1 %v8656_v3  ;;  %v8691_v3 = vld [vmem:[#allocation6 + $0xb54] ss:$24 sps:$4 sm:$0xff]  }
 0x283   :  { %5847 = vmatprep.subr.bf16.mxu1 %v8664_v5  ;;  %v8689_v5 = vld [vmem:[#allocation6 + $0xb50] ss:$24 sps:$4 sm:$0xff]  }
 0x284   :  { %6082 = vmatpush1.bf16.msra.mxu0 %v8629_v6  ;;  %v8722_v6 = vld [vmem:[#allocation6 + $0x1268] ss:$24 sps:$4 sm:$0xff]  }
 0x285   :  { %6083 = vmatprep.subr.bf16.mxu0 %v8637_v33  ;;  %v8730_v33 = vld [vmem:[#allocation6 + $0x129c] ss:$24 sps:$4 sm:$0xff]  }
 0x286   :  { %5848 = vmatpush1.bf16.msra.mxu1 %v8662_v8  ;;  %v8697_v8 = vld [vmem:[#allocation6 + $0xb84] ss:$24 sps:$4 sm:$0xff]  }
 0x287   :  { %5849 = vmatprep.subr.bf16.mxu1 %v8670_v9  ;;  %v8695_v9 = vld [vmem:[#allocation6 + $0xb80] ss:$24 sps:$4 sm:$0xff]  }
 0x288   :  { %6084 = vmatpush1.bf16.msra.mxu0 %v8635_v38  ;;  %v8728_v38 = vld [vmem:[#allocation6 + $0x1298] ss:$24 sps:$4 sm:$0xff]  }
 0x289   :  { %6085 = vmatprep.subr.bf16.mxu0 %v8643_v14  ;;  %v8701_v14 = vld [vmem:[#allocation6 + $0xbb0] ss:$24 sps:$4 sm:$0xff]  }
 0x28a   :  { %5850 = vmatpush1.bf16.msra.mxu1 %v8668_v10  ;;  %v8703_v10 = vld [vmem:[#allocation6 + $0xbb4] ss:$24 sps:$4 sm:$0xff]  }
 0x28b   :  { %5851 = vmatprep.subr.bf16.mxu1 %v8676_v15  ;;  %v8734_v15 = vld [vmem:[#allocation6 + $0x12c8] ss:$24 sps:$4 sm:$0xff]  }
 0x28c   :  { %6086 = vmatpush1.bf16.msra.mxu0 %v8641_v21  ;;  %v8707_v21 = vld [vmem:[#allocation6 + $0xbe0] ss:$24 sps:$4 sm:$0xff]  }
 0x28d   :  { %6087 = vmatprep.subr.bf16.mxu0 %v8649_v26  ;;  %v8748_v26 = vld [vmem:[#allocation6 + $0x132c] ss:$24 sps:$4 sm:$0xff]  }
 0x28e   :  { %5852 = vmatpush1.bf16.msra.mxu1 %v8674_v17  ;;  %v5619_v39 = vpop.f32.mrb[0].mxu0  ;;  %v8740_v17 = vld [vmem:[#allocation6 + $0x12f8] ss:$24 sps:$4 sm:$0xff]  }
 0x28f   :  { %5853 = vmatprep.subr.bf16.mxu1 %v8682_v27  ;;  %v9505_v54 = vadd.f32 %v7744_v32, %v5619_v39  ;;  %v5621_v41 = vpop.f32.mrb[1].mxu0  ;;  %v8713_v27 = vld [vmem:[#allocation6 + $0xc10] ss:$24 sps:$4 sm:$0xff]   ;;  %v8719_v32 = vld [vmem:[#allocation6 + $0xc40] ss:$24 sps:$4 sm:$0xff]  }
 0x290   :  { %v9507_v16 = vadd.f32 %v7746_v37, %v5621_v41  ;;  %v5623_v42 = vpop.f32.mrb[2].mxu0  ;;  %6088 = vmatpush1.bf16.msra.mxu0 %v8647_v29  ;;  %v8721_v29 = vld [vmem:[#allocation6 + $0xc44] ss:$24 sps:$4 sm:$0xff]   ;;  %v8725_v39 = vld [vmem:[#allocation6 + $0xc70] ss:$24 sps:$4 sm:$0xff]  }
 0x291   :  { %v5624_v46 = vpop.f32.mrb[3].mxu0  ;;  %6089 = vmatprep.subr.bf16.mxu0 %v8655_v35  ;;  %v8752_v35 = vld [vmem:[#allocation6 + $0x1358] ss:$24 sps:$4 sm:$0xff]   ;;  %v8760_v37 = vld [vmem:[#allocation6 + $0x138c] ss:$24 sps:$4 sm:$0xff]  }
 0x292   :  { %5854 = vmatpush1.bf16.msra.mxu1 %v8680_v31  ;;  %v8754_v31 = vld [vmem:[#allocation6 + $0x135c] ss:$24 sps:$4 sm:$0xff]   ;;  %v8758_v41 = vld [vmem:[#allocation6 + $0x1388] ss:$24 sps:$4 sm:$0xff]  }
 0x293   :  { %5855 = vmatprep.subr.bf16.mxu1 %v8688_v36  ;;  %v8727_v36 = vld [vmem:[#allocation6 + $0xc74] ss:$24 sps:$4 sm:$0xff]   ;;  %v8733_v42 = vld [vmem:[#allocation6 + $0xca4] ss:$24 sps:$4 sm:$0xff]  }
 0x294   :  { %6090 = vmatpush1.bf16.msra.mxu0 %v8653_v2  ;;  %v8766_v2 = vld [vmem:[#allocation6 + $0x13bc] ss:$24 sps:$4 sm:$0xff]  }
 0x295   :  { %6091 = vmatprep.subr.bf16.mxu0 %v8661_v23  ;;  %v8739_v46 = vld [vmem:[#allocation6 + $0xcd4] ss:$24 sps:$4 sm:$0xff]  }
 0x296   :  { %5856 = vmatpush1.bf16.msra.mxu1 %v8686_v44  ;;  %v8764_v44 = vld [vmem:[#allocation6 + $0x13b8] ss:$24 sps:$4 sm:$0xff]   ;;  %v8772_v23 = vld [vmem:[#allocation6 + $0x13ec] ss:$24 sps:$4 sm:$0xff]  }
 0x297   :  { %5857 = vmatprep.subr.bf16.mxu1 %v8694_v47  ;;  %v8737_v47 = vld [vmem:[#allocation6 + $0xcd0] ss:$24 sps:$4 sm:$0xff]  }
 0x298   :  { %6092 = vmatpush1.bf16.msra.mxu0 %v8659_v24  ;;  %v8745_v24 = vld [vmem:[#allocation6 + $0xd04] ss:$24 sps:$4 sm:$0xff]  }
 0x299   :  { %6093 = vmatprep.subr.bf16.mxu0 %v8667_v53  ;;  %v8743_v53 = vld [vmem:[#allocation6 + $0xd00] ss:$24 sps:$4 sm:$0xff]  }
 0x29a   :  { %5858 = vmatpush1.bf16.msra.mxu1 %v8692_v25  ;;  %v8778_v25 = vld [vmem:[#allocation6 + $0x141c] ss:$24 sps:$4 sm:$0xff]  }
 0x29b   :  { %5859 = vmatprep.subr.bf16.mxu1 %v8700_v4  ;;  %v8776_v4 = vld [vmem:[#allocation6 + $0x1418] ss:$24 sps:$4 sm:$0xff]  }
 0x29c   :  { %6094 = vmatpush1.bf16.msra.mxu0 %v8665_v48  ;;  %v8751_v48 = vld [vmem:[#allocation6 + $0xd34] ss:$24 sps:$4 sm:$0xff]  }
 0x29d   :  { %6095 = vmatprep.subr.bf16.mxu0 %v8673_v52  ;;  %v8749_v52 = vld [vmem:[#allocation6 + $0xd30] ss:$24 sps:$4 sm:$0xff]  }
 0x29e   :  { %5860 = vmatpush1.bf16.msra.mxu1 %v8698_v50  ;;  %v8784_v50 = vld [vmem:[#allocation6 + $0x144c] ss:$24 sps:$4 sm:$0xff]  }
 0x29f   :  { %5861 = vmatprep.subr.bf16.mxu1 %v8706_v55  ;;  %v8782_v55 = vld [vmem:[#allocation6 + $0x1448] ss:$24 sps:$4 sm:$0xff]  }
 0x2a0   :  { %6096 = vmatpush1.bf16.msra.mxu0 %v8671_v56  ;;  %v8757_v56 = vld [vmem:[#allocation6 + $0xd64] ss:$24 sps:$4 sm:$0xff]  }
 0x2a1   :  { %6097 = vmatprep.subr.bf16.mxu0 %v8679_v58  ;;  %v8755_v58 = vld [vmem:[#allocation6 + $0xd60] ss:$24 sps:$4 sm:$0xff]  }
 0x2a2   :  { %5862 = vmatpush1.bf16.msra.mxu1 %v8704_v57  ;;  %v8790_v57 = vld [vmem:[#allocation6 + $0x147c] ss:$24 sps:$4 sm:$0xff]  }
 0x2a3   :  { %5872 = vmatprep.subr.bf16.mxu1 %v8712_v60  ;;  %v8788_v60 = vld [vmem:[#allocation6 + $0x1478] ss:$24 sps:$4 sm:$0xff]  }
 0x2a4   :  { %6098 = vmatpush1.bf16.msra.mxu0 %v8677_v59  ;;  %v8763_v59 = vld [vmem:[#allocation6 + $0xd94] ss:$24 sps:$4 sm:$0xff]  }
 0x2a5   :  { %5864 = vmatmul.mubr.bf16.vlgmr.msra.gmra.mrb[4].mxu1 %v9454_v13  ;;  %6099 = vmatprep.subr.bf16.mxu0 %v8685_v62  ;;  %v8761_v62 = vld [vmem:[#allocation6 + $0xd90] ss:$24 sps:$4 sm:$0xff]  }
 0x2a6   :  { %5873 = vmatpush1.bf16.msra.mxu1 %v8710_v61  ;;  %5904 = vmatprep.mubr.bf16.mxu1 %v9456_v20  ;;  %v8796_v61 = vld [vmem:[#allocation6 + $0x14ac] ss:$24 sps:$4 sm:$0xff]  }
 0x2a7   :  { %5874 = vmatprep.subr.bf16.mxu1 %v8718_v0  ;;  %v8794_v0 = vld [vmem:[#allocation6 + $0x14a8] ss:$24 sps:$4 sm:$0xff]  }
 0x2a8   :  { %6100 = vmatpush1.bf16.msra.mxu0 %v8683_v63  ;;  %v8769_v63 = vld [vmem:[#allocation6 + $0xdc4] ss:$24 sps:$4 sm:$0xff]  }
 0x2a9   :  { %6101 = vmatprep.subr.bf16.mxu0 %v8691_v3  ;;  %v8767_v3 = vld [vmem:[#allocation6 + $0xdc0] ss:$24 sps:$4 sm:$0xff]  }
 0x2aa   :  { %5875 = vmatpush1.bf16.msra.mxu1 %v8716_v1  ;;  %v8802_v1 = vld [vmem:[#allocation6 + $0x14dc] ss:$24 sps:$4 sm:$0xff]  }
 0x2ab   :  { %5876 = vmatprep.subr.bf16.mxu1 %v8724_v12  ;;  %v8800_v12 = vld [vmem:[#allocation6 + $0x14d8] ss:$24 sps:$4 sm:$0xff]  }
 0x2ac   :  { %6102 = vmatpush1.bf16.msra.mxu0 %v8689_v5  ;;  %v8775_v5 = vld [vmem:[#allocation6 + $0xdf4] ss:$24 sps:$4 sm:$0xff]  }
 0x2ad   :  { %6103 = vmatprep.subr.bf16.mxu0 %v8697_v8  ;;  %v8773_v8 = vld [vmem:[#allocation6 + $0xdf0] ss:$24 sps:$4 sm:$0xff]  }
 0x2ae   :  { %5877 = vmatpush1.bf16.msra.mxu1 %v8722_v6  ;;  %v8808_v6 = vld [vmem:[#allocation6 + $0x150c] ss:$24 sps:$4 sm:$0xff]  }
 0x2af   :  { %5878 = vmatprep.subr.bf16.mxu1 %v8730_v33  ;;  %v8806_v33 = vld [vmem:[#allocation6 + $0x1508] ss:$24 sps:$4 sm:$0xff]  }
 0x2b0   :  { %6104 = vmatpush1.bf16.msra.mxu0 %v8695_v9  ;;  %v8781_v9 = vld [vmem:[#allocation6 + $0xe24] ss:$24 sps:$4 sm:$0xff]  }
 0x2b1   :  { %6105 = vmatprep.subr.bf16.mxu0 %v8703_v10  ;;  %v8779_v10 = vld [vmem:[#allocation6 + $0xe20] ss:$24 sps:$4 sm:$0xff]  }
 0x2b2   :  { %5879 = vmatpush1.bf16.msra.mxu1 %v8728_v38  ;;  %v8814_v38 = vld [vmem:[#allocation6 + $0x153c] ss:$24 sps:$4 sm:$0xff]  }
 0x2b3   :  { %5880 = vmatprep.subr.bf16.mxu1 %v8736_v11  ;;  %v8812_v11 = vld [vmem:[#allocation6 + $0x1538] ss:$24 sps:$4 sm:$0xff]  }
 0x2b4   :  { %6106 = vmatpush1.bf16.msra.mxu0 %v8701_v14  ;;  %v8787_v14 = vld [vmem:[#allocation6 + $0xe54] ss:$24 sps:$4 sm:$0xff]  }
 0x2b5   :  { %6107 = vmatprep.subr.bf16.mxu0 %v8709_v19  ;;  %v8785_v19 = vld [vmem:[#allocation6 + $0xe50] ss:$24 sps:$4 sm:$0xff]  }
 0x2b6   :  { %5881 = vmatpush1.bf16.msra.mxu1 %v8734_v15  ;;  %v8820_v15 = vld [vmem:[#allocation6 + $0x156c] ss:$24 sps:$4 sm:$0xff]  }
 0x2b7   :  { %5882 = vmatprep.subr.bf16.mxu1 %v8742_v18  ;;  %v8818_v18 = vld [vmem:[#allocation6 + $0x1568] ss:$24 sps:$4 sm:$0xff]  }
 0x2b8   :  { %6108 = vmatpush1.bf16.msra.mxu0 %v8707_v21  ;;  %v8793_v21 = vld [vmem:[#allocation6 + $0xe84] ss:$24 sps:$4 sm:$0xff]  }
 0x2b9   :  { %6118 = vmatprep.subr.bf16.mxu0 %v8715_v22  ;;  %v8791_v22 = vld [vmem:[#allocation6 + $0xe80] ss:$24 sps:$4 sm:$0xff]  }
 0x2ba   :  { %5883 = vmatpush1.bf16.msra.mxu1 %v8740_v17  ;;  %v8826_v17 = vld [vmem:[#allocation6 + $0x159c] ss:$24 sps:$4 sm:$0xff]  }
 0x2bb   :  { %5884 = vmatprep.subr.bf16.mxu1 %v8748_v26  ;;  %6110 = vmatmul.mubr.bf16.vlgmr.msra.gmra.mrb[4].mxu0 %v9374_v7  ;;  %v8731_v7 = vld [vmem:[#allocation6 + $0xca0] ss:$24 sps:$4 sm:$0xff]  }
 0x2bc   :  { %6119 = vmatpush1.bf16.msra.mxu0 %v8713_v27  ;;  %6150 = vmatprep.mubr.bf16.mxu0 %v9397_v51  ;;  %v8770_v51 = vld [vmem:[#allocation6 + $0x13e8] ss:$24 sps:$4 sm:$0xff]   ;;  %v8824_v26 = vld [vmem:[#allocation6 + $0x1598] ss:$24 sps:$4 sm:$0xff]   ;;  %v8799_v27 = vld [vmem:[#allocation6 + $0xeb4] ss:$24 sps:$4 sm:$0xff]  }
 0x2bd   :  { %6120 = vmatprep.subr.bf16.mxu0 %v8721_v29  ;;  %v8797_v29 = vld [vmem:[#allocation6 + $0xeb0] ss:$24 sps:$4 sm:$0xff]  }
 0x2be   :  { %5885 = vmatpush1.bf16.msra.mxu1 %v8746_v28  ;;  %v8832_v28 = vld [vmem:[#allocation6 + $0x15cc] ss:$24 sps:$4 sm:$0xff]  }
 0x2bf   :  { %5886 = vmatprep.subr.bf16.mxu1 %v8754_v31  ;;  %v8830_v31 = vld [vmem:[#allocation6 + $0x15c8] ss:$24 sps:$4 sm:$0xff]  }
 0x2c0   :  { %6121 = vmatpush1.bf16.msra.mxu0 %v8719_v32  ;;  %v8805_v32 = vld [vmem:[#allocation6 + $0xee4] ss:$24 sps:$4 sm:$0xff]  }
 0x2c1   :  { %6122 = vmatprep.subr.bf16.mxu0 %v8727_v36  ;;  %v8803_v36 = vld [vmem:[#allocation6 + $0xee0] ss:$24 sps:$4 sm:$0xff]  }
 0x2c2   :  { %5887 = vmatpush1.bf16.msra.mxu1 %v8752_v35  ;;  %v8838_v35 = vld [vmem:[#allocation6 + $0x15fc] ss:$24 sps:$4 sm:$0xff]  }
 0x2c3   :  { %5888 = vmatprep.subr.bf16.mxu1 %v8760_v37  ;;  %v8836_v37 = vld [vmem:[#allocation6 + $0x15f8] ss:$24 sps:$4 sm:$0xff]  }
 0x2c4   :  { %6123 = vmatpush1.bf16.msra.mxu0 %v8725_v39  ;;  %v8811_v39 = vld [vmem:[#allocation6 + $0xf14] ss:$24 sps:$4 sm:$0xff]  }
 0x2c5   :  { %6124 = vmatprep.subr.bf16.mxu0 %v8733_v42  ;;  %v8809_v42 = vld [vmem:[#allocation6 + $0xf10] ss:$24 sps:$4 sm:$0xff]  }
 0x2c6   :  { %5889 = vmatpush1.bf16.msra.mxu1 %v8758_v41  ;;  %v8844_v41 = vld [vmem:[#allocation6 + $0x162c] ss:$24 sps:$4 sm:$0xff]  }
 0x2c7   :  { %5890 = vmatprep.subr.bf16.mxu1 %v8766_v2  ;;  %v8842_v2 = vld [vmem:[#allocation6 + $0x1628] ss:$24 sps:$4 sm:$0xff]  }
 0x2c8   :  { %6125 = vmatpush1.bf16.msra.mxu0 %v8731_v7  ;;  %v8817_v7 = vld [vmem:[#allocation6 + $0xf44] ss:$24 sps:$4 sm:$0xff]  }
 0x2c9   :  { %6126 = vmatprep.subr.bf16.mxu0 %v8739_v46  ;;  %v8815_v46 = vld [vmem:[#allocation6 + $0xf40] ss:$24 sps:$4 sm:$0xff]  }
 0x2ca   :  { %5891 = vmatpush1.bf16.msra.mxu1 %v8764_v44  ;;  %v8850_v44 = vld [vmem:[#allocation6 + $0x165c] ss:$24 sps:$4 sm:$0xff]  }
 0x2cb   :  { %5892 = vmatprep.subr.bf16.mxu1 %v8772_v23  ;;  %v8848_v23 = vld [vmem:[#allocation6 + $0x1658] ss:$24 sps:$4 sm:$0xff]  }
 0x2cc   :  { %6127 = vmatpush1.bf16.msra.mxu0 %v8737_v47  ;;  %v8823_v47 = vld [vmem:[#allocation6 + $0xf74] ss:$24 sps:$4 sm:$0xff]  }
 0x2cd   :  { %6128 = vmatprep.subr.bf16.mxu0 %v8745_v24  ;;  %v8821_v24 = vld [vmem:[#allocation6 + $0xf70] ss:$24 sps:$4 sm:$0xff]  }
 0x2ce   :  { %5893 = vmatpush1.bf16.msra.mxu1 %v8770_v51  ;;  %v8856_v51 = vld [vmem:[#allocation6 + $0x168c] ss:$24 sps:$4 sm:$0xff]  }
 0x2cf   :  { %5894 = vmatprep.subr.bf16.mxu1 %v8778_v25  ;;  %v8854_v25 = vld [vmem:[#allocation6 + $0x1688] ss:$24 sps:$4 sm:$0xff]  }
 0x2d0   :  { %6129 = vmatpush1.bf16.msra.mxu0 %v8743_v53  ;;  %v8829_v53 = vld [vmem:[#allocation6 + $0xfa4] ss:$24 sps:$4 sm:$0xff]  }
 0x2d1   :  { %6130 = vmatprep.subr.bf16.mxu0 %v8751_v48  ;;  %v8860_v48 = vld [vmem:[#allocation6 + $0x16b8] ss:$24 sps:$4 sm:$0xff]  }
 0x2d2   :  { %5895 = vmatpush1.bf16.msra.mxu1 %v8776_v4  ;;  %v8862_v4 = vld [vmem:[#allocation6 + $0x16bc] ss:$24 sps:$4 sm:$0xff]  }
 0x2d3   :  { %5896 = vmatprep.subr.bf16.mxu1 %v8784_v50  ;;  %v8835_v50 = vld [vmem:[#allocation6 + $0xfd4] ss:$24 sps:$4 sm:$0xff]  }
 0x2d4   :  { %6131 = vmatpush1.bf16.msra.mxu0 %v8749_v52  ;;  %v8868_v52 = vld [vmem:[#allocation6 + $0x16ec] ss:$24 sps:$4 sm:$0xff]  }
 0x2d5   :  { %6132 = vmatprep.subr.bf16.mxu0 %v8757_v56  ;;  %v8841_v56 = vld [vmem:[#allocation6 + $0x1004] ss:$24 sps:$4 sm:$0xff]  }
 0x2d6   :  { %5897 = vmatpush1.bf16.msra.mxu1 %v8782_v55  ;;  %v8833_v55 = vld [vmem:[#allocation6 + $0xfd0] ss:$24 sps:$4 sm:$0xff]  }
 0x2d7   :  { %5898 = vmatprep.subr.bf16.mxu1 %v8790_v57  ;;  %v8874_v57 = vld [vmem:[#allocation6 + $0x171c] ss:$24 sps:$4 sm:$0xff]  }
 0x2d8   :  { %6133 = vmatpush1.bf16.msra.mxu0 %v8755_v58  ;;  %v6289_v58 = vmul.f32 0.70710677, %v9507_v16 }
 0x2d9   :  { %6134 = vmatprep.subr.bf16.mxu0 %v8763_v59  ;;  %v8872_v59 = vld [vmem:[#allocation6 + $0x1718] ss:$24 sps:$4 sm:$0xff]  }
 0x2da   :  { %5899 = vmatpush1.bf16.msra.mxu1 %v8788_v60  ;;  %v8839_v60 = vld [vmem:[#allocation6 + $0x1000] ss:$24 sps:$4 sm:$0xff]   ;;  %9046 = verf.f32 %v6289_v58  ;;  %v6282_v58 = vmul.f32 0.5, %v9505_v54 }
 0x2db   :  { %5900 = vmatprep.subr.bf16.mxu1 %v8796_v61  ;;  %v8847_v61 = vld [vmem:[#allocation6 + $0x1034] ss:$24 sps:$4 sm:$0xff]  }
 0x2dc   :  { %6135 = vmatpush1.bf16.msra.mxu0 %v8761_v62  ;;  %v8880_v62 = vld [vmem:[#allocation6 + $0x174c] ss:$24 sps:$4 sm:$0xff]  }
 0x2dd   :  { %6136 = vmatprep.subr.bf16.mxu0 %v8769_v63  ;;  %v8878_v63 = vld [vmem:[#allocation6 + $0x1748] ss:$24 sps:$4 sm:$0xff]  }
 0x2de   :  { %5901 = vmatpush1.bf16.msra.mxu1 %v8794_v0  ;;  %v8845_v0 = vld [vmem:[#allocation6 + $0x1030] ss:$24 sps:$4 sm:$0xff]  }
 0x2df   :  { %5902 = vmatprep.subr.bf16.mxu1 %v8802_v1  ;;  %v8853_v1 = vld [vmem:[#allocation6 + $0x1064] ss:$24 sps:$4 sm:$0xff]  }
 0x2e0   :  { %6137 = vmatpush1.bf16.msra.mxu0 %v8767_v3  ;;  %v8886_v3 = vld [vmem:[#allocation6 + $0x177c] ss:$24 sps:$4 sm:$0xff]  }
 0x2e1   :  { %6138 = vmatprep.subr.bf16.mxu0 %v8775_v5  ;;  %v8884_v5 = vld [vmem:[#allocation6 + $0x1778] ss:$24 sps:$4 sm:$0xff]  }
 0x2e2   :  { %5903 = vmatpush1.bf16.msra.mxu1 %v8800_v12  ;;  %v8851_v12 = vld [vmem:[#allocation6 + $0x1060] ss:$24 sps:$4 sm:$0xff]  }
 0x2e3   :  { %5913 = vmatprep.subr.bf16.mxu1 %v8808_v6  ;;  %v8859_v6 = vld [vmem:[#allocation6 + $0x1094] ss:$24 sps:$4 sm:$0xff]  }
 0x2e4   :  { %6139 = vmatpush1.bf16.msra.mxu0 %v8773_v8  ;;  %v8892_v8 = vld [vmem:[#allocation6 + $0x17ac] ss:$24 sps:$4 sm:$0xff]  }
 0x2e5   :  { %5905 = vmatmul.mubr.bf16.vlgmr.msra.gmra.mrb[4].mxu1 %v9471_v40  ;;  %6140 = vmatprep.subr.bf16.mxu0 %v8781_v9  ;;  %v8857_v9 = vld [vmem:[#allocation6 + $0x1090] ss:$24 sps:$4 sm:$0xff]  }
 0x2e6   :  { %5914 = vmatpush1.bf16.msra.mxu1 %v8806_v33  ;;  %5945 = vmatprep.mubr.bf16.mxu1 %v9473_v45  ;;  %v9047_v33 = vpop.eup %9046 }
 0x2e7   :  { %5915 = vmatprep.subr.bf16.mxu1 %v8814_v38  ;;  %v8890_v38 = vld [vmem:[#allocation6 + $0x17a8] ss:$24 sps:$4 sm:$0xff]  }
 0x2e8   :  { %6141 = vmatpush1.bf16.msra.mxu0 %v8779_v10  ;;  %v8865_v10 = vld [vmem:[#allocation6 + $0x10c4] ss:$24 sps:$4 sm:$0xff]  }
 0x2e9   :  { %6142 = vmatprep.subr.bf16.mxu0 %v8787_v14  ;;  %v6301_v14 = vadd.f32 1.0, %v9047_v33  ;;  %v8927_v33 = vld [vmem:[#allocation6 + $0x1300] ss:$24 sps:$4 sm:$0xff]  }
 0x2ea   :  { %5916 = vmatpush1.bf16.msra.mxu1 %v8812_v11  ;;  %v8898_v11 = vld [vmem:[#allocation6 + $0x17dc] ss:$24 sps:$4 sm:$0xff]  }
 0x2eb   :  { %5917 = vmatprep.subr.bf16.mxu1 %v8820_v15  ;;  %v8863_v15 = vld [vmem:[#allocation6 + $0x10c0] ss:$24 sps:$4 sm:$0xff]  }
 0x2ec   :  { %6143 = vmatpush1.bf16.msra.mxu0 %v8785_v19  ;;  %v8896_v19 = vld [vmem:[#allocation6 + $0x17d8] ss:$24 sps:$4 sm:$0xff]  }
 0x2ed   :  { %6144 = vmatprep.subr.bf16.mxu0 %v8793_v21  ;;  %v8871_v21 = vld [vmem:[#allocation6 + $0x10f4] ss:$24 sps:$4 sm:$0xff]  }
 0x2ee   :  { %5918 = vmatpush1.bf16.msra.mxu1 %v8818_v18  ;;  %v6283_v18 = vmul.f32 0.5, %v9507_v16  ;;  %v8911_v16 = vld [vmem:[#allocation9 + $0x8] sm:$0xff]  }
 0x2ef   :  { %5919 = vmatprep.subr.bf16.mxu1 %v8826_v17  ;;  %v8905_v17 = vld [vmem:[#allocation9 + $0x40] sm:$0xff]  }
 0x2f0   :  { %6145 = vmatpush1.bf16.msra.mxu0 %v8791_v22  ;;  %v6307_v22 = vmul.f32 %v6301_v14, %v6283_v18  ;;  %v8944_v14 = vld [vmem:[#allocation6 + $0x1394] ss:$24 sps:$4 sm:$0xff]   ;;  %v8945_v18 = vld [vmem:[#allocation6 + $0x13c0] ss:$24 sps:$4 sm:$0xff]  }
 0x2f1   :  { %6146 = vmatprep.subr.bf16.mxu0 %v8799_v27  ;;  %v8906_v27 = vld [vmem:[#allocation9] sm:$0xff]  }
 0x2f2   :  { %5920 = vmatpush1.bf16.msra.mxu1 %v8824_v26  ;;  %v8869_v26 = vld [vmem:[#allocation6 + $0x10f0] ss:$24 sps:$4 sm:$0xff]  }
 0x2f3   :  { %5921 = vmatprep.subr.bf16.mxu1 %v8832_v28  ;;  %v8877_v28 = vld [vmem:[#allocation6 + $0x1124] ss:$24 sps:$4 sm:$0xff]  }
 0x2f4   :  { %6147 = vmatpush1.bf16.msra.mxu0 %v8797_v29  ;;  %v8910_v29 = vld [vmem:[#allocation9 + $0x48] sm:$0xff]  }
 0x2f5   :  { %6148 = vmatprep.subr.bf16.mxu0 %v8805_v32  ;;  %v8875_v32 = vld [vmem:[#allocation6 + $0x1120] ss:$24 sps:$4 sm:$0xff]  }
 0x2f6   :  { %5922 = vmatpush1.bf16.msra.mxu1 %v8830_v31  ;;  %v6313_v31 = vpack.c.bf16 %v6307_v22, %v6307_v22  ;;  %v8953_v22 = vld [vmem:[#allocation6 + $0x1424] ss:$24 sps:$4 sm:$0xff]  }
 0x2f7   :  { %5923 = vmatprep.subr.bf16.mxu1 %v8838_v35  ;;  %v8883_v35 = vld [vmem:[#allocation6 + $0x1154] ss:$24 sps:$4 sm:$0xff]  }
 0x2f8   :  { %6149 = vmatpush1.bf16.msra.mxu0 %v8803_v36  ;;  %v8915_v36 = vld [vmem:[#allocation9 + $0x50] sm:$0xff]  }
 0x2f9   :  { %6159 = vmatprep.subr.bf16.mxu0 %v8811_v39  ;;  %v8881_v39 = vld [vmem:[#allocation6 + $0x1150] ss:$24 sps:$4 sm:$0xff]  }
 0x2fa   :  { %5924 = vmatpush1.bf16.msra.mxu1 %v8836_v37  ;;  %v6288_v37 = vmul.f32 0.70710677, %v9505_v54  ;;  %v8919_v54 = vld [vmem:[#allocation6 + $0x12a4] ss:$24 sps:$4 sm:$0xff]  }
 0x2fb   :  { %5925 = vmatprep.subr.bf16.mxu1 %v8844_v41  ;;  %6151 = vmatmul.mubr.bf16.vlgmr.msra.gmra.mrb[4].mxu0 %v9423_v30  ;;  %v8827_v30 = vld [vmem:[#allocation6 + $0xfa0] ss:$24 sps:$4 sm:$0xff]  }
 0x2fc   :  { %6160 = vmatpush1.bf16.msra.mxu0 %v8809_v42  ;;  %6191 = vmatprep.mubr.bf16.mxu0 %v9425_v34  ;;  %v8866_v34 = vld [vmem:[#allocation6 + $0x16e8] ss:$24 sps:$4 sm:$0xff]   ;;  %v8916_v41 = vld [vmem:[#allocation9 + $0x10] sm:$0xff]   ;;  %9048 = verf.f32 %v6288_v37 }
 0x2fd   :  { %6161 = vmatprep.subr.bf16.mxu0 %v8817_v7  ;;  %v8889_v42 = vld [vmem:[#allocation6 + $0x1184] ss:$24 sps:$4 sm:$0xff]   ;;  %v8887_v7 = vld [vmem:[#allocation6 + $0x1180] ss:$24 sps:$4 sm:$0xff]   ;;  %v8968_v37 = vld [vmem:[#allocation6 + $0x1514] ss:$24 sps:$4 sm:$0xff]  }
 0x2fe   :  { %5926 = vmatpush1.bf16.msra.mxu1 %v8842_v2  ;;  %v8920_v2 = vld [vmem:[#allocation9 + $0x58] sm:$0xff]  }
 0x2ff   :  { %5927 = vmatprep.subr.bf16.mxu1 %v8850_v44  ;;  %v8921_v44 = vld [vmem:[#allocation9 + $0x18] sm:$0xff]  }
 0x300   :  { %6162 = vmatpush1.bf16.msra.mxu0 %v8815_v46  ;;  %v8895_v46 = vld [vmem:[#allocation6 + $0x11b4] ss:$24 sps:$4 sm:$0xff]  }
 0x301   :  { %6163 = vmatprep.subr.bf16.mxu0 %v8823_v47  ;;  %v8893_v47 = vld [vmem:[#allocation6 + $0x11b0] ss:$24 sps:$4 sm:$0xff]  }
 0x302   :  { %5928 = vmatpush1.bf16.msra.mxu1 %v8848_v23  ;;  %v8925_v23 = vld [vmem:[#allocation9 + $0x60] sm:$0xff]  }
 0x303   :  { %5929 = vmatprep.subr.bf16.mxu1 %v8856_v51  ;;  %v8926_v51 = vld [vmem:[#allocation9 + $0x20] sm:$0xff]  }
 0x304   :  { %6164 = vmatpush1.bf16.msra.mxu0 %v8821_v24  ;;  %v8901_v24 = vld [vmem:[#allocation6 + $0x11e4] ss:$24 sps:$4 sm:$0xff]  }
 0x305   :  { %6165 = vmatprep.subr.bf16.mxu0 %v8829_v53  ;;  %v8899_v53 = vld [vmem:[#allocation6 + $0x11e0] ss:$24 sps:$4 sm:$0xff]  }
 0x306   :  { %5930 = vmatpush1.bf16.msra.mxu1 %v8854_v25  ;;  %v8930_v25 = vld [vmem:[#allocation9 + $0x68] sm:$0xff]  }
 0x307   :  { %5931 = vmatprep.subr.bf16.mxu1 %v8862_v4  ;;  %v8931_v4 = vld [vmem:[#allocation9 + $0x28] sm:$0xff]  }
 0x308   :  { %6166 = vmatpush1.bf16.msra.mxu0 %v8827_v30  ;;  %v8904_v30 = vld [vmem:[#allocation6 + $0x1214] ss:$24 sps:$4 sm:$0xff]  }
 0x309   :  { %6167 = vmatprep.subr.bf16.mxu0 %v8835_v50  ;;  %v9049_v50 = vpop.eup %9048 }
 0x30a   :  { %5932 = vmatpush1.bf16.msra.mxu1 %v8860_v48  ;;  %v8935_v48 = vld [vmem:[#allocation9 + $0x70] sm:$0xff]  }
 0x30b   :  { %5933 = vmatprep.subr.bf16.mxu1 %v8868_v52  ;;  %v8902_v52 = vld [vmem:[#allocation6 + $0x1210] ss:$24 sps:$4 sm:$0xff]  }
 0x30c   :  { %6168 = vmatpush1.bf16.msra.mxu0 %v8833_v55  ;;  %v8936_v55 = vld [vmem:[#allocation9 + $0x30] sm:$0xff]  }
 0x30d   :  { %6169 = vmatprep.subr.bf16.mxu0 %v8841_v56  ;;  %v8909_v56 = vld [vmem:[#allocation6 + $0x1244] ss:$24 sps:$4 sm:$0xff]  }
 0x30e   :  { %5934 = vmatpush1.bf16.msra.mxu1 %v8866_v34  ;;  %v6300_v34 = vadd.f32 1.0, %v9049_v50  ;;  %v8989_v50 = vld [vmem:[#allocation6 + $0x1664] ss:$24 sps:$4 sm:$0xff]  }
 0x30f   :  { %5935 = vmatprep.subr.bf16.mxu1 %v8874_v57  ;;  %v8940_v57 = vld [vmem:[#allocation9 + $0x78] sm:$0xff]  }
 0x310   :  { %6170 = vmatpush1.bf16.msra.mxu0 %v8839_v60  ;;  %v8907_v60 = vld [vmem:[#allocation6 + $0x1240] ss:$24 sps:$4 sm:$0xff]  }
 0x311   :  { %6171 = vmatprep.subr.bf16.mxu0 %v8847_v61  ;;  %v6306_v61 = vmul.f32 %v6300_v34, %v6282_v58  ;;  %v8987_v34 = vld [vmem:[#allocation6 + $0x1660] ss:$24 sps:$4 sm:$0xff]  }
 0x312   :  { %5936 = vmatpush1.bf16.msra.mxu1 %v8872_v59  ;;  %v8941_v59 = vld [vmem:[#allocation9 + $0x38] sm:$0xff]   ;;  %v9026_v58 = vld [vmem:[#allocation9 + $0xf0] sm:$0xff]  }
 0x313   :  { %5937 = vmatprep.subr.bf16.mxu1 %v8880_v62  ;;  %v8914_v62 = vld [vmem:[#allocation6 + $0x1274] ss:$24 sps:$4 sm:$0xff]  }
 0x314   :  { %6172 = vmatpush1.bf16.msra.mxu0 %v8845_v0  ;;  %v9014_v0 = vld [vmem:[#allocation9 + $0xc0] sm:$0xff]  }
 0x315   :  { %6173 = vmatprep.subr.bf16.mxu0 %v8853_v1  ;;  %v9015_v1 = vld [vmem:[#allocation9 + $0x80] sm:$0xff]  }
 0x316   :  { %5938 = vmatpush1.bf16.msra.mxu1 %v8878_v63  ;;  %v8912_v63 = vld [vmem:[#allocation6 + $0x1270] ss:$24 sps:$4 sm:$0xff]  }
 0x317   :  { %5939 = vmatprep.subr.bf16.mxu1 %v8886_v3  ;;  %v6312_v3 = vpack.c.bf16 %v6306_v61, %v6306_v61  ;;  %v9027_v61 = vld [vmem:[#allocation9 + $0xb0] sm:$0xff]  }
 0x318   :  { %6174 = vmatpush1.bf16.msra.mxu0 %v8851_v12  ;;  %v8917_v12 = vld [vmem:[#allocation6 + $0x12a0] ss:$24 sps:$4 sm:$0xff]  }
 0x319   :  { %6175 = vmatprep.subr.bf16.mxu0 %v8859_v6  ;;  %v8924_v6 = vld [vmem:[#allocation6 + $0x12d4] ss:$24 sps:$4 sm:$0xff]  }
 0x31a   :  { %5940 = vmatpush1.bf16.msra.mxu1 %v8884_v5  ;;  %v9017_v5 = vld [vmem:[#allocation9 + $0x88] sm:$0xff]  }
 0x31b   :  { %5941 = vmatprep.subr.bf16.mxu1 %v8892_v8  ;;  %v8922_v8 = vld [vmem:[#allocation6 + $0x12d0] ss:$24 sps:$4 sm:$0xff]  }
 0x31c   :  { %6176 = vmatpush1.bf16.msra.mxu0 %v8857_v9  ;;  %v8934_v9 = vld [vmem:[#allocation6 + $0x1334] ss:$24 sps:$4 sm:$0xff]  }
 0x31d   :  { %6177 = vmatprep.subr.bf16.mxu0 %v8865_v10  ;;  %v8939_v10 = vld [vmem:[#allocation6 + $0x1364] ss:$24 sps:$4 sm:$0xff]  }
 0x31e   :  { %5942 = vmatpush1.bf16.msra.mxu1 %v8890_v38  ;;  %v8932_v38 = vld [vmem:[#allocation6 + $0x1330] ss:$24 sps:$4 sm:$0xff]  }
 0x31f   :  { %5943 = vmatprep.subr.bf16.mxu1 %v8898_v11  ;;  %v8937_v11 = vld [vmem:[#allocation6 + $0x1360] ss:$24 sps:$4 sm:$0xff]  }
 0x320   :  { %6178 = vmatpush1.bf16.msra.mxu0 %v8863_v15  ;;  %v8942_v15 = vld [vmem:[#allocation6 + $0x1390] ss:$24 sps:$4 sm:$0xff]  }
 0x321   :  { %6179 = vmatprep.subr.bf16.mxu0 %v8871_v21  ;;  %v8950_v21 = vld [vmem:[#allocation6 + $0x13f4] ss:$24 sps:$4 sm:$0xff]  }
 0x322   :  { %5944 = vmatpush1.bf16.msra.mxu1 %v8896_v19  ;;  %v8947_v19 = vld [vmem:[#allocation6 + $0x13c4] ss:$24 sps:$4 sm:$0xff]  }
 0x323   :  { %7678 = vmatprep.subr.bf16.mxu1 %v8905_v17  ;;  %v8948_v17 = vld [vmem:[#allocation6 + $0x13f0] ss:$24 sps:$4 sm:$0xff]  }
 0x324   :  { %6180 = vmatpush1.bf16.msra.mxu0 %v8869_v26  ;;  %v8951_v26 = vld [vmem:[#allocation6 + $0x1420] ss:$24 sps:$4 sm:$0xff]  }
 0x325   :  { %5946 = vmatmul.mubr.bf16.vlgmr.msra.gmra.mrb[4].mxu1 %v9481_v43  ;;  %6181 = vmatprep.subr.bf16.mxu0 %v8877_v28  ;;  %v8954_v28 = vld [vmem:[#allocation6 + $0x1450] ss:$24 sps:$4 sm:$0xff]  }
 0x326   :  { %7679 = vmatpush3.bf16.msra.mxu1 %v8906_v27  ;;  %6741 = vmatprep.mubr.bf16.mxu1 %v6313_v31  ;;  %v8956_v27 = vld [vmem:[#allocation6 + $0x1454] ss:$24 sps:$4 sm:$0xff]   ;;  %v8957_v31 = vld [vmem:[#allocation6 + $0x1480] ss:$24 sps:$4 sm:$0xff]  }
 0x327   :  { %7680 = vmatprep.subr.bf16.mxu1 %v8910_v29  ;;  %v8959_v29 = vld [vmem:[#allocation6 + $0x1484] ss:$24 sps:$4 sm:$0xff]  }
 0x328   :  { %6182 = vmatpush1.bf16.msra.mxu0 %v8875_v32  ;;  %v8962_v32 = vld [vmem:[#allocation6 + $0x14b4] ss:$24 sps:$4 sm:$0xff]  }
 0x329   :  { %6183 = vmatprep.subr.bf16.mxu0 %v8883_v35  ;;  %v8965_v35 = vld [vmem:[#allocation6 + $0x14e4] ss:$24 sps:$4 sm:$0xff]  }
 0x32a   :  { %7681 = vmatpush3.bf16.msra.mxu1 %v8911_v16  ;;  %v8960_v16 = vld [vmem:[#allocation6 + $0x14b0] ss:$24 sps:$4 sm:$0xff]  }
 0x32b   :  { %7682 = vmatprep.subr.bf16.mxu1 %v8915_v36  ;;  %v8963_v36 = vld [vmem:[#allocation6 + $0x14e0] ss:$24 sps:$4 sm:$0xff]  }
 0x32c   :  { %6184 = vmatpush1.bf16.msra.mxu0 %v8881_v39  ;;  %v8966_v39 = vld [vmem:[#allocation6 + $0x1510] ss:$24 sps:$4 sm:$0xff]  }
 0x32d   :  { %6185 = vmatprep.subr.bf16.mxu0 %v8889_v42  ;;  %v8969_v42 = vld [vmem:[#allocation6 + $0x1540] ss:$24 sps:$4 sm:$0xff]  }
 0x32e   :  { %7683 = vmatpush3.bf16.msra.mxu1 %v8916_v41  ;;  %v8971_v41 = vld [vmem:[#allocation6 + $0x1544] ss:$24 sps:$4 sm:$0xff]  }
 0x32f   :  { %7684 = vmatprep.subr.bf16.mxu1 %v8920_v2  ;;  %v8974_v2 = vld [vmem:[#allocation6 + $0x1574] ss:$24 sps:$4 sm:$0xff]  }
 0x330   :  { %6186 = vmatpush1.bf16.msra.mxu0 %v8887_v7  ;;  %v8972_v7 = vld [vmem:[#allocation6 + $0x1570] ss:$24 sps:$4 sm:$0xff]  }
 0x331   :  { %6187 = vmatprep.subr.bf16.mxu0 %v8895_v46  ;;  %v8975_v46 = vld [vmem:[#allocation6 + $0x15a0] ss:$24 sps:$4 sm:$0xff]  }
 0x332   :  { %7685 = vmatpush3.bf16.msra.mxu1 %v8921_v44  ;;  %v8977_v44 = vld [vmem:[#allocation6 + $0x15a4] ss:$24 sps:$4 sm:$0xff]  }
 0x333   :  { %7686 = vmatprep.subr.bf16.mxu1 %v8925_v23  ;;  %v8980_v23 = vld [vmem:[#allocation6 + $0x15d4] ss:$24 sps:$4 sm:$0xff]  }
 0x334   :  { %6188 = vmatpush1.bf16.msra.mxu0 %v8893_v47  ;;  %v8978_v47 = vld [vmem:[#allocation6 + $0x15d0] ss:$24 sps:$4 sm:$0xff]  }
 0x335   :  { %6189 = vmatprep.subr.bf16.mxu0 %v8901_v24  ;;  %v9018_v24 = vld [vmem:[#allocation9 + $0xd0] sm:$0xff]  }
 0x336   :  { %7687 = vmatpush3.bf16.msra.mxu1 %v8926_v51  ;;  %v8983_v51 = vld [vmem:[#allocation6 + $0x1604] ss:$24 sps:$4 sm:$0xff]  }
 0x337   :  { %7688 = vmatprep.subr.bf16.mxu1 %v8930_v25  ;;  %v9020_v25 = vld [vmem:[#allocation9 + $0xd8] sm:$0xff]  }
 0x338   :  { %6190 = vmatpush1.bf16.msra.mxu0 %v8899_v53  ;;  %v8981_v53 = vld [vmem:[#allocation6 + $0x1600] ss:$24 sps:$4 sm:$0xff]  }
 0x339   :  { %6200 = vmatprep.subr.bf16.mxu0 %v8904_v30  ;;  %v9022_v30 = vld [vmem:[#allocation9 + $0xe0] sm:$0xff]  }
 0x33a   :  { %7689 = vmatpush3.bf16.msra.mxu1 %v8931_v4  ;;  %v9021_v4 = vld [vmem:[#allocation9 + $0x98] sm:$0xff]  }
 0x33b   :  { %7690 = vmatprep.subr.bf16.mxu1 %v8935_v48  ;;  %6192 = vmatmul.mubr.bf16.vlgmr.msra.gmra.mrb[4].mxu0 %v9454_v13  ;;  %v9016_v13 = vld [vmem:[#allocation9 + $0xc8] sm:$0xff]  }
 0x33c   :  { %6201 = vmatpush1.bf16.msra.mxu0 %v8902_v52  ;;  %6232 = vmatprep.mubr.bf16.mxu0 %v9456_v20  ;;  %v8929_v20 = vld [vmem:[#allocation6 + $0x1304] ss:$24 sps:$4 sm:$0xff]   ;;  %v8984_v48 = vld [vmem:[#allocation6 + $0x1630] ss:$24 sps:$4 sm:$0xff]  }
 0x33d   :  { %6202 = vmatprep.subr.bf16.mxu0 %v8909_v56  ;;  %v9023_v52 = vld [vmem:[#allocation9 + $0xa0] sm:$0xff]  }
 0x33e   :  { %7691 = vmatpush3.bf16.msra.mxu1 %v8936_v55  ;;  %v9024_v55 = vld [vmem:[#allocation9 + $0xe8] sm:$0xff]  }
 0x33f   :  { %7692 = vmatprep.subr.bf16.mxu1 %v8940_v57  ;;  %v8992_v56 = vld [vmem:[#allocation6 + $0x1694] ss:$24 sps:$4 sm:$0xff]  }
 0x340   :  { %6203 = vmatpush1.bf16.msra.mxu0 %v8907_v60  ;;  %v9025_v57 = vld [vmem:[#allocation9 + $0xa8] sm:$0xff]  }
 0x341   :  { %6204 = vmatprep.subr.bf16.mxu0 %v8914_v62  ;;  %v8990_v60 = vld [vmem:[#allocation6 + $0x1690] ss:$24 sps:$4 sm:$0xff]   ;;  %v9028_v62 = vld [vmem:[#allocation9 + $0xf8] sm:$0xff]  }
 0x342   :  { %7693 = vmatpush3.bf16.msra.mxu1 %v8941_v59  ;;  %v8995_v59 = vld [vmem:[#allocation6 + $0x16c4] ss:$24 sps:$4 sm:$0xff]  }
 0x343   :  { %7700 = vmatprep.subr.bf16.mxu1 %v9014_v0  ;;  %v8993_v0 = vld [vmem:[#allocation6 + $0x16c0] ss:$24 sps:$4 sm:$0xff]  }
 0x344   :  { %6205 = vmatpush1.bf16.msra.mxu0 %v8912_v63  ;;  %v8998_v63 = vld [vmem:[#allocation6 + $0x16f4] ss:$24 sps:$4 sm:$0xff]  }
 0x345   :  { %6742 = vmatmul.mubr.bf16.vlgmr.msra.gmra.mrb[8].mxu1 %v6312_v3  ;;  %6206 = vmatprep.subr.bf16.mxu0 %v8919_v54  ;;  %v9030_v3 = vld [vmem:[#allocation9 + $0x140] sm:$0xff]  }
 0x346   :  { %7701 = vmatpush3.bf16.msra.mxu1 %v9015_v1  ;;  %v9029_v1 = vld [vmem:[#allocation9 + $0xb8] sm:$0xff]   ;;  %v8996_v54 = vld [vmem:[#allocation6 + $0x16f0] ss:$24 sps:$4 sm:$0xff]  }
 0x347   :  { %7702 = vmatprep.subr.bf16.mxu1 %v9016_v13  ;;  %v9001_v13 = vld [vmem:[#allocation6 + $0x1724] ss:$24 sps:$4 sm:$0xff]  }
 0x348   :  { %6207 = vmatpush1.bf16.msra.mxu0 %v8917_v12  ;;  %v8999_v12 = vld [vmem:[#allocation6 + $0x1720] ss:$24 sps:$4 sm:$0xff]  }
 0x349   :  { %6208 = vmatprep.subr.bf16.mxu0 %v8924_v6  ;;  %v9002_v6 = vld [vmem:[#allocation6 + $0x1750] ss:$24 sps:$4 sm:$0xff]  }
 0x34a   :  { %7703 = vmatpush3.bf16.msra.mxu1 %v9017_v5  ;;  %v9004_v5 = vld [vmem:[#allocation6 + $0x1754] ss:$24 sps:$4 sm:$0xff]  }
 0x34b   :  { %7704 = vmatprep.subr.bf16.mxu1 %v9018_v24 }
 0x34c   :  { %6209 = vmatpush1.bf16.msra.mxu0 %v8922_v8  ;;  %v9007_v8 = vld [vmem:[#allocation6 + $0x1784] ss:$24 sps:$4 sm:$0xff]  }
 0x34d   :  { %6210 = vmatprep.subr.bf16.mxu0 %v8929_v20  ;;  %v9005_v20 = vld [vmem:[#allocation6 + $0x1780] ss:$24 sps:$4 sm:$0xff]  }
 0x350   :  { %6211 = vmatpush1.bf16.msra.mxu0 %v8927_v33  ;;  %v9010_v33 = vld [vmem:[#allocation6 + $0x17b4] ss:$24 sps:$4 sm:$0xff]  }
 0x351   :  { %6212 = vmatprep.subr.bf16.mxu0 %v8934_v9  ;;  %v9008_v9 = vld [vmem:[#allocation6 + $0x17b0] ss:$24 sps:$4 sm:$0xff]  }
 0x354   :  { %6213 = vmatpush1.bf16.msra.mxu0 %v8932_v38  ;;  %v9013_v38 = vld [vmem:[#allocation6 + $0x17e4] ss:$24 sps:$4 sm:$0xff]  }
 0x355   :  { %6214 = vmatprep.subr.bf16.mxu0 %v8939_v10  ;;  %v9011_v10 = vld [vmem:[#allocation6 + $0x17e0] ss:$24 sps:$4 sm:$0xff]  }
 0x358   :  { %6215 = vmatpush1.bf16.msra.mxu0 %v8937_v11  ;;  %v1438_v11 = vsub.s32 2, %v9332_v49 }
 0x359   :  { %6216 = vmatprep.subr.bf16.mxu0 %v8944_v14  ;;  %v1442_v14 = vsub.s32 3, %v9332_v49 }
 0x35c   :  { %6217 = vmatpush1.bf16.msra.mxu0 %v8942_v15  ;;  %v9529_v15 = vld [vmem:[#allocation8] sm:$0x3f] }
 0x35d   :  { %6218 = vmatprep.subr.bf16.mxu0 %v8947_v19  ;;  %v1439_v19 = vrot.slane %v9529_v15, %v1438_v11 }
 0x360   :  { %6219 = vmatpush1.bf16.msra.mxu0 %v8945_v18  ;;  %v1443_v18 = vrot.slane %v9529_v15, %v1442_v14  ;;  %v7629_v14 = vld [vmem:[#allocation11] ss:$0 sm:$0xff] }
 0x361   :  { %6220 = vmatprep.subr.bf16.mxu0 %v8950_v21 }
 0x364   :  { %6221 = vmatpush1.bf16.msra.mxu0 %v8948_v17 }
 0x365   :  { %6222 = vmatprep.subr.bf16.mxu0 %v8953_v22 }
 0x368   :  { %6223 = vmatpush1.bf16.msra.mxu0 %v8951_v26 }
 0x369   :  { %6224 = vmatprep.subr.bf16.mxu0 %v8956_v27 }
 0x36c   :  { %6225 = vmatpush1.bf16.msra.mxu0 %v8954_v28 }
 0x36d   :  { %6226 = vmatprep.subr.bf16.mxu0 %v8959_v29 }
 0x370   :  { %6227 = vmatpush1.bf16.msra.mxu0 %v8957_v31 }
 0x371   :  { %6228 = vmatprep.subr.bf16.mxu0 %v8962_v32 }
 0x374   :  { %6229 = vmatpush1.bf16.msra.mxu0 %v8960_v16 }
 0x375   :  { %6230 = vmatprep.subr.bf16.mxu0 %v8965_v35 }
 0x378   :  { %6231 = vmatpush1.bf16.msra.mxu0 %v8963_v36 }
 0x379   :  { %6241 = vmatprep.subr.bf16.mxu0 %v8968_v37 }
 0x37b   :  { %6233 = vmatmul.mubr.bf16.vlgmr.msra.gmra.mrb[4].mxu0 %v9471_v40  ;;  %v9019_v40 = vld [vmem:[#allocation9 + $0x90] sm:$0xff]  }
 0x37c   :  { %6242 = vmatpush1.bf16.msra.mxu0 %v8966_v39  ;;  %6273 = vmatprep.mubr.bf16.mxu0 %v9473_v45  ;;  %v8986_v45 = vld [vmem:[#allocation6 + $0x1634] ss:$24 sps:$4 sm:$0xff]  }
 0x37d   :  { %6243 = vmatprep.subr.bf16.mxu0 %v8971_v41  ;;  %7705 = vmatpush3.bf16.msra.mxu1 %v9019_v40 }
 0x37e   :  { %7706 = vmatprep.subr.bf16.mxu1 %v9020_v25  ;;  %v9037_v25 = vld [vmem:[#allocation9 + $0x118] sm:$0xff]  }
 0x380   :  { %6244 = vmatpush1.bf16.msra.mxu0 %v8969_v42 }
 0x381   :  { %6245 = vmatprep.subr.bf16.mxu0 %v8974_v2  ;;  %7707 = vmatpush3.bf16.msra.mxu1 %v9021_v4  ;;  %v9031_v2 = vld [vmem:[#allocation9 + $0x100] sm:$0xff]  }
 0x382   :  { %7708 = vmatprep.subr.bf16.mxu1 %v9022_v30  ;;  %v9038_v4 = vld [vmem:[#allocation9 + $0x160] sm:$0xff]  }
 0x384   :  { %6246 = vmatpush1.bf16.msra.mxu0 %v8972_v7 }
 0x385   :  { %6247 = vmatprep.subr.bf16.mxu0 %v8977_v44  ;;  %7709 = vmatpush3.bf16.msra.mxu1 %v9023_v52  ;;  %v9032_v44 = vld [vmem:[#allocation9 + $0x148] sm:$0xff]  }
 0x386   :  { %7710 = vmatprep.subr.bf16.mxu1 %v9024_v55  ;;  %v9041_v52 = vld [vmem:[#allocation9 + $0x128] sm:$0xff]   ;;  %v9042_v55 = vld [vmem:[#allocation9 + $0x170] sm:$0xff]  }
 0x388   :  { %6248 = vmatpush1.bf16.msra.mxu0 %v8975_v46  ;;  %v9033_v46 = vld [vmem:[#allocation9 + $0x108] sm:$0xff]  }
 0x389   :  { %6249 = vmatprep.subr.bf16.mxu0 %v8980_v23  ;;  %7711 = vmatpush3.bf16.msra.mxu1 %v9025_v57  ;;  %v9034_v23 = vld [vmem:[#allocation9 + $0x150] sm:$0xff]   ;;  %v9045_v57 = vld [vmem:[#allocation9 + $0x138] sm:$0xff]  }
 0x38a   :  { %7712 = vmatprep.subr.bf16.mxu1 %v9026_v58  ;;  %v1446_v58 = vsub.s32 4, %v9332_v49 }
 0x38c   :  { %6250 = vmatpush1.bf16.msra.mxu0 %v8978_v47  ;;  %v9035_v47 = vld [vmem:[#allocation9 + $0x110] sm:$0xff]  }
 0x38d   :  { %6251 = vmatprep.subr.bf16.mxu0 %v8983_v51  ;;  %7713 = vmatpush3.bf16.msra.mxu1 %v9027_v61  ;;  %v9036_v51 = vld [vmem:[#allocation9 + $0x158] sm:$0xff]  }
 0x38e   :  { %7714 = vmatprep.subr.bf16.mxu1 %v9028_v62 }
 0x390   :  { %6252 = vmatpush1.bf16.msra.mxu0 %v8981_v53 }
 0x391   :  { %6253 = vmatprep.subr.bf16.mxu0 %v8986_v45  ;;  %7715 = vmatpush3.bf16.msra.mxu1 %v9029_v1 }
 0x392   :  { %7722 = vmatprep.subr.bf16.mxu1 %v9030_v3 }
 0x394   :  { %6254 = vmatpush1.bf16.msra.mxu0 %v8984_v48  ;;  %v9039_v48 = vld [vmem:[#allocation9 + $0x120] sm:$0xff]  }
 0x395   :  { %6255 = vmatprep.subr.bf16.mxu0 %v8989_v50  ;;  %v9040_v50 = vld [vmem:[#allocation9 + $0x168] sm:$0xff]  }
 0x398   :  { %6256 = vmatpush1.bf16.msra.mxu0 %v8987_v34  ;;  %v9043_v34 = vld [vmem:[#allocation9 + $0x130] sm:$0xff]  }
 0x399   :  { %6257 = vmatprep.subr.bf16.mxu0 %v8992_v56  ;;  %v9044_v56 = vld [vmem:[#allocation9 + $0x178] sm:$0xff]  }
 0x39c   :  { %6258 = vmatpush1.bf16.msra.mxu0 %v8990_v60  ;;  %v1450_v60 = vsub.s32 5, %v9332_v49 }
 0x39d   :  { %6259 = vmatprep.subr.bf16.mxu0 %v8995_v59  ;;  %v1447_v59 = vrot.slane %v9529_v15, %v1446_v58 }
 0x39e   :  { %v1451_v61 = vrot.slane %v9529_v15, %v1450_v60 }
 0x3a0   :  { %6260 = vmatpush1.bf16.msra.mxu0 %v8993_v0 }
 0x3a1   :  { %6261 = vmatprep.subr.bf16.mxu0 %v8998_v63 }
 0x3a4   :  { %6262 = vmatpush1.bf16.msra.mxu0 %v8996_v54 }
 0x3a5   :  { %6263 = vmatprep.subr.bf16.mxu0 %v9001_v13 }
 0x3a8   :  { %6264 = vmatpush1.bf16.msra.mxu0 %v8999_v12 }
 0x3a9   :  { %6265 = vmatprep.subr.bf16.mxu0 %v9004_v5 }
 0x3ac   :  { %6266 = vmatpush1.bf16.msra.mxu0 %v9002_v6 }
 0x3ad   :  { %6267 = vmatprep.subr.bf16.mxu0 %v9007_v8 }
 0x3b0   :  { %6268 = vmatpush1.bf16.msra.mxu0 %v9005_v20 }
 0x3b1   :  { %6269 = vmatprep.subr.bf16.mxu0 %v9010_v33 }
 0x3b4   :  { %6270 = vmatpush1.bf16.msra.mxu0 %v9008_v9 }
 0x3b5   :  { %6271 = vmatprep.subr.bf16.mxu0 %v9013_v38 }
 0x3b8   :  { %6272 = vmatpush1.bf16.msra.mxu0 %v9011_v10 }
 0x3bb   :  { %6274 = vmatmul.mubr.bf16.vlgmr.msra.gmra.mrb[4].mxu0 %v9481_v43 }
 0x3f8   :  { %v5947_v21 = vpop.f32.mrb[4].mxu1 }
 0x3f9   :  { %v7748_v17 = vadd.f32 %v5947_v21, %v1439_v19  ;;  %v5949_v22 = vpop.f32.mrb[5].mxu1 }
 0x3fa   :  { %v7749_v26 = vadd.f32 %v5949_v22, %v1443_v18  ;;  %v5951_v27 = vpop.f32.mrb[6].mxu1 }
 0x3fb   :  { %v6290_v28 = vmul.f32 0.70710677, %v7748_v17  ;;  %v5952_v29 = vpop.f32.mrb[7].mxu1  ;;  %v6284_v16 = vmul.f32 0.5, %v7748_v17 }
 0x3fc   :  { %v6291_v31 = vmul.f32 0.70710677, %v7749_v26  ;;  %v6285_v36 = vmul.f32 0.5, %v7749_v26 }
 0x3fd   :  { %9050 = verf.f32 %v6290_v28 }
 0x3fe   :  { %9052 = verf.f32 %v6291_v31 }
 0x407   :  { %v9051_v43 = vpop.eup %9050 }
 0x408   :  { %v9053_v32 = vpop.eup %9052  ;;  %v6302_v35 = vadd.f32 1.0, %v9051_v43 }
 0x409   :  { %v6303_v37 = vadd.f32 1.0, %v9053_v32 }
 0x40a   :  { %v6308_v39 = vmul.f32 %v6302_v35, %v6284_v16 }
 0x40b   :  { %v6309_v41 = vmul.f32 %v6303_v37, %v6285_v36 }
 0x40c   :  { %v6314_v7 = vpack.c.bf16 %v6308_v39, %v6308_v39 }
 0x40d   :  { %v6315_v42 = vpack.c.bf16 %v6309_v41, %v6309_v41 }
 0x40f   :  { %6781 = vmatprep.mubr.bf16.mxu1 %v6315_v42 }
 0x410   :  { %6782 = vmatmul.mubr.bf16.vlgmr.msra.gmra.mrb[12].mxu1 %v6314_v7 }
 0x411   :  { %7723 = vmatpush3.bf16.msra.mxu1 %v9031_v2 }
 0x412   :  { %7724 = vmatprep.subr.bf16.mxu1 %v9032_v44 }
 0x415   :  { %7725 = vmatpush3.bf16.msra.mxu1 %v9033_v46 }
 0x416   :  { %7726 = vmatprep.subr.bf16.mxu1 %v9034_v23 }
 0x418   :  { %v7694_v24 = vpop.f32.mrb[8].mxu1 }
 0x419   :  { %v7695_v40 = vpop.f32.mrb[9].mxu1  ;;  %7727 = vmatpush3.bf16.msra.mxu1 %v9035_v47 }
 0x41a   :  { %v7696_v53 = vadd.f32 %v7695_v40, %v7694_v24  ;;  %v7697_v45 = vpop.f32.mrb[10].mxu1  ;;  %7728 = vmatprep.subr.bf16.mxu1 %v9036_v51 }
 0x41b   :  { %v7698_v30 = vpop.f32.mrb[11].mxu1 }
 0x41c   :  { %v6744_v18 = vadd.f32 %v7696_v53, %v7629_v14 }
 0x41d   :  { %7729 = vmatpush3.bf16.msra.mxu1 %v9037_v25 }
 0x41e   :  { %7730 = vmatprep.subr.bf16.mxu1 %v9038_v4 }
 0x421   :  { %7731 = vmatpush3.bf16.msra.mxu1 %v9039_v48 }
 0x422   :  { %7732 = vmatprep.subr.bf16.mxu1 %v9040_v50 }
 0x425   :  { %7733 = vmatpush3.bf16.msra.mxu1 %v9041_v52 }
 0x426   :  { %7734 = vmatprep.subr.bf16.mxu1 %v9042_v55 }
 0x429   :  { %7735 = vmatpush3.bf16.msra.mxu1 %v9043_v34 }
 0x42a   :  { %7736 = vmatprep.subr.bf16.mxu1 %v9044_v56 }
 0x42d   :  { %7737 = vmatpush3.bf16.msra.mxu1 %v9045_v57 }
 0x48e   :  { %v6275_v62 = vpop.f32.mrb[4].mxu0 }
 0x48f   :  { %v7750_v0 = vadd.f32 %v6275_v62, %v1447_v59  ;;  %v6277_v63 = vpop.f32.mrb[5].mxu0 }
 0x490   :  { %v7751_v1 = vadd.f32 %v6277_v63, %v1451_v61  ;;  %v6279_v3 = vpop.f32.mrb[6].mxu0 }
 0x491   :  { %v6292_v54 = vmul.f32 0.70710677, %v7750_v0  ;;  %v6280_v13 = vpop.f32.mrb[7].mxu0  ;;  %v6286_v8 = vmul.f32 0.5, %v7750_v0 }
 0x492   :  { %v6293_v12 = vmul.f32 0.70710677, %v7751_v1  ;;  %v6287_v33 = vmul.f32 0.5, %v7751_v1 }
 0x493   :  { %9054 = verf.f32 %v6292_v54 }
 0x494   :  { %9056 = verf.f32 %v6293_v12 }
 0x49d   :  { %v9055_v5 = vpop.eup %9054 }
 0x49e   :  { %v9057_v6 = vpop.eup %9056  ;;  %v6304_v20 = vadd.f32 1.0, %v9055_v5 }
 0x49f   :  { %v6305_v49 = vadd.f32 1.0, %v9057_v6 }
 0x4a0   :  { %v6310_v9 = vmul.f32 %v6304_v20, %v6286_v8 }
 0x4a1   :  { %v6311_v38 = vmul.f32 %v6305_v49, %v6287_v33 }
 0x4a2   :  { %v6316_v11 = vpack.c.bf16 %v6310_v9, %v6310_v9 }
 0x4a3   :  { %v6317_v10 = vpack.c.bf16 %v6311_v38, %v6311_v38 }
 0x4a5   :  { %6821 = vmatprep.mubr.bf16.mxu1 %v6317_v10 }
 0x4a6   :  { %6822 = vmatmul.mubr.bf16.vlgmr.msra.gmra.mrb[16].mxu1 %v6316_v11 }
 0x4e3   :  { %v7716_v15 = vpop.f32.mrb[12].mxu1 }
 0x4e4   :  { %v7717_v19 = vpop.f32.mrb[13].mxu1 }
 0x4e5   :  { %v7718_v21 = vadd.f32 %v7717_v19, %v7716_v15  ;;  %v7719_v17 = vpop.f32.mrb[14].mxu1 }
 0x4e6   :  { %v7720_v22 = vpop.f32.mrb[15].mxu1 }
 0x4e7   :  { %v6784_v26 = vadd.f32 %v7718_v21, %v6744_v18 }
 0x4e8   :  { %9180 = shalt.err (!%p9177_p2)
}
 0x4e9   :  { %s9181_s14 = scalar_lea.hbm %s9567_s6, 512 }
 0x4ea   :  { %p9182_p3 = scmp.ne.s32.totalorder %s9567_s6, %s9181_s14  ;;  %p9185_p4 = scmp.lt.u32.totalorder %s9181_s14, %s9567_s6 }
 0x4ec   :  { %p9187_p5 = pnand %p9185_p4, %p9182_p3 }
 0x4ee   :  { %9190 = shalt.err (!%p9187_p5)
}
 0x4ef   :  { %6849 = dma.vmem_to_hbm [thread:$0]  %s6847_s10, 512, %s9567_s6, [#allocation14]  }
 0x4f0   :  { %s9236_s1 = smov [#allocation12]  }
 0x4f1   :  { %s6836_s21 = sshll.u32 %s9236_s1, 4  ;;  %s6837_s21 = int_to_ptr.vmem [resolvable:$true] %s6836_s21 }
 0x4f2   :  { %s9191_s22 = scalar_lea.vmem %s6837_s21, 32  ;;  %p9196_p7 = scmp.lt.s32.totalorder %s6837_s21, %s6837_s21 }
 0x4f3   :  { %p9192_p6 = scmp.ne.s32.totalorder %s6837_s21, %s9191_s22  ;;  %p9197_p8 = scmp.lt.s32.totalorder %s9191_s22, %s9191_s22 }
 0x4f5   :  { %p9198_p9 = por %p9197_p8, %p9196_p7 }
 0x4f7   :  { %p9199_p10 = pnand %p9198_p9, %p9192_p6 }
 0x579   :  { %v7738_v27 = vpop.f32.mrb[16].mxu1 }
 0x57a   :  { %v7739_v28 = vpop.f32.mrb[17].mxu1 }
 0x57b   :  { %v7740_v29 = vadd.f32 %v7739_v28, %v7738_v27  ;;  %v7741_v31 = vpop.f32.mrb[18].mxu1 }
 0x57c   :  { %v7742_v43 = vpop.f32.mrb[19].mxu1 }
 0x57d   :  { %v6824_v32 = vadd.f32 %v7740_v29, %v6784_v26 }
 0x57f   :  { %6829 = vst [vmem:[#allocation12] sm:$0x3] %v6824_v32 }
 0x580   :  { %9202 = shalt.err (!%p9199_p10)
}
 0x581   :  { %s9203_s6 = scalar_lea.hbm %s9566_s5, 32 }
 0x582   :  { %p9204_p11 = scmp.ne.s32.totalorder %s9566_s5, %s9203_s6  ;;  %p9207_p12 = scmp.lt.u32.totalorder %s9203_s6, %s9566_s5 }
 0x584   :  { %p9209_p13 = pnand %p9207_p12, %p9204_p11 }
 0x586   :  { %9212 = shalt.err (!%p9209_p13)
}
 0x587   :  { %6839 = dma.vmem_to_hbm [thread:$0]  %s6837_s21, 32, %s9566_s5, [#allocation5]  }
 0x588   :  { %9219 = dma.done.wait [#allocation5], 32  }
 0x589   :  { %9220 = vsyncadd [#allocation5], 4294967264 }
 0x58a   :  { %9221 = dma.done.wait [#allocation14], 512  }
 0x58b   :  { %9222 = vsyncadd [#allocation14], 4294966784 }
 0x58c   :  { %6856 = vsyncpa [#allocation4], 1 }
 0x58d   :  { %6857 = vsyncpa [#allocation7], 1 }
 0x58e   :  { %6858 = vsyncpa [#allocation10], 1 }
 0x58f   :  { %6859 = vsyncpa [#allocation5], 1 }
 0x590   :  { %6860 = vsyncpa [#allocation14], 1 }

</bundles_post_ra>
